<compile_context>
chip_gen: v6e
topology: v6e:2x2x1
jax: 0.10.0
libtpu: 0.0.40
codegen_flags: <defaults>
</compile_context>

<pallas_src>
import math

import jax
import jax.numpy as jnp
import numpy as np
from jax.experimental import pallas as pl
from jax.experimental.pallas import tpu as pltpu  # noqa: F401  (whole model fits default VMEM blocks; no TPU-specific params needed)

# ----------------------------- model dimensions -----------------------------
B, S, H = 2, 8, 32          # batch, sequence length, hidden size
NH = 4                      # num_attention_heads
DH = H // NH                # head dim
DFF = 64                    # FFN width (torch default is 2048; shrunk for the synthetic run)
NUM_LAYERS = 2
SEL_D = 32                  # selection-layer hidden size
LABELS = ["NA", "per:employee_of", "org:founded_by", "per:spouse", "org:member_of"]
L = len(LABELS)
NA_ID = LABELS.index("NA")
VOCAB = 50
NFEAT = 7
NEG_INF = -1e9

LAYER_KEYS = ("wq", "bq", "wk", "bk", "wv", "bv", "wo", "bo",
              "ln1w", "ln1b", "w1", "b1", "w2", "b2", "ln2w", "ln2b")


# ------------------------------- helpers ------------------------------------
def _layernorm(x, w, b, eps=1e-5):
    mu = jnp.mean(x, axis=-1, keepdims=True)
    var = jnp.mean((x - mu) ** 2, axis=-1, keepdims=True)
    return (x - mu) * jax.lax.rsqrt(var + eps) * w + b


# --------------------- Pallas kernel: fully fused forward --------------------
def fused_forward_kernel(x_ref, bias_ref, w_qkvo_ref, vecs_ref, w1b_ref, w2b_ref,
                         sel_uv_ref, sel_l_ref, h_ref, logits_ref):
    x = x_ref[...]                     # (B*S, H) f32 — batch folded into sublanes
    key_bias = bias_ref[...]           # (B, S)   additive key-padding bias

    # ---------------- NUM_LAYERS post-LN transformer encoder layers ----------------
    for l in range(NUM_LAYERS):
        wm = w_qkvo_ref[l]             # (H, 4H): [wq*scale | wk | wv | wo]
        vl = vecs_ref[l]               # (8, H):  bq*scale, bk, bv, bo, ln1w, ln1b, ln2w, ln2b

        # packed-head Q/K/V projection over the whole folded batch: one (16,32)@(32,96) matmul.
        qkv = jnp.dot(x, wm[:, :3 * H], preferred_element_type=jnp.float32)      # (B*S, 3H)
        q = qkv[:, 0:H] + vl[0:1]
        k = qkv[:, H:2 * H] + vl[1:2]
        v = qkv[:, 2 * H:3 * H] + vl[2:3]
        wo = wm[:, 3 * H:]             # (H, H)

        batch_attn = []
        for b in range(B):             # static loop: only the key-padding mask differs per batch
            rows = slice(b * S, (b + 1) * S)
            qb, kb, vb = q[rows], k[rows], v[rows]
            mb = key_bias[b:b + 1, :]                                            # (1, S)
            acc = jnp.zeros((S, H), jnp.float32)
            for hd in range(NH):       # static unrolled; lane slices of the packed q/k/v
                cs = slice(hd * DH, (hd + 1) * DH)
                # q @ k^T without materializing a transpose (contract the lane dims).
                s = jax.lax.dot_general(qb[:, cs], kb[:, cs],
                                        dimension_numbers=(((1,), (1,)), ((), ())),
                                        preferred_element_type=jnp.float32) + mb  # (S, S)
                s = s - jnp.max(s, axis=-1, keepdims=True)
                p = jnp.exp(s)
                p = p / jnp.sum(p, axis=-1, keepdims=True)     # exact divide (f32 parity)
                head = jnp.dot(p, vb[:, cs], preferred_element_type=jnp.float32)  # (S, DH)
                # fold the head straight into the Wo product — no head concatenate.
                acc = acc + jnp.dot(head, wo[cs, :], preferred_element_type=jnp.float32)
            batch_attn.append(acc)
        attn = jnp.concatenate(batch_attn, axis=0) + vl[3:4]                      # (B*S, H)

        # post-LN residual block 1
        y = _layernorm(x + attn, vl[4:5], vl[5:6])
        # FFN (relu) + post-LN residual block 2
        w1 = w1b_ref[l]                                                           # (H+1, DFF)
        f = jnp.maximum(jnp.dot(y, w1[:H], preferred_element_type=jnp.float32)
                        + w1[H:H + 1], 0.0)
        w2 = w2b_ref[l]                                                           # (DFF+1, H)
        f = jnp.dot(f, w2[:DFF], preferred_element_type=jnp.float32) + w2[DFF:DFF + 1]
        x = _layernorm(y + f, vl[6:7], vl[7:8])

    h_ref[...] = x.astype(h_ref.dtype)

    # ---------------- MHS selection layer: relu(u_subj + v_obj) @ Wl + bl ----------------
    suv = sel_uv_ref[...]                                      # (H+1, 2*SEL_D)
    uv = jnp.dot(x, suv[:H], preferred_element_type=jnp.float32) + suv[H:H + 1]   # (B*S, 2*SEL_D)
    slab = sel_l_ref[...]                                      # (SEL_D+1, L)
    w_lab, b_lab = slab[:SEL_D], slab[SEL_D:SEL_D + 1]

    for b in range(B):
        rows = slice(b * S, (b + 1) * S)
        ub = uv[rows, :SEL_D]                                  # (S, SEL_D) subject reps
        vb = uv[rows, SEL_D:]                                  # (S, SEL_D) object reps
        blocks = []
        for o in range(S):                                     # static loop over object positions
            feat_o = jnp.maximum(ub + vb[o:o + 1, :], 0.0)                        # (S, SEL_D)
            blocks.append(jnp.dot(feat_o, w_lab, preferred_element_type=jnp.float32) + b_lab)
        # lane-dense slab: row = subj, columns = obj*L + label  ->  one 40-lane store.
        logits_ref[b] = jnp.concatenate(blocks, axis=1).astype(logits_ref.dtype)  # (S, S*L)


# ------------------------------- host wrapper --------------------------------
def transformer_mhs_forward(input_ids, feat0, attention_mask, packed, emb):
    w_qkvo, vecs, w1b, w2b, sel_uv, sel_l = packed

    # TODO(synk): sentence_encoder is an injected external module; stubbed as
    #             word-id + feature-id embedding sum (out_dim == hidden_size).
    enc = jnp.take(emb["word_emb"], input_ids, axis=0) + jnp.take(emb["feat_emb"], feat0, axis=0)

    # bert_mask_wrapper: attention_mask == 1 marks valid tokens; padded keys get a -inf bias.
    key_bias = jnp.where(attention_mask == 0, NEG_INF, 0.0).astype(jnp.float32)   # (B, S)

    h2d, logits_wide = pl.pallas_call(
        fused_forward_kernel,
        out_shape=(jax.ShapeDtypeStruct((B * S, H), jnp.float32),
                   jax.ShapeDtypeStruct((B, S, S * L), jnp.float32)),
    )(enc.reshape(B * S, H), key_bias, w_qkvo, vecs, w1b, w2b, sel_uv, sel_l)

    h = h2d.reshape(B, S, H)
    logits = logits_wide.reshape(B, S, S, L)                   # (batch, subj, obj, label)

    # inference thresholding, done in plain JAX (perf review: drop tags from the kernel).
    # sigmoid(x) * mask > 0.5  ==  (x > 0) & mask  (exact for a {0,1} mask).
    ent = feat0 != 0                                           # mask_entity=True -> features[0] != 0
    pair = ent[:, :, None] & ent[:, None, :]
    tags = ((logits > 0.0) & pair[:, :, :, None]).astype(jnp.float32)
    return enc, h, logits, tags


# ---------------------------- pure-JAX reference ------------------------------
def ref_forward(enc, key_bias, layers, sel):
    x = enc
    scale = 1.0 / math.sqrt(DH)
    bias4 = key_bias[:, None, None, :]                         # (B, 1, 1, S)
    for l in range(NUM_LAYERS):
        q = x @ layers["wq"][l] + layers["bq"][l]
        k = x @ layers["wk"][l] + layers["bk"][l]
        v = x @ layers["wv"][l] + layers["bv"][l]
        qh = q.reshape(B, S, NH, DH).transpose(0, 2, 1, 3)
        kh = k.reshape(B, S, NH, DH).transpose(0, 2, 1, 3)
        vh = v.reshape(B, S, NH, DH).transpose(0, 2, 1, 3)
        s = jnp.einsum("bnqd,bnkd->bnqk", qh, kh) * scale + bias4
        a = jax.nn.softmax(s, axis=-1)
        o = jnp.einsum("bnqk,bnkd->bnqd", a, vh)
        ctx = o.transpose(0, 2, 1, 3).reshape(B, S, H)
        attn = ctx @ layers["wo"][l] + layers["bo"][l]
        y = _layernorm(x + attn, layers["ln1w"][l], layers["ln1b"][l])
        f = jax.nn.relu(y @ layers["w1"][l] + layers["b1"][l])
        f = f @ layers["w2"][l] + layers["b2"][l]
        x = _layernorm(y + f, layers["ln2w"][l], layers["ln2b"][l])
    u = x @ sel["wu"] + sel["bu"]
    v = x @ sel["wv"] + sel["bv"]
    feat = jax.nn.relu(u[:, :, None, :] + v[:, None, :, :])
    logits = feat @ sel["wl"] + sel["bl"]                      # (B, S, S, L) subj, obj, label
    return x, logits


# ----------------------------- parameter init / packing ------------------------
def _normal(key, shape, std=0.02):
    return (std * jax.random.normal(key, shape)).astype(jnp.float32)


def init_params(key):
    keys = iter(jax.random.split(key, 64))

    def per_layer():
        return {
            "wq": _normal(next(keys), (H, H)), "bq": _normal(next(keys), (1, H)),
            "wk": _normal(next(keys), (H, H)), "bk": _normal(next(keys), (1, H)),
            "wv": _normal(next(keys), (H, H)), "bv": _normal(next(keys), (1, H)),
            "wo": _normal(next(keys), (H, H)), "bo": _normal(next(keys), (1, H)),
            "ln1w": 1.0 + _normal(next(keys), (1, H)), "ln1b": _normal(next(keys), (1, H)),
            "w1": _normal(next(keys), (H, DFF)), "b1": _normal(next(keys), (1, DFF)),
            "w2": _normal(next(keys), (DFF, H)), "b2": _normal(next(keys), (1, H)),
            "ln2w": 1.0 + _normal(next(keys), (1, H)), "ln2b": _normal(next(keys), (1, H)),
        }

    per = [per_layer() for _ in range(NUM_LAYERS)]
    layers = {k: jnp.stack([p[k] for p in per], axis=0) for k in LAYER_KEYS}
    sel = {
        "wu": _normal(next(keys), (H, SEL_D)), "bu": _normal(next(keys), (1, SEL_D)),
        "wv": _normal(next(keys), (H, SEL_D)), "bv": _normal(next(keys), (1, SEL_D)),
        "wl": _normal(next(keys), (SEL_D, L)), "bl": _normal(next(keys), (1, L)),
    }
    emb = {
        "word_emb": _normal(next(keys), (VOCAB, H)),
        "feat_emb": _normal(next(keys), (NFEAT, H)),
    }
    return layers, sel, emb


def pack_params(layers, sel):
    """Fold 1/sqrt(DH) into Wq/bq and pack all parameters into 6 kernel refs."""
    scale = 1.0 / math.sqrt(DH)
    w_qkvo = jnp.concatenate([layers["wq"] * scale, layers["wk"],
                              layers["wv"], layers["wo"]], axis=-1)               # (NL, H, 4H)
    vecs = jnp.concatenate([layers["bq"] * scale, layers["bk"], layers["bv"], layers["bo"],
                            layers["ln1w"], layers["ln1b"],
                            layers["ln2w"], layers["ln2b"]], axis=1)              # (NL, 8, H)
    w1b = jnp.concatenate([layers["w1"], layers["b1"]], axis=1)                   # (NL, H+1, DFF)
    w2b = jnp.concatenate([layers["w2"], layers["b2"]], axis=1)                   # (NL, DFF+1, H)
    sel_uv = jnp.concatenate(
        [jnp.concatenate([sel["wu"], sel["wv"]], axis=1),
         jnp.concatenate([sel["bu"], sel["bv"]], axis=1)], axis=0)                # (H+1, 2*SEL_D)
    sel_l = jnp.concatenate([sel["wl"], sel["bl"]], axis=0)                       # (SEL_D+1, L)
    return w_qkvo, vecs, w1b, w2b, sel_uv, sel_l


# ----------------------------------- main --------------------------------------
if __name__ == "__main__":
    root = jax.random.PRNGKey(0)
    k_param, k_ids, k_feat = jax.random.split(root, 3)

    layers, sel, emb = init_params(k_param)
    packed = pack_params(layers, sel)

    input_ids = jax.random.randint(k_ids, (B, S), 0, VOCAB, dtype=jnp.int32)
    feat0 = jax.random.randint(k_feat, (B, S), 0, NFEAT, dtype=jnp.int32)   # features[0]
    attention_mask = jnp.ones((B, S), jnp.int32).at[1, S - 2:].set(0)       # batch 1 has 2 pad tokens

    enc, h, logits, tags = transformer_mhs_forward(input_ids, feat0, attention_mask, packed, emb)
    jax.block_until_ready((h, logits, tags))

    # -------- pure-JAX reference check --------
    key_bias = jnp.where(attention_mask == 0, NEG_INF, 0.0).astype(jnp.float32)
    h_expect, logits_expect = ref_forward(enc, key_bias, layers, sel)
    np.testing.assert_allclose(np.asarray(h), np.asarray(h_expect), rtol=2e-3, atol=2e-3)
    np.testing.assert_allclose(np.asarray(logits), np.asarray(logits_expect), rtol=2e-3, atol=2e-3)

    # tag stage is a deterministic threshold of the kernel's own logits
    ent_np = np.asarray(feat0) != 0
    pair_np = ent_np[:, :, None] & ent_np[:, None, :]
    tags_expect = (np.asarray(logits) > 0.0) & pair_np[:, :, :, None]
    np.testing.assert_array_equal(np.asarray(tags) > 0.5, tags_expect)

    # -------- host-side triple extraction (torch.nonzero equivalent) --------
    # tags are in (batch, subj, obj, label) layout; emit (s, p, o) triples, skipping NA.
    result = [[] for _ in range(B)]
    for bidx, s_, o_, p_ in np.argwhere(np.asarray(tags) > 0.5):
        if p_ == NA_ID:
            continue
        result[int(bidx)].append((int(s_), int(p_), int(o_)))

    print("KERNEL_OK")
</pallas_src>

<mosaic_0001>
module attributes {stable_mosaic.version = 11 : i64} {
  func.func @fused_forward_kernel(%arg0: memref<16x32xf32, #tpu.memory_space<vmem>>, %arg1: memref<2x8xf32, #tpu.memory_space<vmem>>, %arg2: memref<2x32x128xf32, #tpu.memory_space<vmem>>, %arg3: memref<2x8x32xf32, #tpu.memory_space<vmem>>, %arg4: memref<2x33x64xf32, #tpu.memory_space<vmem>>, %arg5: memref<2x65x32xf32, #tpu.memory_space<vmem>>, %arg6: memref<33x64xf32, #tpu.memory_space<vmem>>, %arg7: memref<33x5xf32, #tpu.memory_space<vmem>>, %arg8: memref<16x32xf32, #tpu.memory_space<vmem>>, %arg9: memref<2x8x40xf32, #tpu.memory_space<vmem>>) attributes {dimension_semantics = [], scalar_prefetch = 0 : i64, scratch_operands = 0 : i64, tpu.core_type = #tpu.core_type<tc>} {
    %c0 = arith.constant 0 : index
    %c0_0 = arith.constant 0 : index
    %0 = vector.load %arg0[%c0, %c0_0] : memref<16x32xf32, #tpu.memory_space<vmem>>, vector<16x32xf32>
    %c0_1 = arith.constant 0 : index
    %c0_2 = arith.constant 0 : index
    %1 = vector.load %arg1[%c0_1, %c0_2] : memref<2x8xf32, #tpu.memory_space<vmem>>, vector<2x8xf32>
    %c0_3 = arith.constant 0 : index
    %c0_4 = arith.constant 0 : index
    %c0_5 = arith.constant 0 : index
    %2 = vector.load %arg2[%c0_3, %c0_4, %c0_5] : memref<2x32x128xf32, #tpu.memory_space<vmem>>, vector<1x32x128xf32>
    %3 = vector.shape_cast %2 : vector<1x32x128xf32> to vector<32x128xf32>
    %c0_6 = arith.constant 0 : index
    %c0_7 = arith.constant 0 : index
    %c0_8 = arith.constant 0 : index
    %4 = vector.load %arg3[%c0_6, %c0_7, %c0_8] : memref<2x8x32xf32, #tpu.memory_space<vmem>>, vector<1x8x32xf32>
    %5 = vector.shape_cast %4 : vector<1x8x32xf32> to vector<8x32xf32>
    %6 = vector.extract_strided_slice %3 {offsets = [0, 0], sizes = [32, 96], strides = [1, 1]} : vector<32x128xf32> to vector<32x96xf32>
    %cst = arith.constant dense<0.000000e+00> : vector<16x96xf32>
    %7 = tpu.matmul %0, %6, %cst {dimension_numbers = #tpu.dot_dimension_numbers<[1], [0], [0], [1], [0, 0, 1, 1], [], []>} : vector<16x32xf32>, vector<32x96xf32>, vector<16x96xf32> -> vector<16x96xf32>
    %8 = vector.extract_strided_slice %7 {offsets = [0, 0], sizes = [16, 32], strides = [1, 1]} : vector<16x96xf32> to vector<16x32xf32>
    %9 = vector.extract_strided_slice %5 {offsets = [0, 0], sizes = [1, 32], strides = [1, 1]} : vector<8x32xf32> to vector<1x32xf32>
    %10 = vector.broadcast %9 : vector<1x32xf32> to vector<16x32xf32>
    %11 = arith.addf %8, %10 : vector<16x32xf32>
    %12 = vector.extract_strided_slice %7 {offsets = [0, 32], sizes = [16, 32], strides = [1, 1]} : vector<16x96xf32> to vector<16x32xf32>
    %13 = vector.extract_strided_slice %5 {offsets = [1, 0], sizes = [1, 32], strides = [1, 1]} : vector<8x32xf32> to vector<1x32xf32>
    %14 = vector.broadcast %13 : vector<1x32xf32> to vector<16x32xf32>
    %15 = arith.addf %12, %14 : vector<16x32xf32>
    %16 = vector.extract_strided_slice %7 {offsets = [0, 64], sizes = [16, 32], strides = [1, 1]} : vector<16x96xf32> to vector<16x32xf32>
    %17 = vector.extract_strided_slice %5 {offsets = [2, 0], sizes = [1, 32], strides = [1, 1]} : vector<8x32xf32> to vector<1x32xf32>
    %18 = vector.broadcast %17 : vector<1x32xf32> to vector<16x32xf32>
    %19 = arith.addf %16, %18 : vector<16x32xf32>
    %20 = vector.extract_strided_slice %3 {offsets = [0, 96], sizes = [32, 32], strides = [1, 1]} : vector<32x128xf32> to vector<32x32xf32>
    %21 = vector.extract_strided_slice %11 {offsets = [0, 0], sizes = [8, 32], strides = [1, 1]} : vector<16x32xf32> to vector<8x32xf32>
    %22 = vector.extract_strided_slice %15 {offsets = [0, 0], sizes = [8, 32], strides = [1, 1]} : vector<16x32xf32> to vector<8x32xf32>
    %23 = vector.extract_strided_slice %19 {offsets = [0, 0], sizes = [8, 32], strides = [1, 1]} : vector<16x32xf32> to vector<8x32xf32>
    %24 = vector.extract_strided_slice %1 {offsets = [0, 0], sizes = [1, 8], strides = [1, 1]} : vector<2x8xf32> to vector<1x8xf32>
    %cst_9 = arith.constant 0.000000e+00 : f32
    %25 = vector.broadcast %cst_9 : f32 to vector<8x32xf32>
    %26 = vector.extract_strided_slice %21 {offsets = [0, 0], sizes = [8, 8], strides = [1, 1]} : vector<8x32xf32> to vector<8x8xf32>
    %27 = vector.extract_strided_slice %22 {offsets = [0, 0], sizes = [8, 8], strides = [1, 1]} : vector<8x32xf32> to vector<8x8xf32>
    %cst_10 = arith.constant dense<0.000000e+00> : vector<8x8xf32>
    %28 = tpu.matmul %26, %27, %cst_10 {dimension_numbers = #tpu.dot_dimension_numbers<[1], [1], [0], [0], [0, 0, 1, 0], [], []>} : vector<8x8xf32>, vector<8x8xf32>, vector<8x8xf32> -> vector<8x8xf32>
    %29 = vector.broadcast %24 : vector<1x8xf32> to vector<8x8xf32>
    %30 = arith.addf %28, %29 : vector<8x8xf32>
    %cst_11 = arith.constant dense<0xFF800000> : vector<8xf32>
    %31 = vector.multi_reduction <maximumf>, %30, %cst_11 [1] : vector<8x8xf32> to vector<8xf32>
    %32 = vector.shape_cast %31 : vector<8xf32> to vector<8x1xf32>
    %33 = vector.broadcast %32 : vector<8x1xf32> to vector<8x8xf32>
    %34 = arith.subf %30, %33 : vector<8x8xf32>
    %35 = math.exp %34 : vector<8x8xf32>
    %cst_12 = arith.constant dense<0.000000e+00> : vector<8xf32>
    %36 = vector.multi_reduction <add>, %35, %cst_12 [1] : vector<8x8xf32> to vector<8xf32>
    %37 = vector.shape_cast %36 : vector<8xf32> to vector<8x1xf32>
    %38 = vector.broadcast %37 : vector<8x1xf32> to vector<8x8xf32>
    %39 = arith.divf %35, %38 : vector<8x8xf32>
    %40 = vector.extract_strided_slice %23 {offsets = [0, 0], sizes = [8, 8], strides = [1, 1]} : vector<8x32xf32> to vector<8x8xf32>
    %cst_13 = arith.constant dense<0.000000e+00> : vector<8x8xf32>
    %41 = tpu.matmul %39, %40, %cst_13 {dimension_numbers = #tpu.dot_dimension_numbers<[1], [0], [0], [1], [0, 0, 1, 1], [], []>} : vector<8x8xf32>, vector<8x8xf32>, vector<8x8xf32> -> vector<8x8xf32>
    %42 = vector.extract_strided_slice %20 {offsets = [0, 0], sizes = [8, 32], strides = [1, 1]} : vector<32x32xf32> to vector<8x32xf32>
    %cst_14 = arith.constant dense<0.000000e+00> : vector<8x32xf32>
    %43 = tpu.matmul %41, %42, %cst_14 {dimension_numbers = #tpu.dot_dimension_numbers<[1], [0], [0], [1], [0, 0, 1, 1], [], []>} : vector<8x8xf32>, vector<8x32xf32>, vector<8x32xf32> -> vector<8x32xf32>
    %44 = arith.addf %25, %43 : vector<8x32xf32>
    %45 = vector.extract_strided_slice %21 {offsets = [0, 8], sizes = [8, 8], strides = [1, 1]} : vector<8x32xf32> to vector<8x8xf32>
    %46 = vector.extract_strided_slice %22 {offsets = [0, 8], sizes = [8, 8], strides = [1, 1]} : vector<8x32xf32> to vector<8x8xf32>
    %cst_15 = arith.constant dense<0.000000e+00> : vector<8x8xf32>
    %47 = tpu.matmul %45, %46, %cst_15 {dimension_numbers = #tpu.dot_dimension_numbers<[1], [1], [0], [0], [0, 0, 1, 0], [], []>} : vector<8x8xf32>, vector<8x8xf32>, vector<8x8xf32> -> vector<8x8xf32>
    %48 = vector.broadcast %24 : vector<1x8xf32> to vector<8x8xf32>
    %49 = arith.addf %47, %48 : vector<8x8xf32>
    %cst_16 = arith.constant dense<0xFF800000> : vector<8xf32>
    %50 = vector.multi_reduction <maximumf>, %49, %cst_16 [1] : vector<8x8xf32> to vector<8xf32>
    %51 = vector.shape_cast %50 : vector<8xf32> to vector<8x1xf32>
    %52 = vector.broadcast %51 : vector<8x1xf32> to vector<8x8xf32>
    %53 = arith.subf %49, %52 : vector<8x8xf32>
    %54 = math.exp %53 : vector<8x8xf32>
    %cst_17 = arith.constant dense<0.000000e+00> : vector<8xf32>
    %55 = vector.multi_reduction <add>, %54, %cst_17 [1] : vector<8x8xf32> to vector<8xf32>
    %56 = vector.shape_cast %55 : vector<8xf32> to vector<8x1xf32>
    %57 = vector.broadcast %56 : vector<8x1xf32> to vector<8x8xf32>
    %58 = arith.divf %54, %57 : vector<8x8xf32>
    %59 = vector.extract_strided_slice %23 {offsets = [0, 8], sizes = [8, 8], strides = [1, 1]} : vector<8x32xf32> to vector<8x8xf32>
    %cst_18 = arith.constant dense<0.000000e+00> : vector<8x8xf32>
    %60 = tpu.matmul %58, %59, %cst_18 {dimension_numbers = #tpu.dot_dimension_numbers<[1], [0], [0], [1], [0, 0, 1, 1], [], []>} : vector<8x8xf32>, vector<8x8xf32>, vector<8x8xf32> -> vector<8x8xf32>
    %61 = vector.extract_strided_slice %20 {offsets = [8, 0], sizes = [8, 32], strides = [1, 1]} : vector<32x32xf32> to vector<8x32xf32>
    %cst_19 = arith.constant dense<0.000000e+00> : vector<8x32xf32>
    %62 = tpu.matmul %60, %61, %cst_19 {dimension_numbers = #tpu.dot_dimension_numbers<[1], [0], [0], [1], [0, 0, 1, 1], [], []>} : vector<8x8xf32>, vector<8x32xf32>, vector<8x32xf32> -> vector<8x32xf32>
    %63 = arith.addf %44, %62 : vector<8x32xf32>
    %64 = vector.extract_strided_slice %21 {offsets = [0, 16], sizes = [8, 8], strides = [1, 1]} : vector<8x32xf32> to vector<8x8xf32>
    %65 = vector.extract_strided_slice %22 {offsets = [0, 16], sizes = [8, 8], strides = [1, 1]} : vector<8x32xf32> to vector<8x8xf32>
    %cst_20 = arith.constant dense<0.000000e+00> : vector<8x8xf32>
    %66 = tpu.matmul %64, %65, %cst_20 {dimension_numbers = #tpu.dot_dimension_numbers<[1], [1], [0], [0], [0, 0, 1, 0], [], []>} : vector<8x8xf32>, vector<8x8xf32>, vector<8x8xf32> -> vector<8x8xf32>
    %67 = vector.broadcast %24 : vector<1x8xf32> to vector<8x8xf32>
    %68 = arith.addf %66, %67 : vector<8x8xf32>
    %cst_21 = arith.constant dense<0xFF800000> : vector<8xf32>
    %69 = vector.multi_reduction <maximumf>, %68, %cst_21 [1] : vector<8x8xf32> to vector<8xf32>
    %70 = vector.shape_cast %69 : vector<8xf32> to vector<8x1xf32>
    %71 = vector.broadcast %70 : vector<8x1xf32> to vector<8x8xf32>
    %72 = arith.subf %68, %71 : vector<8x8xf32>
    %73 = math.exp %72 : vector<8x8xf32>
    %cst_22 = arith.constant dense<0.000000e+00> : vector<8xf32>
    %74 = vector.multi_reduction <add>, %73, %cst_22 [1] : vector<8x8xf32> to vector<8xf32>
    %75 = vector.shape_cast %74 : vector<8xf32> to vector<8x1xf32>
    %76 = vector.broadcast %75 : vector<8x1xf32> to vector<8x8xf32>
    %77 = arith.divf %73, %76 : vector<8x8xf32>
    %78 = vector.extract_strided_slice %23 {offsets = [0, 16], sizes = [8, 8], strides = [1, 1]} : vector<8x32xf32> to vector<8x8xf32>
    %cst_23 = arith.constant dense<0.000000e+00> : vector<8x8xf32>
    %79 = tpu.matmul %77, %78, %cst_23 {dimension_numbers = #tpu.dot_dimension_numbers<[1], [0], [0], [1], [0, 0, 1, 1], [], []>} : vector<8x8xf32>, vector<8x8xf32>, vector<8x8xf32> -> vector<8x8xf32>
    %80 = vector.extract_strided_slice %20 {offsets = [16, 0], sizes = [8, 32], strides = [1, 1]} : vector<32x32xf32> to vector<8x32xf32>
    %cst_24 = arith.constant dense<0.000000e+00> : vector<8x32xf32>
    %81 = tpu.matmul %79, %80, %cst_24 {dimension_numbers = #tpu.dot_dimension_numbers<[1], [0], [0], [1], [0, 0, 1, 1], [], []>} : vector<8x8xf32>, vector<8x32xf32>, vector<8x32xf32> -> vector<8x32xf32>
    %82 = arith.addf %63, %81 : vector<8x32xf32>
    %83 = vector.extract_strided_slice %21 {offsets = [0, 24], sizes = [8, 8], strides = [1, 1]} : vector<8x32xf32> to vector<8x8xf32>
    %84 = vector.extract_strided_slice %22 {offsets = [0, 24], sizes = [8, 8], strides = [1, 1]} : vector<8x32xf32> to vector<8x8xf32>
    %cst_25 = arith.constant dense<0.000000e+00> : vector<8x8xf32>
    %85 = tpu.matmul %83, %84, %cst_25 {dimension_numbers = #tpu.dot_dimension_numbers<[1], [1], [0], [0], [0, 0, 1, 0], [], []>} : vector<8x8xf32>, vector<8x8xf32>, vector<8x8xf32> -> vector<8x8xf32>
    %86 = vector.broadcast %24 : vector<1x8xf32> to vector<8x8xf32>
    %87 = arith.addf %85, %86 : vector<8x8xf32>
    %cst_26 = arith.constant dense<0xFF800000> : vector<8xf32>
    %88 = vector.multi_reduction <maximumf>, %87, %cst_26 [1] : vector<8x8xf32> to vector<8xf32>
    %89 = vector.shape_cast %88 : vector<8xf32> to vector<8x1xf32>
    %90 = vector.broadcast %89 : vector<8x1xf32> to vector<8x8xf32>
    %91 = arith.subf %87, %90 : vector<8x8xf32>
    %92 = math.exp %91 : vector<8x8xf32>
    %cst_27 = arith.constant dense<0.000000e+00> : vector<8xf32>
    %93 = vector.multi_reduction <add>, %92, %cst_27 [1] : vector<8x8xf32> to vector<8xf32>
    %94 = vector.shape_cast %93 : vector<8xf32> to vector<8x1xf32>
    %95 = vector.broadcast %94 : vector<8x1xf32> to vector<8x8xf32>
    %96 = arith.divf %92, %95 : vector<8x8xf32>
    %97 = vector.extract_strided_slice %23 {offsets = [0, 24], sizes = [8, 8], strides = [1, 1]} : vector<8x32xf32> to vector<8x8xf32>
    %cst_28 = arith.constant dense<0.000000e+00> : vector<8x8xf32>
    %98 = tpu.matmul %96, %97, %cst_28 {dimension_numbers = #tpu.dot_dimension_numbers<[1], [0], [0], [1], [0, 0, 1, 1], [], []>} : vector<8x8xf32>, vector<8x8xf32>, vector<8x8xf32> -> vector<8x8xf32>
    %99 = vector.extract_strided_slice %20 {offsets = [24, 0], sizes = [8, 32], strides = [1, 1]} : vector<32x32xf32> to vector<8x32xf32>
    %cst_29 = arith.constant dense<0.000000e+00> : vector<8x32xf32>
    %100 = tpu.matmul %98, %99, %cst_29 {dimension_numbers = #tpu.dot_dimension_numbers<[1], [0], [0], [1], [0, 0, 1, 1], [], []>} : vector<8x8xf32>, vector<8x32xf32>, vector<8x32xf32> -> vector<8x32xf32>
    %101 = arith.addf %82, %100 : vector<8x32xf32>
    %102 = vector.extract_strided_slice %11 {offsets = [8, 0], sizes = [8, 32], strides = [1, 1]} : vector<16x32xf32> to vector<8x32xf32>
    %103 = vector.extract_strided_slice %15 {offsets = [8, 0], sizes = [8, 32], strides = [1, 1]} : vector<16x32xf32> to vector<8x32xf32>
    %104 = vector.extract_strided_slice %19 {offsets = [8, 0], sizes = [8, 32], strides = [1, 1]} : vector<16x32xf32> to vector<8x32xf32>
    %105 = vector.extract_strided_slice %1 {offsets = [1, 0], sizes = [1, 8], strides = [1, 1]} : vector<2x8xf32> to vector<1x8xf32>
    %cst_30 = arith.constant 0.000000e+00 : f32
    %106 = vector.broadcast %cst_30 : f32 to vector<8x32xf32>
    %107 = vector.extract_strided_slice %102 {offsets = [0, 0], sizes = [8, 8], strides = [1, 1]} : vector<8x32xf32> to vector<8x8xf32>
    %108 = vector.extract_strided_slice %103 {offsets = [0, 0], sizes = [8, 8], strides = [1, 1]} : vector<8x32xf32> to vector<8x8xf32>
    %cst_31 = arith.constant dense<0.000000e+00> : vector<8x8xf32>
    %109 = tpu.matmul %107, %108, %cst_31 {dimension_numbers = #tpu.dot_dimension_numbers<[1], [1], [0], [0], [0, 0, 1, 0], [], []>} : vector<8x8xf32>, vector<8x8xf32>, vector<8x8xf32> -> vector<8x8xf32>
    %110 = vector.broadcast %105 : vector<1x8xf32> to vector<8x8xf32>
    %111 = arith.addf %109, %110 : vector<8x8xf32>
    %cst_32 = arith.constant dense<0xFF800000> : vector<8xf32>
    %112 = vector.multi_reduction <maximumf>, %111, %cst_32 [1] : vector<8x8xf32> to vector<8xf32>
    %113 = vector.shape_cast %112 : vector<8xf32> to vector<8x1xf32>
    %114 = vector.broadcast %113 : vector<8x1xf32> to vector<8x8xf32>
    %115 = arith.subf %111, %114 : vector<8x8xf32>
    %116 = math.exp %115 : vector<8x8xf32>
    %cst_33 = arith.constant dense<0.000000e+00> : vector<8xf32>
    %117 = vector.multi_reduction <add>, %116, %cst_33 [1] : vector<8x8xf32> to vector<8xf32>
    %118 = vector.shape_cast %117 : vector<8xf32> to vector<8x1xf32>
    %119 = vector.broadcast %118 : vector<8x1xf32> to vector<8x8xf32>
    %120 = arith.divf %116, %119 : vector<8x8xf32>
    %121 = vector.extract_strided_slice %104 {offsets = [0, 0], sizes = [8, 8], strides = [1, 1]} : vector<8x32xf32> to vector<8x8xf32>
    %cst_34 = arith.constant dense<0.000000e+00> : vector<8x8xf32>
    %122 = tpu.matmul %120, %121, %cst_34 {dimension_numbers = #tpu.dot_dimension_numbers<[1], [0], [0], [1], [0, 0, 1, 1], [], []>} : vector<8x8xf32>, vector<8x8xf32>, vector<8x8xf32> -> vector<8x8xf32>
    %123 = vector.extract_strided_slice %20 {offsets = [0, 0], sizes = [8, 32], strides = [1, 1]} : vector<32x32xf32> to vector<8x32xf32>
    %cst_35 = arith.constant dense<0.000000e+00> : vector<8x32xf32>
    %124 = tpu.matmul %122, %123, %cst_35 {dimension_numbers = #tpu.dot_dimension_numbers<[1], [0], [0], [1], [0, 0, 1, 1], [], []>} : vector<8x8xf32>, vector<8x32xf32>, vector<8x32xf32> -> vector<8x32xf32>
    %125 = arith.addf %106, %124 : vector<8x32xf32>
    %126 = vector.extract_strided_slice %102 {offsets = [0, 8], sizes = [8, 8], strides = [1, 1]} : vector<8x32xf32> to vector<8x8xf32>
    %127 = vector.extract_strided_slice %103 {offsets = [0, 8], sizes = [8, 8], strides = [1, 1]} : vector<8x32xf32> to vector<8x8xf32>
    %cst_36 = arith.constant dense<0.000000e+00> : vector<8x8xf32>
    %128 = tpu.matmul %126, %127, %cst_36 {dimension_numbers = #tpu.dot_dimension_numbers<[1], [1], [0], [0], [0, 0, 1, 0], [], []>} : vector<8x8xf32>, vector<8x8xf32>, vector<8x8xf32> -> vector<8x8xf32>
    %129 = vector.broadcast %105 : vector<1x8xf32> to vector<8x8xf32>
    %130 = arith.addf %128, %129 : vector<8x8xf32>
    %cst_37 = arith.constant dense<0xFF800000> : vector<8xf32>
    %131 = vector.multi_reduction <maximumf>, %130, %cst_37 [1] : vector<8x8xf32> to vector<8xf32>
    %132 = vector.shape_cast %131 : vector<8xf32> to vector<8x1xf32>
    %133 = vector.broadcast %132 : vector<8x1xf32> to vector<8x8xf32>
    %134 = arith.subf %130, %133 : vector<8x8xf32>
    %135 = math.exp %134 : vector<8x8xf32>
    %cst_38 = arith.constant dense<0.000000e+00> : vector<8xf32>
    %136 = vector.multi_reduction <add>, %135, %cst_38 [1] : vector<8x8xf32> to vector<8xf32>
    %137 = vector.shape_cast %136 : vector<8xf32> to vector<8x1xf32>
    %138 = vector.broadcast %137 : vector<8x1xf32> to vector<8x8xf32>
    %139 = arith.divf %135, %138 : vector<8x8xf32>
    %140 = vector.extract_strided_slice %104 {offsets = [0, 8], sizes = [8, 8], strides = [1, 1]} : vector<8x32xf32> to vector<8x8xf32>
    %cst_39 = arith.constant dense<0.000000e+00> : vector<8x8xf32>
    %141 = tpu.matmul %139, %140, %cst_39 {dimension_numbers = #tpu.dot_dimension_numbers<[1], [0], [0], [1], [0, 0, 1, 1], [], []>} : vector<8x8xf32>, vector<8x8xf32>, vector<8x8xf32> -> vector<8x8xf32>
    %142 = vector.extract_strided_slice %20 {offsets = [8, 0], sizes = [8, 32], strides = [1, 1]} : vector<32x32xf32> to vector<8x32xf32>
    %cst_40 = arith.constant dense<0.000000e+00> : vector<8x32xf32>
    %143 = tpu.matmul %141, %142, %cst_40 {dimension_numbers = #tpu.dot_dimension_numbers<[1], [0], [0], [1], [0, 0, 1, 1], [], []>} : vector<8x8xf32>, vector<8x32xf32>, vector<8x32xf32> -> vector<8x32xf32>
    %144 = arith.addf %125, %143 : vector<8x32xf32>
    %145 = vector.extract_strided_slice %102 {offsets = [0, 16], sizes = [8, 8], strides = [1, 1]} : vector<8x32xf32> to vector<8x8xf32>
    %146 = vector.extract_strided_slice %103 {offsets = [0, 16], sizes = [8, 8], strides = [1, 1]} : vector<8x32xf32> to vector<8x8xf32>
    %cst_41 = arith.constant dense<0.000000e+00> : vector<8x8xf32>
    %147 = tpu.matmul %145, %146, %cst_41 {dimension_numbers = #tpu.dot_dimension_numbers<[1], [1], [0], [0], [0, 0, 1, 0], [], []>} : vector<8x8xf32>, vector<8x8xf32>, vector<8x8xf32> -> vector<8x8xf32>
    %148 = vector.broadcast %105 : vector<1x8xf32> to vector<8x8xf32>
    %149 = arith.addf %147, %148 : vector<8x8xf32>
    %cst_42 = arith.constant dense<0xFF800000> : vector<8xf32>
    %150 = vector.multi_reduction <maximumf>, %149, %cst_42 [1] : vector<8x8xf32> to vector<8xf32>
    %151 = vector.shape_cast %150 : vector<8xf32> to vector<8x1xf32>
    %152 = vector.broadcast %151 : vector<8x1xf32> to vector<8x8xf32>
    %153 = arith.subf %149, %152 : vector<8x8xf32>
    %154 = math.exp %153 : vector<8x8xf32>
    %cst_43 = arith.constant dense<0.000000e+00> : vector<8xf32>
    %155 = vector.multi_reduction <add>, %154, %cst_43 [1] : vector<8x8xf32> to vector<8xf32>
    %156 = vector.shape_cast %155 : vector<8xf32> to vector<8x1xf32>
    %157 = vector.broadcast %156 : vector<8x1xf32> to vector<8x8xf32>
    %158 = arith.divf %154, %157 : vector<8x8xf32>
    %159 = vector.extract_strided_slice %104 {offsets = [0, 16], sizes = [8, 8], strides = [1, 1]} : vector<8x32xf32> to vector<8x8xf32>
    %cst_44 = arith.constant dense<0.000000e+00> : vector<8x8xf32>
    %160 = tpu.matmul %158, %159, %cst_44 {dimension_numbers = #tpu.dot_dimension_numbers<[1], [0], [0], [1], [0, 0, 1, 1], [], []>} : vector<8x8xf32>, vector<8x8xf32>, vector<8x8xf32> -> vector<8x8xf32>
    %161 = vector.extract_strided_slice %20 {offsets = [16, 0], sizes = [8, 32], strides = [1, 1]} : vector<32x32xf32> to vector<8x32xf32>
    %cst_45 = arith.constant dense<0.000000e+00> : vector<8x32xf32>
    %162 = tpu.matmul %160, %161, %cst_45 {dimension_numbers = #tpu.dot_dimension_numbers<[1], [0], [0], [1], [0, 0, 1, 1], [], []>} : vector<8x8xf32>, vector<8x32xf32>, vector<8x32xf32> -> vector<8x32xf32>
    %163 = arith.addf %144, %162 : vector<8x32xf32>
    %164 = vector.extract_strided_slice %102 {offsets = [0, 24], sizes = [8, 8], strides = [1, 1]} : vector<8x32xf32> to vector<8x8xf32>
    %165 = vector.extract_strided_slice %103 {offsets = [0, 24], sizes = [8, 8], strides = [1, 1]} : vector<8x32xf32> to vector<8x8xf32>
    %cst_46 = arith.constant dense<0.000000e+00> : vector<8x8xf32>
    %166 = tpu.matmul %164, %165, %cst_46 {dimension_numbers = #tpu.dot_dimension_numbers<[1], [1], [0], [0], [0, 0, 1, 0], [], []>} : vector<8x8xf32>, vector<8x8xf32>, vector<8x8xf32> -> vector<8x8xf32>
    %167 = vector.broadcast %105 : vector<1x8xf32> to vector<8x8xf32>
    %168 = arith.addf %166, %167 : vector<8x8xf32>
    %cst_47 = arith.constant dense<0xFF800000> : vector<8xf32>
    %169 = vector.multi_reduction <maximumf>, %168, %cst_47 [1] : vector<8x8xf32> to vector<8xf32>
    %170 = vector.shape_cast %169 : vector<8xf32> to vector<8x1xf32>
    %171 = vector.broadcast %170 : vector<8x1xf32> to vector<8x8xf32>
    %172 = arith.subf %168, %171 : vector<8x8xf32>
    %173 = math.exp %172 : vector<8x8xf32>
    %cst_48 = arith.constant dense<0.000000e+00> : vector<8xf32>
    %174 = vector.multi_reduction <add>, %173, %cst_48 [1] : vector<8x8xf32> to vector<8xf32>
    %175 = vector.shape_cast %174 : vector<8xf32> to vector<8x1xf32>
    %176 = vector.broadcast %175 : vector<8x1xf32> to vector<8x8xf32>
    %177 = arith.divf %173, %176 : vector<8x8xf32>
    %178 = vector.extract_strided_slice %104 {offsets = [0, 24], sizes = [8, 8], strides = [1, 1]} : vector<8x32xf32> to vector<8x8xf32>
    %cst_49 = arith.constant dense<0.000000e+00> : vector<8x8xf32>
    %179 = tpu.matmul %177, %178, %cst_49 {dimension_numbers = #tpu.dot_dimension_numbers<[1], [0], [0], [1], [0, 0, 1, 1], [], []>} : vector<8x8xf32>, vector<8x8xf32>, vector<8x8xf32> -> vector<8x8xf32>
    %180 = vector.extract_strided_slice %20 {offsets = [24, 0], sizes = [8, 32], strides = [1, 1]} : vector<32x32xf32> to vector<8x32xf32>
    %cst_50 = arith.constant dense<0.000000e+00> : vector<8x32xf32>
    %181 = tpu.matmul %179, %180, %cst_50 {dimension_numbers = #tpu.dot_dimension_numbers<[1], [0], [0], [1], [0, 0, 1, 1], [], []>} : vector<8x8xf32>, vector<8x32xf32>, vector<8x32xf32> -> vector<8x32xf32>
    %182 = arith.addf %163, %181 : vector<8x32xf32>
    %183 = tpu.concatenate %101, %182 in 0 : vector<8x32xf32>, vector<8x32xf32> -> vector<16x32xf32>
    %184 = vector.extract_strided_slice %5 {offsets = [3, 0], sizes = [1, 32], strides = [1, 1]} : vector<8x32xf32> to vector<1x32xf32>
    %185 = vector.broadcast %184 : vector<1x32xf32> to vector<16x32xf32>
    %186 = arith.addf %183, %185 : vector<16x32xf32>
    %187 = arith.addf %0, %186 : vector<16x32xf32>
    %188 = vector.extract_strided_slice %5 {offsets = [4, 0], sizes = [1, 32], strides = [1, 1]} : vector<8x32xf32> to vector<1x32xf32>
    %189 = vector.extract_strided_slice %5 {offsets = [5, 0], sizes = [1, 32], strides = [1, 1]} : vector<8x32xf32> to vector<1x32xf32>
    %cst_51 = arith.constant dense<0.000000e+00> : vector<16xf32>
    %190 = vector.multi_reduction <add>, %187, %cst_51 [1] : vector<16x32xf32> to vector<16xf32>
    %191 = vector.shape_cast %190 : vector<16xf32> to vector<16x1xf32>
    %cst_52 = arith.constant 3.200000e+01 : f32
    %192 = vector.broadcast %cst_52 : f32 to vector<16x1xf32>
    %193 = arith.divf %191, %192 : vector<16x1xf32>
    %194 = vector.broadcast %193 : vector<16x1xf32> to vector<16x32xf32>
    %195 = arith.subf %187, %194 : vector<16x32xf32>
    %196 = arith.mulf %195, %195 : vector<16x32xf32>
    %cst_53 = arith.constant dense<0.000000e+00> : vector<16xf32>
    %197 = vector.multi_reduction <add>, %196, %cst_53 [1] : vector<16x32xf32> to vector<16xf32>
    %198 = vector.shape_cast %197 : vector<16xf32> to vector<16x1xf32>
    %cst_54 = arith.constant 3.200000e+01 : f32
    %199 = vector.broadcast %cst_54 : f32 to vector<16x1xf32>
    %200 = arith.divf %198, %199 : vector<16x1xf32>
    %201 = vector.broadcast %193 : vector<16x1xf32> to vector<16x32xf32>
    %202 = arith.subf %187, %201 : vector<16x32xf32>
    %cst_55 = arith.constant 9.99999974E-6 : f32
    %203 = vector.broadcast %cst_55 : f32 to vector<16x1xf32>
    %204 = arith.addf %200, %203 : vector<16x1xf32>
    %205 = math.rsqrt %204 : vector<16x1xf32>
    %206 = vector.broadcast %205 : vector<16x1xf32> to vector<16x32xf32>
    %207 = arith.mulf %202, %206 : vector<16x32xf32>
    %208 = vector.broadcast %188 : vector<1x32xf32> to vector<16x32xf32>
    %209 = arith.mulf %207, %208 : vector<16x32xf32>
    %210 = vector.broadcast %189 : vector<1x32xf32> to vector<16x32xf32>
    %211 = arith.addf %209, %210 : vector<16x32xf32>
    %c0_56 = arith.constant 0 : index
    %c0_57 = arith.constant 0 : index
    %c0_58 = arith.constant 0 : index
    %212 = vector.load %arg4[%c0_56, %c0_57, %c0_58] : memref<2x33x64xf32, #tpu.memory_space<vmem>>, vector<1x33x64xf32>
    %213 = vector.shape_cast %212 : vector<1x33x64xf32> to vector<33x64xf32>
    %214 = vector.extract_strided_slice %213 {offsets = [0, 0], sizes = [32, 64], strides = [1, 1]} : vector<33x64xf32> to vector<32x64xf32>
    %cst_59 = arith.constant dense<0.000000e+00> : vector<16x64xf32>
    %215 = tpu.matmul %211, %214, %cst_59 {dimension_numbers = #tpu.dot_dimension_numbers<[1], [0], [0], [1], [0, 0, 1, 1], [], []>} : vector<16x32xf32>, vector<32x64xf32>, vector<16x64xf32> -> vector<16x64xf32>
    %216 = vector.extract_strided_slice %213 {offsets = [32, 0], sizes = [1, 64], strides = [1, 1]} : vector<33x64xf32> to vector<1x64xf32>
    %217 = vector.broadcast %216 : vector<1x64xf32> to vector<16x64xf32>
    %218 = arith.addf %215, %217 : vector<16x64xf32>
    %cst_60 = arith.constant 0.000000e+00 : f32
    %219 = vector.broadcast %cst_60 : f32 to vector<16x64xf32>
    %220 = arith.maximumf %218, %219 : vector<16x64xf32>
    %c0_61 = arith.constant 0 : index
    %c0_62 = arith.constant 0 : index
    %c0_63 = arith.constant 0 : index
    %221 = vector.load %arg5[%c0_61, %c0_62, %c0_63] : memref<2x65x32xf32, #tpu.memory_space<vmem>>, vector<1x65x32xf32>
    %222 = vector.shape_cast %221 : vector<1x65x32xf32> to vector<65x32xf32>
    %223 = vector.extract_strided_slice %222 {offsets = [0, 0], sizes = [64, 32], strides = [1, 1]} : vector<65x32xf32> to vector<64x32xf32>
    %cst_64 = arith.constant dense<0.000000e+00> : vector<16x32xf32>
    %224 = tpu.matmul %220, %223, %cst_64 {dimension_numbers = #tpu.dot_dimension_numbers<[1], [0], [0], [1], [0, 0, 1, 1], [], []>} : vector<16x64xf32>, vector<64x32xf32>, vector<16x32xf32> -> vector<16x32xf32>
    %225 = vector.extract_strided_slice %222 {offsets = [64, 0], sizes = [1, 32], strides = [1, 1]} : vector<65x32xf32> to vector<1x32xf32>
    %226 = vector.broadcast %225 : vector<1x32xf32> to vector<16x32xf32>
    %227 = arith.addf %224, %226 : vector<16x32xf32>
    %228 = arith.addf %211, %227 : vector<16x32xf32>
    %229 = vector.extract_strided_slice %5 {offsets = [6, 0], sizes = [1, 32], strides = [1, 1]} : vector<8x32xf32> to vector<1x32xf32>
    %230 = vector.extract_strided_slice %5 {offsets = [7, 0], sizes = [1, 32], strides = [1, 1]} : vector<8x32xf32> to vector<1x32xf32>
    %cst_65 = arith.constant dense<0.000000e+00> : vector<16xf32>
    %231 = vector.multi_reduction <add>, %228, %cst_65 [1] : vector<16x32xf32> to vector<16xf32>
    %232 = vector.shape_cast %231 : vector<16xf32> to vector<16x1xf32>
    %cst_66 = arith.constant 3.200000e+01 : f32
    %233 = vector.broadcast %cst_66 : f32 to vector<16x1xf32>
    %234 = arith.divf %232, %233 : vector<16x1xf32>
    %235 = vector.broadcast %234 : vector<16x1xf32> to vector<16x32xf32>
    %236 = arith.subf %228, %235 : vector<16x32xf32>
    %237 = arith.mulf %236, %236 : vector<16x32xf32>
    %cst_67 = arith.constant dense<0.000000e+00> : vector<16xf32>
    %238 = vector.multi_reduction <add>, %237, %cst_67 [1] : vector<16x32xf32> to vector<16xf32>
    %239 = vector.shape_cast %238 : vector<16xf32> to vector<16x1xf32>
    %cst_68 = arith.constant 3.200000e+01 : f32
    %240 = vector.broadcast %cst_68 : f32 to vector<16x1xf32>
    %241 = arith.divf %239, %240 : vector<16x1xf32>
    %242 = vector.broadcast %234 : vector<16x1xf32> to vector<16x32xf32>
    %243 = arith.subf %228, %242 : vector<16x32xf32>
    %cst_69 = arith.constant 9.99999974E-6 : f32
    %244 = vector.broadcast %cst_69 : f32 to vector<16x1xf32>
    %245 = arith.addf %241, %244 : vector<16x1xf32>
    %246 = math.rsqrt %245 : vector<16x1xf32>
    %247 = vector.broadcast %246 : vector<16x1xf32> to vector<16x32xf32>
    %248 = arith.mulf %243, %247 : vector<16x32xf32>
    %249 = vector.broadcast %229 : vector<1x32xf32> to vector<16x32xf32>
    %250 = arith.mulf %248, %249 : vector<16x32xf32>
    %251 = vector.broadcast %230 : vector<1x32xf32> to vector<16x32xf32>
    %252 = arith.addf %250, %251 : vector<16x32xf32>
    %c1 = arith.constant 1 : index
    %c0_70 = arith.constant 0 : index
    %c0_71 = arith.constant 0 : index
    %253 = vector.load %arg2[%c1, %c0_70, %c0_71] : memref<2x32x128xf32, #tpu.memory_space<vmem>>, vector<1x32x128xf32>
    %254 = vector.shape_cast %253 : vector<1x32x128xf32> to vector<32x128xf32>
    %c1_72 = arith.constant 1 : index
    %c0_73 = arith.constant 0 : index
    %c0_74 = arith.constant 0 : index
    %255 = vector.load %arg3[%c1_72, %c0_73, %c0_74] : memref<2x8x32xf32, #tpu.memory_space<vmem>>, vector<1x8x32xf32>
    %256 = vector.shape_cast %255 : vector<1x8x32xf32> to vector<8x32xf32>
    %257 = vector.extract_strided_slice %254 {offsets = [0, 0], sizes = [32, 96], strides = [1, 1]} : vector<32x128xf32> to vector<32x96xf32>
    %cst_75 = arith.constant dense<0.000000e+00> : vector<16x96xf32>
    %258 = tpu.matmul %252, %257, %cst_75 {dimension_numbers = #tpu.dot_dimension_numbers<[1], [0], [0], [1], [0, 0, 1, 1], [], []>} : vector<16x32xf32>, vector<32x96xf32>, vector<16x96xf32> -> vector<16x96xf32>
    %259 = vector.extract_strided_slice %258 {offsets = [0, 0], sizes = [16, 32], strides = [1, 1]} : vector<16x96xf32> to vector<16x32xf32>
    %260 = vector.extract_strided_slice %256 {offsets = [0, 0], sizes = [1, 32], strides = [1, 1]} : vector<8x32xf32> to vector<1x32xf32>
    %261 = vector.broadcast %260 : vector<1x32xf32> to vector<16x32xf32>
    %262 = arith.addf %259, %261 : vector<16x32xf32>
    %263 = vector.extract_strided_slice %258 {offsets = [0, 32], sizes = [16, 32], strides = [1, 1]} : vector<16x96xf32> to vector<16x32xf32>
    %264 = vector.extract_strided_slice %256 {offsets = [1, 0], sizes = [1, 32], strides = [1, 1]} : vector<8x32xf32> to vector<1x32xf32>
    %265 = vector.broadcast %264 : vector<1x32xf32> to vector<16x32xf32>
    %266 = arith.addf %263, %265 : vector<16x32xf32>
    %267 = vector.extract_strided_slice %258 {offsets = [0, 64], sizes = [16, 32], strides = [1, 1]} : vector<16x96xf32> to vector<16x32xf32>
    %268 = vector.extract_strided_slice %256 {offsets = [2, 0], sizes = [1, 32], strides = [1, 1]} : vector<8x32xf32> to vector<1x32xf32>
    %269 = vector.broadcast %268 : vector<1x32xf32> to vector<16x32xf32>
    %270 = arith.addf %267, %269 : vector<16x32xf32>
    %271 = vector.extract_strided_slice %254 {offsets = [0, 96], sizes = [32, 32], strides = [1, 1]} : vector<32x128xf32> to vector<32x32xf32>
    %272 = vector.extract_strided_slice %262 {offsets = [0, 0], sizes = [8, 32], strides = [1, 1]} : vector<16x32xf32> to vector<8x32xf32>
    %273 = vector.extract_strided_slice %266 {offsets = [0, 0], sizes = [8, 32], strides = [1, 1]} : vector<16x32xf32> to vector<8x32xf32>
    %274 = vector.extract_strided_slice %270 {offsets = [0, 0], sizes = [8, 32], strides = [1, 1]} : vector<16x32xf32> to vector<8x32xf32>
    %275 = vector.extract_strided_slice %1 {offsets = [0, 0], sizes = [1, 8], strides = [1, 1]} : vector<2x8xf32> to vector<1x8xf32>
    %cst_76 = arith.constant 0.000000e+00 : f32
    %276 = vector.broadcast %cst_76 : f32 to vector<8x32xf32>
    %277 = vector.extract_strided_slice %272 {offsets = [0, 0], sizes = [8, 8], strides = [1, 1]} : vector<8x32xf32> to vector<8x8xf32>
    %278 = vector.extract_strided_slice %273 {offsets = [0, 0], sizes = [8, 8], strides = [1, 1]} : vector<8x32xf32> to vector<8x8xf32>
    %cst_77 = arith.constant dense<0.000000e+00> : vector<8x8xf32>
    %279 = tpu.matmul %277, %278, %cst_77 {dimension_numbers = #tpu.dot_dimension_numbers<[1], [1], [0], [0], [0, 0, 1, 0], [], []>} : vector<8x8xf32>, vector<8x8xf32>, vector<8x8xf32> -> vector<8x8xf32>
    %280 = vector.broadcast %275 : vector<1x8xf32> to vector<8x8xf32>
    %281 = arith.addf %279, %280 : vector<8x8xf32>
    %cst_78 = arith.constant dense<0xFF800000> : vector<8xf32>
    %282 = vector.multi_reduction <maximumf>, %281, %cst_78 [1] : vector<8x8xf32> to vector<8xf32>
    %283 = vector.shape_cast %282 : vector<8xf32> to vector<8x1xf32>
    %284 = vector.broadcast %283 : vector<8x1xf32> to vector<8x8xf32>
    %285 = arith.subf %281, %284 : vector<8x8xf32>
    %286 = math.exp %285 : vector<8x8xf32>
    %cst_79 = arith.constant dense<0.000000e+00> : vector<8xf32>
    %287 = vector.multi_reduction <add>, %286, %cst_79 [1] : vector<8x8xf32> to vector<8xf32>
    %288 = vector.shape_cast %287 : vector<8xf32> to vector<8x1xf32>
    %289 = vector.broadcast %288 : vector<8x1xf32> to vector<8x8xf32>
    %290 = arith.divf %286, %289 : vector<8x8xf32>
    %291 = vector.extract_strided_slice %274 {offsets = [0, 0], sizes = [8, 8], strides = [1, 1]} : vector<8x32xf32> to vector<8x8xf32>
    %cst_80 = arith.constant dense<0.000000e+00> : vector<8x8xf32>
    %292 = tpu.matmul %290, %291, %cst_80 {dimension_numbers = #tpu.dot_dimension_numbers<[1], [0], [0], [1], [0, 0, 1, 1], [], []>} : vector<8x8xf32>, vector<8x8xf32>, vector<8x8xf32> -> vector<8x8xf32>
    %293 = vector.extract_strided_slice %271 {offsets = [0, 0], sizes = [8, 32], strides = [1, 1]} : vector<32x32xf32> to vector<8x32xf32>
    %cst_81 = arith.constant dense<0.000000e+00> : vector<8x32xf32>
    %294 = tpu.matmul %292, %293, %cst_81 {dimension_numbers = #tpu.dot_dimension_numbers<[1], [0], [0], [1], [0, 0, 1, 1], [], []>} : vector<8x8xf32>, vector<8x32xf32>, vector<8x32xf32> -> vector<8x32xf32>
    %295 = arith.addf %276, %294 : vector<8x32xf32>
    %296 = vector.extract_strided_slice %272 {offsets = [0, 8], sizes = [8, 8], strides = [1, 1]} : vector<8x32xf32> to vector<8x8xf32>
    %297 = vector.extract_strided_slice %273 {offsets = [0, 8], sizes = [8, 8], strides = [1, 1]} : vector<8x32xf32> to vector<8x8xf32>
    %cst_82 = arith.constant dense<0.000000e+00> : vector<8x8xf32>
    %298 = tpu.matmul %296, %297, %cst_82 {dimension_numbers = #tpu.dot_dimension_numbers<[1], [1], [0], [0], [0, 0, 1, 0], [], []>} : vector<8x8xf32>, vector<8x8xf32>, vector<8x8xf32> -> vector<8x8xf32>
    %299 = vector.broadcast %275 : vector<1x8xf32> to vector<8x8xf32>
    %300 = arith.addf %298, %299 : vector<8x8xf32>
    %cst_83 = arith.constant dense<0xFF800000> : vector<8xf32>
    %301 = vector.multi_reduction <maximumf>, %300, %cst_83 [1] : vector<8x8xf32> to vector<8xf32>
    %302 = vector.shape_cast %301 : vector<8xf32> to vector<8x1xf32>
    %303 = vector.broadcast %302 : vector<8x1xf32> to vector<8x8xf32>
    %304 = arith.subf %300, %303 : vector<8x8xf32>
    %305 = math.exp %304 : vector<8x8xf32>
    %cst_84 = arith.constant dense<0.000000e+00> : vector<8xf32>
    %306 = vector.multi_reduction <add>, %305, %cst_84 [1] : vector<8x8xf32> to vector<8xf32>
    %307 = vector.shape_cast %306 : vector<8xf32> to vector<8x1xf32>
    %308 = vector.broadcast %307 : vector<8x1xf32> to vector<8x8xf32>
    %309 = arith.divf %305, %308 : vector<8x8xf32>
    %310 = vector.extract_strided_slice %274 {offsets = [0, 8], sizes = [8, 8], strides = [1, 1]} : vector<8x32xf32> to vector<8x8xf32>
    %cst_85 = arith.constant dense<0.000000e+00> : vector<8x8xf32>
    %311 = tpu.matmul %309, %310, %cst_85 {dimension_numbers = #tpu.dot_dimension_numbers<[1], [0], [0], [1], [0, 0, 1, 1], [], []>} : vector<8x8xf32>, vector<8x8xf32>, vector<8x8xf32> -> vector<8x8xf32>
    %312 = vector.extract_strided_slice %271 {offsets = [8, 0], sizes = [8, 32], strides = [1, 1]} : vector<32x32xf32> to vector<8x32xf32>
    %cst_86 = arith.constant dense<0.000000e+00> : vector<8x32xf32>
    %313 = tpu.matmul %311, %312, %cst_86 {dimension_numbers = #tpu.dot_dimension_numbers<[1], [0], [0], [1], [0, 0, 1, 1], [], []>} : vector<8x8xf32>, vector<8x32xf32>, vector<8x32xf32> -> vector<8x32xf32>
    %314 = arith.addf %295, %313 : vector<8x32xf32>
    %315 = vector.extract_strided_slice %272 {offsets = [0, 16], sizes = [8, 8], strides = [1, 1]} : vector<8x32xf32> to vector<8x8xf32>
    %316 = vector.extract_strided_slice %273 {offsets = [0, 16], sizes = [8, 8], strides = [1, 1]} : vector<8x32xf32> to vector<8x8xf32>
    %cst_87 = arith.constant dense<0.000000e+00> : vector<8x8xf32>
    %317 = tpu.matmul %315, %316, %cst_87 {dimension_numbers = #tpu.dot_dimension_numbers<[1], [1], [0], [0], [0, 0, 1, 0], [], []>} : vector<8x8xf32>, vector<8x8xf32>, vector<8x8xf32> -> vector<8x8xf32>
    %318 = vector.broadcast %275 : vector<1x8xf32> to vector<8x8xf32>
    %319 = arith.addf %317, %318 : vector<8x8xf32>
    %cst_88 = arith.constant dense<0xFF800000> : vector<8xf32>
    %320 = vector.multi_reduction <maximumf>, %319, %cst_88 [1] : vector<8x8xf32> to vector<8xf32>
    %321 = vector.shape_cast %320 : vector<8xf32> to vector<8x1xf32>
    %322 = vector.broadcast %321 : vector<8x1xf32> to vector<8x8xf32>
    %323 = arith.subf %319, %322 : vector<8x8xf32>
    %324 = math.exp %323 : vector<8x8xf32>
    %cst_89 = arith.constant dense<0.000000e+00> : vector<8xf32>
    %325 = vector.multi_reduction <add>, %324, %cst_89 [1] : vector<8x8xf32> to vector<8xf32>
    %326 = vector.shape_cast %325 : vector<8xf32> to vector<8x1xf32>
    %327 = vector.broadcast %326 : vector<8x1xf32> to vector<8x8xf32>
    %328 = arith.divf %324, %327 : vector<8x8xf32>
    %329 = vector.extract_strided_slice %274 {offsets = [0, 16], sizes = [8, 8], strides = [1, 1]} : vector<8x32xf32> to vector<8x8xf32>
    %cst_90 = arith.constant dense<0.000000e+00> : vector<8x8xf32>
    %330 = tpu.matmul %328, %329, %cst_90 {dimension_numbers = #tpu.dot_dimension_numbers<[1], [0], [0], [1], [0, 0, 1, 1], [], []>} : vector<8x8xf32>, vector<8x8xf32>, vector<8x8xf32> -> vector<8x8xf32>
    %331 = vector.extract_strided_slice %271 {offsets = [16, 0], sizes = [8, 32], strides = [1, 1]} : vector<32x32xf32> to vector<8x32xf32>
    %cst_91 = arith.constant dense<0.000000e+00> : vector<8x32xf32>
    %332 = tpu.matmul %330, %331, %cst_91 {dimension_numbers = #tpu.dot_dimension_numbers<[1], [0], [0], [1], [0, 0, 1, 1], [], []>} : vector<8x8xf32>, vector<8x32xf32>, vector<8x32xf32> -> vector<8x32xf32>
    %333 = arith.addf %314, %332 : vector<8x32xf32>
    %334 = vector.extract_strided_slice %272 {offsets = [0, 24], sizes = [8, 8], strides = [1, 1]} : vector<8x32xf32> to vector<8x8xf32>
    %335 = vector.extract_strided_slice %273 {offsets = [0, 24], sizes = [8, 8], strides = [1, 1]} : vector<8x32xf32> to vector<8x8xf32>
    %cst_92 = arith.constant dense<0.000000e+00> : vector<8x8xf32>
    %336 = tpu.matmul %334, %335, %cst_92 {dimension_numbers = #tpu.dot_dimension_numbers<[1], [1], [0], [0], [0, 0, 1, 0], [], []>} : vector<8x8xf32>, vector<8x8xf32>, vector<8x8xf32> -> vector<8x8xf32>
    %337 = vector.broadcast %275 : vector<1x8xf32> to vector<8x8xf32>
    %338 = arith.addf %336, %337 : vector<8x8xf32>
    %cst_93 = arith.constant dense<0xFF800000> : vector<8xf32>
    %339 = vector.multi_reduction <maximumf>, %338, %cst_93 [1] : vector<8x8xf32> to vector<8xf32>
    %340 = vector.shape_cast %339 : vector<8xf32> to vector<8x1xf32>
    %341 = vector.broadcast %340 : vector<8x1xf32> to vector<8x8xf32>
    %342 = arith.subf %338, %341 : vector<8x8xf32>
    %343 = math.exp %342 : vector<8x8xf32>
    %cst_94 = arith.constant dense<0.000000e+00> : vector<8xf32>
    %344 = vector.multi_reduction <add>, %343, %cst_94 [1] : vector<8x8xf32> to vector<8xf32>
    %345 = vector.shape_cast %344 : vector<8xf32> to vector<8x1xf32>
    %346 = vector.broadcast %345 : vector<8x1xf32> to vector<8x8xf32>
    %347 = arith.divf %343, %346 : vector<8x8xf32>
    %348 = vector.extract_strided_slice %274 {offsets = [0, 24], sizes = [8, 8], strides = [1, 1]} : vector<8x32xf32> to vector<8x8xf32>
    %cst_95 = arith.constant dense<0.000000e+00> : vector<8x8xf32>
    %349 = tpu.matmul %347, %348, %cst_95 {dimension_numbers = #tpu.dot_dimension_numbers<[1], [0], [0], [1], [0, 0, 1, 1], [], []>} : vector<8x8xf32>, vector<8x8xf32>, vector<8x8xf32> -> vector<8x8xf32>
    %350 = vector.extract_strided_slice %271 {offsets = [24, 0], sizes = [8, 32], strides = [1, 1]} : vector<32x32xf32> to vector<8x32xf32>
    %cst_96 = arith.constant dense<0.000000e+00> : vector<8x32xf32>
    %351 = tpu.matmul %349, %350, %cst_96 {dimension_numbers = #tpu.dot_dimension_numbers<[1], [0], [0], [1], [0, 0, 1, 1], [], []>} : vector<8x8xf32>, vector<8x32xf32>, vector<8x32xf32> -> vector<8x32xf32>
    %352 = arith.addf %333, %351 : vector<8x32xf32>
    %353 = vector.extract_strided_slice %262 {offsets = [8, 0], sizes = [8, 32], strides = [1, 1]} : vector<16x32xf32> to vector<8x32xf32>
    %354 = vector.extract_strided_slice %266 {offsets = [8, 0], sizes = [8, 32], strides = [1, 1]} : vector<16x32xf32> to vector<8x32xf32>
    %355 = vector.extract_strided_slice %270 {offsets = [8, 0], sizes = [8, 32], strides = [1, 1]} : vector<16x32xf32> to vector<8x32xf32>
    %356 = vector.extract_strided_slice %1 {offsets = [1, 0], sizes = [1, 8], strides = [1, 1]} : vector<2x8xf32> to vector<1x8xf32>
    %cst_97 = arith.constant 0.000000e+00 : f32
    %357 = vector.broadcast %cst_97 : f32 to vector<8x32xf32>
    %358 = vector.extract_strided_slice %353 {offsets = [0, 0], sizes = [8, 8], strides = [1, 1]} : vector<8x32xf32> to vector<8x8xf32>
    %359 = vector.extract_strided_slice %354 {offsets = [0, 0], sizes = [8, 8], strides = [1, 1]} : vector<8x32xf32> to vector<8x8xf32>
    %cst_98 = arith.constant dense<0.000000e+00> : vector<8x8xf32>
    %360 = tpu.matmul %358, %359, %cst_98 {dimension_numbers = #tpu.dot_dimension_numbers<[1], [1], [0], [0], [0, 0, 1, 0], [], []>} : vector<8x8xf32>, vector<8x8xf32>, vector<8x8xf32> -> vector<8x8xf32>
    %361 = vector.broadcast %356 : vector<1x8xf32> to vector<8x8xf32>
    %362 = arith.addf %360, %361 : vector<8x8xf32>
    %cst_99 = arith.constant dense<0xFF800000> : vector<8xf32>
    %363 = vector.multi_reduction <maximumf>, %362, %cst_99 [1] : vector<8x8xf32> to vector<8xf32>
    %364 = vector.shape_cast %363 : vector<8xf32> to vector<8x1xf32>
    %365 = vector.broadcast %364 : vector<8x1xf32> to vector<8x8xf32>
    %366 = arith.subf %362, %365 : vector<8x8xf32>
    %367 = math.exp %366 : vector<8x8xf32>
    %cst_100 = arith.constant dense<0.000000e+00> : vector<8xf32>
    %368 = vector.multi_reduction <add>, %367, %cst_100 [1] : vector<8x8xf32> to vector<8xf32>
    %369 = vector.shape_cast %368 : vector<8xf32> to vector<8x1xf32>
    %370 = vector.broadcast %369 : vector<8x1xf32> to vector<8x8xf32>
    %371 = arith.divf %367, %370 : vector<8x8xf32>
    %372 = vector.extract_strided_slice %355 {offsets = [0, 0], sizes = [8, 8], strides = [1, 1]} : vector<8x32xf32> to vector<8x8xf32>
    %cst_101 = arith.constant dense<0.000000e+00> : vector<8x8xf32>
    %373 = tpu.matmul %371, %372, %cst_101 {dimension_numbers = #tpu.dot_dimension_numbers<[1], [0], [0], [1], [0, 0, 1, 1], [], []>} : vector<8x8xf32>, vector<8x8xf32>, vector<8x8xf32> -> vector<8x8xf32>
    %374 = vector.extract_strided_slice %271 {offsets = [0, 0], sizes = [8, 32], strides = [1, 1]} : vector<32x32xf32> to vector<8x32xf32>
    %cst_102 = arith.constant dense<0.000000e+00> : vector<8x32xf32>
    %375 = tpu.matmul %373, %374, %cst_102 {dimension_numbers = #tpu.dot_dimension_numbers<[1], [0], [0], [1], [0, 0, 1, 1], [], []>} : vector<8x8xf32>, vector<8x32xf32>, vector<8x32xf32> -> vector<8x32xf32>
    %376 = arith.addf %357, %375 : vector<8x32xf32>
    %377 = vector.extract_strided_slice %353 {offsets = [0, 8], sizes = [8, 8], strides = [1, 1]} : vector<8x32xf32> to vector<8x8xf32>
    %378 = vector.extract_strided_slice %354 {offsets = [0, 8], sizes = [8, 8], strides = [1, 1]} : vector<8x32xf32> to vector<8x8xf32>
    %cst_103 = arith.constant dense<0.000000e+00> : vector<8x8xf32>
    %379 = tpu.matmul %377, %378, %cst_103 {dimension_numbers = #tpu.dot_dimension_numbers<[1], [1], [0], [0], [0, 0, 1, 0], [], []>} : vector<8x8xf32>, vector<8x8xf32>, vector<8x8xf32> -> vector<8x8xf32>
    %380 = vector.broadcast %356 : vector<1x8xf32> to vector<8x8xf32>
    %381 = arith.addf %379, %380 : vector<8x8xf32>
    %cst_104 = arith.constant dense<0xFF800000> : vector<8xf32>
    %382 = vector.multi_reduction <maximumf>, %381, %cst_104 [1] : vector<8x8xf32> to vector<8xf32>
    %383 = vector.shape_cast %382 : vector<8xf32> to vector<8x1xf32>
    %384 = vector.broadcast %383 : vector<8x1xf32> to vector<8x8xf32>
    %385 = arith.subf %381, %384 : vector<8x8xf32>
    %386 = math.exp %385 : vector<8x8xf32>
    %cst_105 = arith.constant dense<0.000000e+00> : vector<8xf32>
    %387 = vector.multi_reduction <add>, %386, %cst_105 [1] : vector<8x8xf32> to vector<8xf32>
    %388 = vector.shape_cast %387 : vector<8xf32> to vector<8x1xf32>
    %389 = vector.broadcast %388 : vector<8x1xf32> to vector<8x8xf32>
    %390 = arith.divf %386, %389 : vector<8x8xf32>
    %391 = vector.extract_strided_slice %355 {offsets = [0, 8], sizes = [8, 8], strides = [1, 1]} : vector<8x32xf32> to vector<8x8xf32>
    %cst_106 = arith.constant dense<0.000000e+00> : vector<8x8xf32>
    %392 = tpu.matmul %390, %391, %cst_106 {dimension_numbers = #tpu.dot_dimension_numbers<[1], [0], [0], [1], [0, 0, 1, 1], [], []>} : vector<8x8xf32>, vector<8x8xf32>, vector<8x8xf32> -> vector<8x8xf32>
    %393 = vector.extract_strided_slice %271 {offsets = [8, 0], sizes = [8, 32], strides = [1, 1]} : vector<32x32xf32> to vector<8x32xf32>
    %cst_107 = arith.constant dense<0.000000e+00> : vector<8x32xf32>
    %394 = tpu.matmul %392, %393, %cst_107 {dimension_numbers = #tpu.dot_dimension_numbers<[1], [0], [0], [1], [0, 0, 1, 1], [], []>} : vector<8x8xf32>, vector<8x32xf32>, vector<8x32xf32> -> vector<8x32xf32>
    %395 = arith.addf %376, %394 : vector<8x32xf32>
    %396 = vector.extract_strided_slice %353 {offsets = [0, 16], sizes = [8, 8], strides = [1, 1]} : vector<8x32xf32> to vector<8x8xf32>
    %397 = vector.extract_strided_slice %354 {offsets = [0, 16], sizes = [8, 8], strides = [1, 1]} : vector<8x32xf32> to vector<8x8xf32>
    %cst_108 = arith.constant dense<0.000000e+00> : vector<8x8xf32>
    %398 = tpu.matmul %396, %397, %cst_108 {dimension_numbers = #tpu.dot_dimension_numbers<[1], [1], [0], [0], [0, 0, 1, 0], [], []>} : vector<8x8xf32>, vector<8x8xf32>, vector<8x8xf32> -> vector<8x8xf32>
    %399 = vector.broadcast %356 : vector<1x8xf32> to vector<8x8xf32>
    %400 = arith.addf %398, %399 : vector<8x8xf32>
    %cst_109 = arith.constant dense<0xFF800000> : vector<8xf32>
    %401 = vector.multi_reduction <maximumf>, %400, %cst_109 [1] : vector<8x8xf32> to vector<8xf32>
    %402 = vector.shape_cast %401 : vector<8xf32> to vector<8x1xf32>
    %403 = vector.broadcast %402 : vector<8x1xf32> to vector<8x8xf32>
    %404 = arith.subf %400, %403 : vector<8x8xf32>
    %405 = math.exp %404 : vector<8x8xf32>
    %cst_110 = arith.constant dense<0.000000e+00> : vector<8xf32>
    %406 = vector.multi_reduction <add>, %405, %cst_110 [1] : vector<8x8xf32> to vector<8xf32>
    %407 = vector.shape_cast %406 : vector<8xf32> to vector<8x1xf32>
    %408 = vector.broadcast %407 : vector<8x1xf32> to vector<8x8xf32>
    %409 = arith.divf %405, %408 : vector<8x8xf32>
    %410 = vector.extract_strided_slice %355 {offsets = [0, 16], sizes = [8, 8], strides = [1, 1]} : vector<8x32xf32> to vector<8x8xf32>
    %cst_111 = arith.constant dense<0.000000e+00> : vector<8x8xf32>
    %411 = tpu.matmul %409, %410, %cst_111 {dimension_numbers = #tpu.dot_dimension_numbers<[1], [0], [0], [1], [0, 0, 1, 1], [], []>} : vector<8x8xf32>, vector<8x8xf32>, vector<8x8xf32> -> vector<8x8xf32>
    %412 = vector.extract_strided_slice %271 {offsets = [16, 0], sizes = [8, 32], strides = [1, 1]} : vector<32x32xf32> to vector<8x32xf32>
    %cst_112 = arith.constant dense<0.000000e+00> : vector<8x32xf32>
    %413 = tpu.matmul %411, %412, %cst_112 {dimension_numbers = #tpu.dot_dimension_numbers<[1], [0], [0], [1], [0, 0, 1, 1], [], []>} : vector<8x8xf32>, vector<8x32xf32>, vector<8x32xf32> -> vector<8x32xf32>
    %414 = arith.addf %395, %413 : vector<8x32xf32>
    %415 = vector.extract_strided_slice %353 {offsets = [0, 24], sizes = [8, 8], strides = [1, 1]} : vector<8x32xf32> to vector<8x8xf32>
    %416 = vector.extract_strided_slice %354 {offsets = [0, 24], sizes = [8, 8], strides = [1, 1]} : vector<8x32xf32> to vector<8x8xf32>
    %cst_113 = arith.constant dense<0.000000e+00> : vector<8x8xf32>
    %417 = tpu.matmul %415, %416, %cst_113 {dimension_numbers = #tpu.dot_dimension_numbers<[1], [1], [0], [0], [0, 0, 1, 0], [], []>} : vector<8x8xf32>, vector<8x8xf32>, vector<8x8xf32> -> vector<8x8xf32>
    %418 = vector.broadcast %356 : vector<1x8xf32> to vector<8x8xf32>
    %419 = arith.addf %417, %418 : vector<8x8xf32>
    %cst_114 = arith.constant dense<0xFF800000> : vector<8xf32>
    %420 = vector.multi_reduction <maximumf>, %419, %cst_114 [1] : vector<8x8xf32> to vector<8xf32>
    %421 = vector.shape_cast %420 : vector<8xf32> to vector<8x1xf32>
    %422 = vector.broadcast %421 : vector<8x1xf32> to vector<8x8xf32>
    %423 = arith.subf %419, %422 : vector<8x8xf32>
    %424 = math.exp %423 : vector<8x8xf32>
    %cst_115 = arith.constant dense<0.000000e+00> : vector<8xf32>
    %425 = vector.multi_reduction <add>, %424, %cst_115 [1] : vector<8x8xf32> to vector<8xf32>
    %426 = vector.shape_cast %425 : vector<8xf32> to vector<8x1xf32>
    %427 = vector.broadcast %426 : vector<8x1xf32> to vector<8x8xf32>
    %428 = arith.divf %424, %427 : vector<8x8xf32>
    %429 = vector.extract_strided_slice %355 {offsets = [0, 24], sizes = [8, 8], strides = [1, 1]} : vector<8x32xf32> to vector<8x8xf32>
    %cst_116 = arith.constant dense<0.000000e+00> : vector<8x8xf32>
    %430 = tpu.matmul %428, %429, %cst_116 {dimension_numbers = #tpu.dot_dimension_numbers<[1], [0], [0], [1], [0, 0, 1, 1], [], []>} : vector<8x8xf32>, vector<8x8xf32>, vector<8x8xf32> -> vector<8x8xf32>
    %431 = vector.extract_strided_slice %271 {offsets = [24, 0], sizes = [8, 32], strides = [1, 1]} : vector<32x32xf32> to vector<8x32xf32>
    %cst_117 = arith.constant dense<0.000000e+00> : vector<8x32xf32>
    %432 = tpu.matmul %430, %431, %cst_117 {dimension_numbers = #tpu.dot_dimension_numbers<[1], [0], [0], [1], [0, 0, 1, 1], [], []>} : vector<8x8xf32>, vector<8x32xf32>, vector<8x32xf32> -> vector<8x32xf32>
    %433 = arith.addf %414, %432 : vector<8x32xf32>
    %434 = tpu.concatenate %352, %433 in 0 : vector<8x32xf32>, vector<8x32xf32> -> vector<16x32xf32>
    %435 = vector.extract_strided_slice %256 {offsets = [3, 0], sizes = [1, 32], strides = [1, 1]} : vector<8x32xf32> to vector<1x32xf32>
    %436 = vector.broadcast %435 : vector<1x32xf32> to vector<16x32xf32>
    %437 = arith.addf %434, %436 : vector<16x32xf32>
    %438 = arith.addf %252, %437 : vector<16x32xf32>
    %439 = vector.extract_strided_slice %256 {offsets = [4, 0], sizes = [1, 32], strides = [1, 1]} : vector<8x32xf32> to vector<1x32xf32>
    %440 = vector.extract_strided_slice %256 {offsets = [5, 0], sizes = [1, 32], strides = [1, 1]} : vector<8x32xf32> to vector<1x32xf32>
    %cst_118 = arith.constant dense<0.000000e+00> : vector<16xf32>
    %441 = vector.multi_reduction <add>, %438, %cst_118 [1] : vector<16x32xf32> to vector<16xf32>
    %442 = vector.shape_cast %441 : vector<16xf32> to vector<16x1xf32>
    %cst_119 = arith.constant 3.200000e+01 : f32
    %443 = vector.broadcast %cst_119 : f32 to vector<16x1xf32>
    %444 = arith.divf %442, %443 : vector<16x1xf32>
    %445 = vector.broadcast %444 : vector<16x1xf32> to vector<16x32xf32>
    %446 = arith.subf %438, %445 : vector<16x32xf32>
    %447 = arith.mulf %446, %446 : vector<16x32xf32>
    %cst_120 = arith.constant dense<0.000000e+00> : vector<16xf32>
    %448 = vector.multi_reduction <add>, %447, %cst_120 [1] : vector<16x32xf32> to vector<16xf32>
    %449 = vector.shape_cast %448 : vector<16xf32> to vector<16x1xf32>
    %cst_121 = arith.constant 3.200000e+01 : f32
    %450 = vector.broadcast %cst_121 : f32 to vector<16x1xf32>
    %451 = arith.divf %449, %450 : vector<16x1xf32>
    %452 = vector.broadcast %444 : vector<16x1xf32> to vector<16x32xf32>
    %453 = arith.subf %438, %452 : vector<16x32xf32>
    %cst_122 = arith.constant 9.99999974E-6 : f32
    %454 = vector.broadcast %cst_122 : f32 to vector<16x1xf32>
    %455 = arith.addf %451, %454 : vector<16x1xf32>
    %456 = math.rsqrt %455 : vector<16x1xf32>
    %457 = vector.broadcast %456 : vector<16x1xf32> to vector<16x32xf32>
    %458 = arith.mulf %453, %457 : vector<16x32xf32>
    %459 = vector.broadcast %439 : vector<1x32xf32> to vector<16x32xf32>
    %460 = arith.mulf %458, %459 : vector<16x32xf32>
    %461 = vector.broadcast %440 : vector<1x32xf32> to vector<16x32xf32>
    %462 = arith.addf %460, %461 : vector<16x32xf32>
    %c1_123 = arith.constant 1 : index
    %c0_124 = arith.constant 0 : index
    %c0_125 = arith.constant 0 : index
    %463 = vector.load %arg4[%c1_123, %c0_124, %c0_125] : memref<2x33x64xf32, #tpu.memory_space<vmem>>, vector<1x33x64xf32>
    %464 = vector.shape_cast %463 : vector<1x33x64xf32> to vector<33x64xf32>
    %465 = vector.extract_strided_slice %464 {offsets = [0, 0], sizes = [32, 64], strides = [1, 1]} : vector<33x64xf32> to vector<32x64xf32>
    %cst_126 = arith.constant dense<0.000000e+00> : vector<16x64xf32>
    %466 = tpu.matmul %462, %465, %cst_126 {dimension_numbers = #tpu.dot_dimension_numbers<[1], [0], [0], [1], [0, 0, 1, 1], [], []>} : vector<16x32xf32>, vector<32x64xf32>, vector<16x64xf32> -> vector<16x64xf32>
    %467 = vector.extract_strided_slice %464 {offsets = [32, 0], sizes = [1, 64], strides = [1, 1]} : vector<33x64xf32> to vector<1x64xf32>
    %468 = vector.broadcast %467 : vector<1x64xf32> to vector<16x64xf32>
    %469 = arith.addf %466, %468 : vector<16x64xf32>
    %cst_127 = arith.constant 0.000000e+00 : f32
    %470 = vector.broadcast %cst_127 : f32 to vector<16x64xf32>
    %471 = arith.maximumf %469, %470 : vector<16x64xf32>
    %c1_128 = arith.constant 1 : index
    %c0_129 = arith.constant 0 : index
    %c0_130 = arith.constant 0 : index
    %472 = vector.load %arg5[%c1_128, %c0_129, %c0_130] : memref<2x65x32xf32, #tpu.memory_space<vmem>>, vector<1x65x32xf32>
    %473 = vector.shape_cast %472 : vector<1x65x32xf32> to vector<65x32xf32>
    %474 = vector.extract_strided_slice %473 {offsets = [0, 0], sizes = [64, 32], strides = [1, 1]} : vector<65x32xf32> to vector<64x32xf32>
    %cst_131 = arith.constant dense<0.000000e+00> : vector<16x32xf32>
    %475 = tpu.matmul %471, %474, %cst_131 {dimension_numbers = #tpu.dot_dimension_numbers<[1], [0], [0], [1], [0, 0, 1, 1], [], []>} : vector<16x64xf32>, vector<64x32xf32>, vector<16x32xf32> -> vector<16x32xf32>
    %476 = vector.extract_strided_slice %473 {offsets = [64, 0], sizes = [1, 32], strides = [1, 1]} : vector<65x32xf32> to vector<1x32xf32>
    %477 = vector.broadcast %476 : vector<1x32xf32> to vector<16x32xf32>
    %478 = arith.addf %475, %477 : vector<16x32xf32>
    %479 = arith.addf %462, %478 : vector<16x32xf32>
    %480 = vector.extract_strided_slice %256 {offsets = [6, 0], sizes = [1, 32], strides = [1, 1]} : vector<8x32xf32> to vector<1x32xf32>
    %481 = vector.extract_strided_slice %256 {offsets = [7, 0], sizes = [1, 32], strides = [1, 1]} : vector<8x32xf32> to vector<1x32xf32>
    %cst_132 = arith.constant dense<0.000000e+00> : vector<16xf32>
    %482 = vector.multi_reduction <add>, %479, %cst_132 [1] : vector<16x32xf32> to vector<16xf32>
    %483 = vector.shape_cast %482 : vector<16xf32> to vector<16x1xf32>
    %cst_133 = arith.constant 3.200000e+01 : f32
    %484 = vector.broadcast %cst_133 : f32 to vector<16x1xf32>
    %485 = arith.divf %483, %484 : vector<16x1xf32>
    %486 = vector.broadcast %485 : vector<16x1xf32> to vector<16x32xf32>
    %487 = arith.subf %479, %486 : vector<16x32xf32>
    %488 = arith.mulf %487, %487 : vector<16x32xf32>
    %cst_134 = arith.constant dense<0.000000e+00> : vector<16xf32>
    %489 = vector.multi_reduction <add>, %488, %cst_134 [1] : vector<16x32xf32> to vector<16xf32>
    %490 = vector.shape_cast %489 : vector<16xf32> to vector<16x1xf32>
    %cst_135 = arith.constant 3.200000e+01 : f32
    %491 = vector.broadcast %cst_135 : f32 to vector<16x1xf32>
    %492 = arith.divf %490, %491 : vector<16x1xf32>
    %493 = vector.broadcast %485 : vector<16x1xf32> to vector<16x32xf32>
    %494 = arith.subf %479, %493 : vector<16x32xf32>
    %cst_136 = arith.constant 9.99999974E-6 : f32
    %495 = vector.broadcast %cst_136 : f32 to vector<16x1xf32>
    %496 = arith.addf %492, %495 : vector<16x1xf32>
    %497 = math.rsqrt %496 : vector<16x1xf32>
    %498 = vector.broadcast %497 : vector<16x1xf32> to vector<16x32xf32>
    %499 = arith.mulf %494, %498 : vector<16x32xf32>
    %500 = vector.broadcast %480 : vector<1x32xf32> to vector<16x32xf32>
    %501 = arith.mulf %499, %500 : vector<16x32xf32>
    %502 = vector.broadcast %481 : vector<1x32xf32> to vector<16x32xf32>
    %503 = arith.addf %501, %502 : vector<16x32xf32>
    %c0_137 = arith.constant 0 : index
    %c0_138 = arith.constant 0 : index
    %504 = vector.load %arg8[%c0_137, %c0_138] : memref<16x32xf32, #tpu.memory_space<vmem>>, vector<16x32xf32>
    tpu.vector_store %arg8[%c0_137, %c0_138], %503 {strides = array<i32>} : memref<16x32xf32, #tpu.memory_space<vmem>>, vector<16x32xf32>,
    %c0_139 = arith.constant 0 : index
    %c0_140 = arith.constant 0 : index
    %505 = vector.load %arg6[%c0_139, %c0_140] : memref<33x64xf32, #tpu.memory_space<vmem>>, vector<33x64xf32>
    %506 = vector.extract_strided_slice %505 {offsets = [0, 0], sizes = [32, 64], strides = [1, 1]} : vector<33x64xf32> to vector<32x64xf32>
    %cst_141 = arith.constant dense<0.000000e+00> : vector<16x64xf32>
    %507 = tpu.matmul %503, %506, %cst_141 {dimension_numbers = #tpu.dot_dimension_numbers<[1], [0], [0], [1], [0, 0, 1, 1], [], []>} : vector<16x32xf32>, vector<32x64xf32>, vector<16x64xf32> -> vector<16x64xf32>
    %508 = vector.extract_strided_slice %505 {offsets = [32, 0], sizes = [1, 64], strides = [1, 1]} : vector<33x64xf32> to vector<1x64xf32>
    %509 = vector.broadcast %508 : vector<1x64xf32> to vector<16x64xf32>
    %510 = arith.addf %507, %509 : vector<16x64xf32>
    %c0_142 = arith.constant 0 : index
    %c0_143 = arith.constant 0 : index
    %511 = vector.load %arg7[%c0_142, %c0_143] : memref<33x5xf32, #tpu.memory_space<vmem>>, vector<33x5xf32>
    %512 = vector.extract_strided_slice %511 {offsets = [0, 0], sizes = [32, 5], strides = [1, 1]} : vector<33x5xf32> to vector<32x5xf32>
    %513 = vector.extract_strided_slice %511 {offsets = [32, 0], sizes = [1, 5], strides = [1, 1]} : vector<33x5xf32> to vector<1x5xf32>
    %514 = vector.extract_strided_slice %510 {offsets = [0, 0], sizes = [8, 32], strides = [1, 1]} : vector<16x64xf32> to vector<8x32xf32>
    %515 = vector.extract_strided_slice %510 {offsets = [0, 32], sizes = [8, 32], strides = [1, 1]} : vector<16x64xf32> to vector<8x32xf32>
    %516 = vector.extract_strided_slice %515 {offsets = [0, 0], sizes = [1, 32], strides = [1, 1]} : vector<8x32xf32> to vector<1x32xf32>
    %517 = vector.broadcast %516 : vector<1x32xf32> to vector<8x32xf32>
    %518 = arith.addf %514, %517 : vector<8x32xf32>
    %cst_144 = arith.constant 0.000000e+00 : f32
    %519 = vector.broadcast %cst_144 : f32 to vector<8x32xf32>
    %520 = arith.maximumf %518, %519 : vector<8x32xf32>
    %cst_145 = arith.constant dense<0.000000e+00> : vector<8x5xf32>
    %521 = tpu.matmul %520, %512, %cst_145 {dimension_numbers = #tpu.dot_dimension_numbers<[1], [0], [0], [1], [0, 0, 1, 1], [], []>} : vector<8x32xf32>, vector<32x5xf32>, vector<8x5xf32> -> vector<8x5xf32>
    %522 = vector.broadcast %513 : vector<1x5xf32> to vector<8x5xf32>
    %523 = arith.addf %521, %522 : vector<8x5xf32>
    %524 = vector.extract_strided_slice %515 {offsets = [1, 0], sizes = [1, 32], strides = [1, 1]} : vector<8x32xf32> to vector<1x32xf32>
    %525 = vector.broadcast %524 : vector<1x32xf32> to vector<8x32xf32>
    %526 = arith.addf %514, %525 : vector<8x32xf32>
    %cst_146 = arith.constant 0.000000e+00 : f32
    %527 = vector.broadcast %cst_146 : f32 to vector<8x32xf32>
    %528 = arith.maximumf %526, %527 : vector<8x32xf32>
    %cst_147 = arith.constant dense<0.000000e+00> : vector<8x5xf32>
    %529 = tpu.matmul %528, %512, %cst_147 {dimension_numbers = #tpu.dot_dimension_numbers<[1], [0], [0], [1], [0, 0, 1, 1], [], []>} : vector<8x32xf32>, vector<32x5xf32>, vector<8x5xf32> -> vector<8x5xf32>
    %530 = vector.broadcast %513 : vector<1x5xf32> to vector<8x5xf32>
    %531 = arith.addf %529, %530 : vector<8x5xf32>
    %532 = vector.extract_strided_slice %515 {offsets = [2, 0], sizes = [1, 32], strides = [1, 1]} : vector<8x32xf32> to vector<1x32xf32>
    %533 = vector.broadcast %532 : vector<1x32xf32> to vector<8x32xf32>
    %534 = arith.addf %514, %533 : vector<8x32xf32>
    %cst_148 = arith.constant 0.000000e+00 : f32
    %535 = vector.broadcast %cst_148 : f32 to vector<8x32xf32>
    %536 = arith.maximumf %534, %535 : vector<8x32xf32>
    %cst_149 = arith.constant dense<0.000000e+00> : vector<8x5xf32>
    %537 = tpu.matmul %536, %512, %cst_149 {dimension_numbers = #tpu.dot_dimension_numbers<[1], [0], [0], [1], [0, 0, 1, 1], [], []>} : vector<8x32xf32>, vector<32x5xf32>, vector<8x5xf32> -> vector<8x5xf32>
    %538 = vector.broadcast %513 : vector<1x5xf32> to vector<8x5xf32>
    %539 = arith.addf %537, %538 : vector<8x5xf32>
    %540 = vector.extract_strided_slice %515 {offsets = [3, 0], sizes = [1, 32], strides = [1, 1]} : vector<8x32xf32> to vector<1x32xf32>
    %541 = vector.broadcast %540 : vector<1x32xf32> to vector<8x32xf32>
    %542 = arith.addf %514, %541 : vector<8x32xf32>
    %cst_150 = arith.constant 0.000000e+00 : f32
    %543 = vector.broadcast %cst_150 : f32 to vector<8x32xf32>
    %544 = arith.maximumf %542, %543 : vector<8x32xf32>
    %cst_151 = arith.constant dense<0.000000e+00> : vector<8x5xf32>
    %545 = tpu.matmul %544, %512, %cst_151 {dimension_numbers = #tpu.dot_dimension_numbers<[1], [0], [0], [1], [0, 0, 1, 1], [], []>} : vector<8x32xf32>, vector<32x5xf32>, vector<8x5xf32> -> vector<8x5xf32>
    %546 = vector.broadcast %513 : vector<1x5xf32> to vector<8x5xf32>
    %547 = arith.addf %545, %546 : vector<8x5xf32>
    %548 = vector.extract_strided_slice %515 {offsets = [4, 0], sizes = [1, 32], strides = [1, 1]} : vector<8x32xf32> to vector<1x32xf32>
    %549 = vector.broadcast %548 : vector<1x32xf32> to vector<8x32xf32>
    %550 = arith.addf %514, %549 : vector<8x32xf32>
    %cst_152 = arith.constant 0.000000e+00 : f32
    %551 = vector.broadcast %cst_152 : f32 to vector<8x32xf32>
    %552 = arith.maximumf %550, %551 : vector<8x32xf32>
    %cst_153 = arith.constant dense<0.000000e+00> : vector<8x5xf32>
    %553 = tpu.matmul %552, %512, %cst_153 {dimension_numbers = #tpu.dot_dimension_numbers<[1], [0], [0], [1], [0, 0, 1, 1], [], []>} : vector<8x32xf32>, vector<32x5xf32>, vector<8x5xf32> -> vector<8x5xf32>
    %554 = vector.broadcast %513 : vector<1x5xf32> to vector<8x5xf32>
    %555 = arith.addf %553, %554 : vector<8x5xf32>
    %556 = vector.extract_strided_slice %515 {offsets = [5, 0], sizes = [1, 32], strides = [1, 1]} : vector<8x32xf32> to vector<1x32xf32>
    %557 = vector.broadcast %556 : vector<1x32xf32> to vector<8x32xf32>
    %558 = arith.addf %514, %557 : vector<8x32xf32>
    %cst_154 = arith.constant 0.000000e+00 : f32
    %559 = vector.broadcast %cst_154 : f32 to vector<8x32xf32>
    %560 = arith.maximumf %558, %559 : vector<8x32xf32>
    %cst_155 = arith.constant dense<0.000000e+00> : vector<8x5xf32>
    %561 = tpu.matmul %560, %512, %cst_155 {dimension_numbers = #tpu.dot_dimension_numbers<[1], [0], [0], [1], [0, 0, 1, 1], [], []>} : vector<8x32xf32>, vector<32x5xf32>, vector<8x5xf32> -> vector<8x5xf32>
    %562 = vector.broadcast %513 : vector<1x5xf32> to vector<8x5xf32>
    %563 = arith.addf %561, %562 : vector<8x5xf32>
    %564 = vector.extract_strided_slice %515 {offsets = [6, 0], sizes = [1, 32], strides = [1, 1]} : vector<8x32xf32> to vector<1x32xf32>
    %565 = vector.broadcast %564 : vector<1x32xf32> to vector<8x32xf32>
    %566 = arith.addf %514, %565 : vector<8x32xf32>
    %cst_156 = arith.constant 0.000000e+00 : f32
    %567 = vector.broadcast %cst_156 : f32 to vector<8x32xf32>
    %568 = arith.maximumf %566, %567 : vector<8x32xf32>
    %cst_157 = arith.constant dense<0.000000e+00> : vector<8x5xf32>
    %569 = tpu.matmul %568, %512, %cst_157 {dimension_numbers = #tpu.dot_dimension_numbers<[1], [0], [0], [1], [0, 0, 1, 1], [], []>} : vector<8x32xf32>, vector<32x5xf32>, vector<8x5xf32> -> vector<8x5xf32>
    %570 = vector.broadcast %513 : vector<1x5xf32> to vector<8x5xf32>
    %571 = arith.addf %569, %570 : vector<8x5xf32>
    %572 = vector.extract_strided_slice %515 {offsets = [7, 0], sizes = [1, 32], strides = [1, 1]} : vector<8x32xf32> to vector<1x32xf32>
    %573 = vector.broadcast %572 : vector<1x32xf32> to vector<8x32xf32>
    %574 = arith.addf %514, %573 : vector<8x32xf32>
    %cst_158 = arith.constant 0.000000e+00 : f32
    %575 = vector.broadcast %cst_158 : f32 to vector<8x32xf32>
    %576 = arith.maximumf %574, %575 : vector<8x32xf32>
    %cst_159 = arith.constant dense<0.000000e+00> : vector<8x5xf32>
    %577 = tpu.matmul %576, %512, %cst_159 {dimension_numbers = #tpu.dot_dimension_numbers<[1], [0], [0], [1], [0, 0, 1, 1], [], []>} : vector<8x32xf32>, vector<32x5xf32>, vector<8x5xf32> -> vector<8x5xf32>
    %578 = vector.broadcast %513 : vector<1x5xf32> to vector<8x5xf32>
    %579 = arith.addf %577, %578 : vector<8x5xf32>
    %580 = tpu.concatenate %523, %531, %539, %547, %555, %563, %571, %579 in 1 : vector<8x5xf32>, vector<8x5xf32>, vector<8x5xf32>, vector<8x5xf32>, vector<8x5xf32>, vector<8x5xf32>, vector<8x5xf32>, vector<8x5xf32> -> vector<8x40xf32>
    %c0_160 = arith.constant 0 : index
    %c0_161 = arith.constant 0 : index
    %c0_162 = arith.constant 0 : index
    %581 = vector.load %arg9[%c0_160, %c0_161, %c0_162] : memref<2x8x40xf32, #tpu.memory_space<vmem>>, vector<1x8x40xf32>
    %582 = vector.shape_cast %581 : vector<1x8x40xf32> to vector<8x40xf32>
    %583 = vector.shape_cast %580 : vector<8x40xf32> to vector<1x8x40xf32>
    tpu.vector_store %arg9[%c0_160, %c0_161, %c0_162], %583 {strides = array<i32>} : memref<2x8x40xf32, #tpu.memory_space<vmem>>, vector<1x8x40xf32>,
    %584 = vector.extract_strided_slice %510 {offsets = [8, 0], sizes = [8, 32], strides = [1, 1]} : vector<16x64xf32> to vector<8x32xf32>
    %585 = vector.extract_strided_slice %510 {offsets = [8, 32], sizes = [8, 32], strides = [1, 1]} : vector<16x64xf32> to vector<8x32xf32>
    %586 = vector.extract_strided_slice %585 {offsets = [0, 0], sizes = [1, 32], strides = [1, 1]} : vector<8x32xf32> to vector<1x32xf32>
    %587 = vector.broadcast %586 : vector<1x32xf32> to vector<8x32xf32>
    %588 = arith.addf %584, %587 : vector<8x32xf32>
    %cst_163 = arith.constant 0.000000e+00 : f32
    %589 = vector.broadcast %cst_163 : f32 to vector<8x32xf32>
    %590 = arith.maximumf %588, %589 : vector<8x32xf32>
    %cst_164 = arith.constant dense<0.000000e+00> : vector<8x5xf32>
    %591 = tpu.matmul %590, %512, %cst_164 {dimension_numbers = #tpu.dot_dimension_numbers<[1], [0], [0], [1], [0, 0, 1, 1], [], []>} : vector<8x32xf32>, vector<32x5xf32>, vector<8x5xf32> -> vector<8x5xf32>
    %592 = vector.broadcast %513 : vector<1x5xf32> to vector<8x5xf32>
    %593 = arith.addf %591, %592 : vector<8x5xf32>
    %594 = vector.extract_strided_slice %585 {offsets = [1, 0], sizes = [1, 32], strides = [1, 1]} : vector<8x32xf32> to vector<1x32xf32>
    %595 = vector.broadcast %594 : vector<1x32xf32> to vector<8x32xf32>
    %596 = arith.addf %584, %595 : vector<8x32xf32>
    %cst_165 = arith.constant 0.000000e+00 : f32
    %597 = vector.broadcast %cst_165 : f32 to vector<8x32xf32>
    %598 = arith.maximumf %596, %597 : vector<8x32xf32>
    %cst_166 = arith.constant dense<0.000000e+00> : vector<8x5xf32>
    %599 = tpu.matmul %598, %512, %cst_166 {dimension_numbers = #tpu.dot_dimension_numbers<[1], [0], [0], [1], [0, 0, 1, 1], [], []>} : vector<8x32xf32>, vector<32x5xf32>, vector<8x5xf32> -> vector<8x5xf32>
    %600 = vector.broadcast %513 : vector<1x5xf32> to vector<8x5xf32>
    %601 = arith.addf %599, %600 : vector<8x5xf32>
    %602 = vector.extract_strided_slice %585 {offsets = [2, 0], sizes = [1, 32], strides = [1, 1]} : vector<8x32xf32> to vector<1x32xf32>
    %603 = vector.broadcast %602 : vector<1x32xf32> to vector<8x32xf32>
    %604 = arith.addf %584, %603 : vector<8x32xf32>
    %cst_167 = arith.constant 0.000000e+00 : f32
    %605 = vector.broadcast %cst_167 : f32 to vector<8x32xf32>
    %606 = arith.maximumf %604, %605 : vector<8x32xf32>
    %cst_168 = arith.constant dense<0.000000e+00> : vector<8x5xf32>
    %607 = tpu.matmul %606, %512, %cst_168 {dimension_numbers = #tpu.dot_dimension_numbers<[1], [0], [0], [1], [0, 0, 1, 1], [], []>} : vector<8x32xf32>, vector<32x5xf32>, vector<8x5xf32> -> vector<8x5xf32>
    %608 = vector.broadcast %513 : vector<1x5xf32> to vector<8x5xf32>
    %609 = arith.addf %607, %608 : vector<8x5xf32>
    %610 = vector.extract_strided_slice %585 {offsets = [3, 0], sizes = [1, 32], strides = [1, 1]} : vector<8x32xf32> to vector<1x32xf32>
    %611 = vector.broadcast %610 : vector<1x32xf32> to vector<8x32xf32>
    %612 = arith.addf %584, %611 : vector<8x32xf32>
    %cst_169 = arith.constant 0.000000e+00 : f32
    %613 = vector.broadcast %cst_169 : f32 to vector<8x32xf32>
    %614 = arith.maximumf %612, %613 : vector<8x32xf32>
    %cst_170 = arith.constant dense<0.000000e+00> : vector<8x5xf32>
    %615 = tpu.matmul %614, %512, %cst_170 {dimension_numbers = #tpu.dot_dimension_numbers<[1], [0], [0], [1], [0, 0, 1, 1], [], []>} : vector<8x32xf32>, vector<32x5xf32>, vector<8x5xf32> -> vector<8x5xf32>
    %616 = vector.broadcast %513 : vector<1x5xf32> to vector<8x5xf32>
    %617 = arith.addf %615, %616 : vector<8x5xf32>
    %618 = vector.extract_strided_slice %585 {offsets = [4, 0], sizes = [1, 32], strides = [1, 1]} : vector<8x32xf32> to vector<1x32xf32>
    %619 = vector.broadcast %618 : vector<1x32xf32> to vector<8x32xf32>
    %620 = arith.addf %584, %619 : vector<8x32xf32>
    %cst_171 = arith.constant 0.000000e+00 : f32
    %621 = vector.broadcast %cst_171 : f32 to vector<8x32xf32>
    %622 = arith.maximumf %620, %621 : vector<8x32xf32>
    %cst_172 = arith.constant dense<0.000000e+00> : vector<8x5xf32>
    %623 = tpu.matmul %622, %512, %cst_172 {dimension_numbers = #tpu.dot_dimension_numbers<[1], [0], [0], [1], [0, 0, 1, 1], [], []>} : vector<8x32xf32>, vector<32x5xf32>, vector<8x5xf32> -> vector<8x5xf32>
    %624 = vector.broadcast %513 : vector<1x5xf32> to vector<8x5xf32>
    %625 = arith.addf %623, %624 : vector<8x5xf32>
    %626 = vector.extract_strided_slice %585 {offsets = [5, 0], sizes = [1, 32], strides = [1, 1]} : vector<8x32xf32> to vector<1x32xf32>
    %627 = vector.broadcast %626 : vector<1x32xf32> to vector<8x32xf32>
    %628 = arith.addf %584, %627 : vector<8x32xf32>
    %cst_173 = arith.constant 0.000000e+00 : f32
    %629 = vector.broadcast %cst_173 : f32 to vector<8x32xf32>
    %630 = arith.maximumf %628, %629 : vector<8x32xf32>
    %cst_174 = arith.constant dense<0.000000e+00> : vector<8x5xf32>
    %631 = tpu.matmul %630, %512, %cst_174 {dimension_numbers = #tpu.dot_dimension_numbers<[1], [0], [0], [1], [0, 0, 1, 1], [], []>} : vector<8x32xf32>, vector<32x5xf32>, vector<8x5xf32> -> vector<8x5xf32>
    %632 = vector.broadcast %513 : vector<1x5xf32> to vector<8x5xf32>
    %633 = arith.addf %631, %632 : vector<8x5xf32>
    %634 = vector.extract_strided_slice %585 {offsets = [6, 0], sizes = [1, 32], strides = [1, 1]} : vector<8x32xf32> to vector<1x32xf32>
    %635 = vector.broadcast %634 : vector<1x32xf32> to vector<8x32xf32>
    %636 = arith.addf %584, %635 : vector<8x32xf32>
    %cst_175 = arith.constant 0.000000e+00 : f32
    %637 = vector.broadcast %cst_175 : f32 to vector<8x32xf32>
    %638 = arith.maximumf %636, %637 : vector<8x32xf32>
    %cst_176 = arith.constant dense<0.000000e+00> : vector<8x5xf32>
    %639 = tpu.matmul %638, %512, %cst_176 {dimension_numbers = #tpu.dot_dimension_numbers<[1], [0], [0], [1], [0, 0, 1, 1], [], []>} : vector<8x32xf32>, vector<32x5xf32>, vector<8x5xf32> -> vector<8x5xf32>
    %640 = vector.broadcast %513 : vector<1x5xf32> to vector<8x5xf32>
    %641 = arith.addf %639, %640 : vector<8x5xf32>
    %642 = vector.extract_strided_slice %585 {offsets = [7, 0], sizes = [1, 32], strides = [1, 1]} : vector<8x32xf32> to vector<1x32xf32>
    %643 = vector.broadcast %642 : vector<1x32xf32> to vector<8x32xf32>
    %644 = arith.addf %584, %643 : vector<8x32xf32>
    %cst_177 = arith.constant 0.000000e+00 : f32
    %645 = vector.broadcast %cst_177 : f32 to vector<8x32xf32>
    %646 = arith.maximumf %644, %645 : vector<8x32xf32>
    %cst_178 = arith.constant dense<0.000000e+00> : vector<8x5xf32>
    %647 = tpu.matmul %646, %512, %cst_178 {dimension_numbers = #tpu.dot_dimension_numbers<[1], [0], [0], [1], [0, 0, 1, 1], [], []>} : vector<8x32xf32>, vector<32x5xf32>, vector<8x5xf32> -> vector<8x5xf32>
    %648 = vector.broadcast %513 : vector<1x5xf32> to vector<8x5xf32>
    %649 = arith.addf %647, %648 : vector<8x5xf32>
    %650 = tpu.concatenate %593, %601, %609, %617, %625, %633, %641, %649 in 1 : vector<8x5xf32>, vector<8x5xf32>, vector<8x5xf32>, vector<8x5xf32>, vector<8x5xf32>, vector<8x5xf32>, vector<8x5xf32>, vector<8x5xf32> -> vector<8x40xf32>
    %c1_179 = arith.constant 1 : index
    %c0_180 = arith.constant 0 : index
    %c0_181 = arith.constant 0 : index
    %651 = vector.load %arg9[%c1_179, %c0_180, %c0_181] : memref<2x8x40xf32, #tpu.memory_space<vmem>>, vector<1x8x40xf32>
    %652 = vector.shape_cast %651 : vector<1x8x40xf32> to vector<8x40xf32>
    %653 = vector.shape_cast %650 : vector<8x40xf32> to vector<1x8x40xf32>
    tpu.vector_store %arg9[%c1_179, %c0_180, %c0_181], %653 {strides = array<i32>} : memref<2x8x40xf32, #tpu.memory_space<vmem>>, vector<1x8x40xf32>,
    return
  }
}

</mosaic_0001>

<bundles_post_ra>
// kernel: tpu_custom_call.1
= control target key start
LH: loop header
LB: loop body
LE: loop exit
PB: predicated region body
PF: predicated region fallthrough
CT: control target
= control target key end

     0   :  { %15 = vsyncpa [#allocation3], 0  ;;  %vm41_vm0 = vcmask 261120   ;;  %v123_v2 = vlaneseq  ;;  %s8385_s0 = inlined_call_operand.vmem [shape: f32[16,32], index: 0, kind: input, shape index: {}]   ;;  %s8386_s1 = inlined_call_operand.vmem [shape: f32[2,8], index: 1, kind: input, shape index: {}]   ;;  %s8387_s2 = inlined_call_operand.vmem [shape: f32[2,32,128], index: 2, kind: input, shape index: {}]   ;;  %s8388_s3 = inlined_call_operand.vmem [shape: f32[2,8,32], index: 3, kind: input, shape index: {}]   ;;  %s8389_s4 = inlined_call_operand.vmem [shape: f32[2,33,64], index: 4, kind: input, shape index: {}]   ;;  %s8390_s5 = inlined_call_operand.vmem [shape: f32[2,65,32], index: 5, kind: input, shape index: {}]   ;;  %s8391_s6 = inlined_call_operand.vmem [shape: f32[33,64], index: 6, kind: input, shape index: {}]   ;;  %s8392_s7 = inlined_call_operand.vmem [shape: f32[33,5], index: 7, kind: input, shape index: {}]   ;;  %s8393_s8 = inlined_call_operand.hbm [shape: f32[16,32], index: 8, kind: output, shape index: {0}]   ;;  %s8394_s9 = inlined_call_operand.hbm [shape: f32[2,8,40], index: 9, kind: output, shape index: {1}]  }
   0x1   :  { %v7295_v0 = vld [vmem:[%s8387_s2 + $0x18] sm:$0xff]  ;;  %v7300_v1 = vld [vmem:[%s8387_s2 + $0x10] sm:$0xff]  ;;  %v7306_v3 = vld [vmem:[%s8385_s0] sm:$0xff] }
   0x2   :  { %6559 = vmatprep.subr.mxu0 %v7295_v0  ;;  %v7312_v4 = vld [vmem:[%s8387_s2 + $0x8] sm:$0xff]  ;;  %6567 = vmatprep.mubr.msk.f32.mxu0 %vm41_vm0, %v7306_v3  ;;  %v7316_v5 = vshrl.u32 %v123_v2, 7 }
   0x3   :  { %6560 = vmatpush3.msra.mxu0 %v7295_v0 }
   0x4   :  { %16 = vsyncpa [#allocation5], 0  ;;  %6561 = vmatprep.subr.mxu0 %v7300_v1  ;;  %v7322_v6 = vld [vmem:[%s8388_s3] sm:$0xff]  ;;  %v7331_v8 = vsub.s32 1, %v7316_v5  ;;  %v7338_v9 = vld [vmem:[%s8385_s0 + $0x8] sm:$0xff]  ;;  %s7217_s23 = smov 32  }
   0x5   :  { %6562 = vmatpush3.msra.mxu0 %v7300_v1  ;;  %v7328_v7 = vld [vmem:[%s8387_s2] sm:$0xff]  ;;  %v7218_v11 = vmov 0.0   ;;  %vm7219_vm1 = vmmov 0   ;;  %v7356_v13 = vsub.s32 0, %v7316_v5  ;;  %s7220_s0 = smov 88   ;;  %s7221_s24 = smov 96  }
   0x6   :  { %6563 = vmatprep.subr.mxu0 %v7312_v4  ;;  %v132_v10 = vrot.slane %v7322_v6, %v7331_v8  ;;  %6570 = vmatprep.subr.mxu1 %v7218_v11  ;;  %s7222_s25 = smov 120   ;;  %vm156_vm2 = vcmask 64512   ;;  %v7390_v22 = vld [vmem:[%s8386_s1] sm:$0x3]  ;;  %v7401_v32 = vsub.s32 2, %v7316_v5  ;;  %s7223_s1 = smov 64  }
   0x7   :  { %6564 = vmatpush3.msra.mxu0 %v7312_v4  ;;  %6572 = vmatprep.mubr.msk.f32.mxu1 %vm7219_vm1, %v7218_v11  ;;  %v7365_v17 = vrot.slane %v7322_v6, %v7356_v13  ;;  %v7394_v23 = vrot.slane %v7390_v22, %v7356_v13  ;;  %s7224_s28 = smov 56   ;;  %s7225_s29 = smov 80   ;;  %vm2236_vm3 = vcmask 523264  }
   0x8   :  { %6565 = vmatprep.subr.mxu0 %v7328_v7  ;;  %134 = vrot.lane.b32.xlu0 %v132_v10, %s7217_s23  ;;  %v142_v33 = vrot.slane %v7322_v6, %v7401_v32  ;;  %s7226_s30 = smov 112   ;;  %s7227_s10 = smov 48  }
   0x9   :  { %6566 = vmatpush3.msra.mxu0 %v7328_v7  ;;  %s7228_s11 = smov 72   ;;  %s7229_s12 = smov 104  }
   0xa   :  { %6568 = vmatmul.mubr.msk.f32.vlgmr.msra.gmra.mxu0 %vm41_vm0, %v7338_v9  ;;  %6580 = vmatprep.subr.mxu0 %v7218_v11  ;;  %s7230_s13 = smov 40   ;;  %s7231_s15 = smov 5  }
   0xb   :  { %6582 = vmatprep.mubr.msk.f32.mxu0 %vm7219_vm1, %v7218_v11  ;;  %s7232_s16 = smov 10   ;;  %s7234_s17 = smov 20  }
   0xc   :  { %s7235_s18 = smov 25  }
  0x7a   :  { %v7358_v14 = vpop.permute.xlu0 %134 }
  0xca   :  { %v7353_v12 = vpop.f32.mrf.mxu0 }
  0xcc   :  { %v114_v15 = vpop.f32.mrf.mxu0 }
  0xcd   :  { %v7361_v16 = vadd.f32 %v7358_v14, %v114_v15  ;;  %v7372_v18 = vadd.f32 %v7365_v17, %v114_v15 }
  0xcf   :  { %322 = vrot.lane.b32.xlu1 %v7361_v16, %s7220_s0  ;;  %154 = vrot.lane.b32.xlu0 %v7361_v16, %s7221_s24 }
  0xd3   :  { %320 = vrot.lane.b32.xlu1 %v7372_v18, %s7222_s25 }
 0x141   :  { %v323_v19 = vpop.permute.xlu1 %322  ;;  %v155_v20 = vpop.permute.xlu0 %154 }
 0x142   :  { %6571 = vmatpush3.xpose.msk.msra.mxu1 %vm156_vm2, %v155_v20  ;;  %6581 = vmatpush3.xpose.msk.msra.mxu0 %vm156_vm2, %v323_v19 }
 0x143   :  { %6575 = vmatprep.subr.mxu1 %v7218_v11  ;;  %6590 = vmatprep.subr.mxu0 %v7218_v11 }
 0x145   :  { %v321_v21 = vpop.permute.xlu1 %320  ;;  %6573 = vmatmul.mubr.msk.f32.vlgmr.msra.gmra.mxu1 %vm156_vm2, %v7372_v18 }
 0x146   :  { %6583 = vmatmul.mubr.msk.f32.vlgmr.msra.gmra.mxu0 %vm156_vm2, %v321_v21  ;;  %6577 = vmatprep.mubr.msk.f32.mxu1 %vm7219_vm1, %v7218_v11 }
 0x147   :  { %6592 = vmatprep.mubr.msk.f32.mxu0 %vm7219_vm1, %v7218_v11 }
 0x205   :  { %v228_v24 = vpop.f32.mrf.mxu1 }
 0x206   :  { %v229_v25 = vadd.f32 %v228_v24, %v7394_v23  ;;  %v394_v26 = vpop.f32.mrf.mxu0 }
 0x207   :  { %v395_v27 = vadd.f32 %v394_v26, %v7394_v23  ;;  %v6574_v28 = vpop.f32.mrf.mxu1 }
 0x208   :  { %v6584_v29 = vpop.f32.mrf.mxu0  ;;  %v232_v30 = vsel %vm156_vm2, %v229_v25, -inf }
 0x209   :  { %233 = vmax.xlane.f32.xlu0 %v232_v30  ;;  %v398_v31 = vsel %vm156_vm2, %v395_v27, -inf }
 0x20a   :  { %399 = vmax.xlane.f32.xlu1 %v398_v31 }
 0x21f   :  { %144 = vrot.lane.b32.xlu0 %v142_v33, %s7223_s1 }
 0x292   :  { %v234_v34 = vpop.xlane.xlu0 %233 }
 0x293   :  { %v235_v35 = vsub.f32 %v229_v25, %v234_v34  ;;  %v400_v36 = vpop.xlane.xlu1 %399 }
 0x294   :  { %v401_v37 = vsub.f32 %v395_v27, %v400_v36 }
 0x295   :  { %v236_v38 = vmul.f32 1.442695, %v235_v35 }
 0x296   :  { %v402_v39 = vmul.f32 1.442695, %v401_v37  ;;  %v7406_v40 = vpop.permute.xlu0 %144 }
 0x297   :  { %7093 = vpow2.f32 %v236_v38  ;;  %v7409_v41 = vadd.f32 %v7406_v40, %v114_v15  ;;  %v7480_v38 = vadd.f32 %v7353_v12, %v7358_v14 }
 0x298   :  { %7095 = vpow2.f32 %v402_v39  ;;  %v7486_v39 = vadd.f32 %v7353_v12, %v7365_v17 }
 0x299   :  { %409 = vrot.lane.b32.xlu0 %v7409_v41, %s7224_s28 }
 0x29d   :  { %486 = vrot.lane.b32.xlu0 %v7312_v4, %s7217_s23 }
 0x2a1   :  { %641 = vrot.lane.b32.xlu0 %v7361_v16, %s7225_s29 }
 0x2a4   :  { %v7094_v42 = vpop.eup %7093 }
 0x2a5   :  { %v238_v43 = vsel %vm156_vm2, %v7094_v42, 0.0  ;;  %v7096_v44 = vpop.eup %7095 }
 0x2a6   :  { %239 = vadd.xlane.f32.xlu1 %v238_v43  ;;  %v404_v45 = vsel %vm156_vm2, %v7096_v44, 0.0 }
 0x2aa   :  { %405 = vadd.xlane.f32.xlu1 %v404_v45 }
 0x2bb   :  { %244 = vrot.lane.b32.xlu1 %v7409_v41, %s7223_s1 }
 0x2bf   :  { %639 = vrot.lane.b32.xlu1 %v7372_v18, %s7226_s30 }
 0x2c3   :  { %728 = vrot.lane.b32.xlu1 %v7409_v41, %s7227_s10 }
 0x30b   :  { %v410_v46 = vpop.permute.xlu0 %409 }
 0x30f   :  { %v7425_v47 = vpop.permute.xlu0 %486 }
 0x310   :  { %6591 = vmatpush3.msra.mxu0 %v7425_v47 }
 0x311   :  { %6600 = vmatprep.subr.mxu0 %v7218_v11 }
 0x313   :  { %v642_v58 = vpop.permute.xlu0 %641 }
 0x32f   :  { %v240_v48 = vpop.xlane.xlu1 %239 }
 0x330   :  { %7097 = vrcp.f32 %v240_v48 }
 0x333   :  { %v406_v49 = vpop.xlane.xlu1 %405 }
 0x334   :  { %7099 = vrcp.f32 %v406_v49 }
 0x337   :  { %v245_v50 = vpop.permute.xlu1 %244 }
 0x338   :  { %6576 = vmatpush3.msra.mxu1 %v245_v50 }
 0x339   :  { %6585 = vmatprep.subr.mxu1 %v7218_v11 }
 0x33b   :  { %v640_v60 = vpop.permute.xlu1 %639 }
 0x33d   :  { %v7098_v51 = vpop.eup %7097 }
 0x33e   :  { %v242_v52 = vmul.f32 %v7098_v51, %v7094_v42 }
 0x33f   :  { %v729_v24 = vpop.permute.xlu1 %728 }
 0x340   :  { %6578 = vmatmul.mubr.msk.f32.vlgmr.msra.gmra.mxu1 %vm156_vm2, %v242_v52 }
 0x341   :  { %v7100_v53 = vpop.eup %7099  ;;  %6586 = vmatpush3.msra.mxu1 %v410_v46  ;;  %6587 = vmatprep.mubr.msk.f32.mxu1 %vm7219_vm1, %v7218_v11 }
 0x342   :  { %v408_v54 = vmul.f32 %v7100_v53, %v7096_v44  ;;  %6595 = vmatprep.subr.mxu1 %v7218_v11 }
 0x344   :  { %6588 = vmatmul.mubr.msk.f32.vlgmr.msra.gmra.mxu1 %vm156_vm2, %v408_v54 }
 0x345   :  { %6597 = vmatprep.mubr.msk.f32.mxu1 %vm7219_vm1, %v7218_v11 }
 0x400   :  { %v316_v55 = vpop.f32.mrf.mxu1 }
 0x402   :  { %v6579_v56 = vpop.f32.mrf.mxu1 }
 0x404   :  { %v481_v57 = vpop.f32.mrf.mxu1 }
 0x405   :  { %6593 = vmatmul.mubr.msk.f32.vlgmr.msra.gmra.mxu0 %vm156_vm2, %v481_v57  ;;  %v7520_v57 = vrot.slane %v7390_v22, %v7331_v8 }
 0x406   :  { %6601 = vmatpush3.xpose.msk.msra.mxu0 %vm156_vm2, %v642_v58  ;;  %v6589_v59 = vpop.f32.mrf.mxu1  ;;  %6602 = vmatprep.mubr.msk.f32.mxu0 %vm7219_vm1, %v7218_v11 }
 0x407   :  { %6610 = vmatprep.subr.mxu0 %v7218_v11 }
 0x409   :  { %6603 = vmatmul.mubr.msk.f32.vlgmr.msra.gmra.mxu0 %vm156_vm2, %v640_v60 }
 0x40a   :  { %6612 = vmatprep.mubr.msk.f32.mxu0 %vm7219_vm1, %v7218_v11 }
 0x4c5   :  { %v7445_v61 = vpop.f32.mrf.mxu0 }
 0x4c7   :  { %v6594_v62 = vpop.f32.mrf.mxu0 }
 0x4c9   :  { %v713_v63 = vpop.f32.mrf.mxu0 }
 0x4ca   :  { %v714_v2 = vadd.f32 %v713_v63, %v7394_v23 }
 0x4cb   :  { %v6604_v4 = vpop.f32.mrf.mxu0 }
 0x4cc   :  { %v717_v10 = vsel %vm156_vm2, %v714_v2, -inf }
 0x4cd   :  { %718 = vmax.xlane.f32.xlu0 %v717_v10  ;;  %v7528_v10 = vadd.f32 %v7353_v12, %v7406_v40 }
 0x4e3   :  { %563 = vrot.lane.b32.xlu0 %v7328_v7, %s7217_s23 }
 0x4e7   :  { %884 = vrot.lane.b32.xlu0 %v7361_v16, %s7228_s11 }
 0x556   :  { %v719_v15 = vpop.xlane.xlu0 %718 }
 0x557   :  { %v720_v19 = vsub.f32 %v714_v2, %v719_v15 }
 0x559   :  { %v721_v20 = vmul.f32 1.442695, %v720_v19 }
 0x55a   :  { %v7453_v21 = vpop.permute.xlu0 %563 }
 0x55b   :  { %7101 = vpow2.f32 %v721_v20  ;;  %6596 = vmatpush3.msra.mxu1 %v7453_v21 }
 0x55c   :  { %6598 = vmatmul.mubr.msk.f32.vlgmr.msra.gmra.mxu1 %vm156_vm2, %v316_v55  ;;  %6605 = vmatprep.subr.mxu1 %v7218_v11 }
 0x55d   :  { %6606 = vmatpush3.msra.mxu1 %v729_v24  ;;  %6607 = vmatprep.mubr.msk.f32.mxu1 %vm7219_vm1, %v7218_v11 }
 0x55e   :  { %6615 = vmatprep.subr.mxu1 %v7218_v11  ;;  %v885_v28 = vpop.permute.xlu0 %884 }
 0x568   :  { %v7102_v7 = vpop.eup %7101 }
 0x569   :  { %v723_v16 = vsel %vm156_vm2, %v7102_v7, 0.0 }
 0x56a   :  { %724 = vadd.xlane.f32.xlu1 %v723_v16 }
 0x57b   :  { %882 = vrot.lane.b32.xlu1 %v7372_v18, %s7229_s12 }
 0x57f   :  { %971 = vrot.lane.b32.xlu1 %v7409_v41, %s7230_s13 }
 0x5f3   :  { %v725_v25 = vpop.xlane.xlu1 %724 }
 0x5f4   :  { %7103 = vrcp.f32 %v725_v25 }
 0x5f7   :  { %v883_v29 = vpop.permute.xlu1 %882 }
 0x601   :  { %v7104_v26 = vpop.eup %7103 }
 0x602   :  { %v727_v27 = vmul.f32 %v7104_v26, %v7102_v7 }
 0x604   :  { %6608 = vmatmul.mubr.msk.f32.vlgmr.msra.gmra.mxu1 %vm156_vm2, %v727_v27 }
 0x605   :  { %6616 = vmatpush3.xpose.msk.msra.mxu1 %vm156_vm2, %v885_v28  ;;  %6617 = vmatprep.mubr.msk.f32.mxu1 %vm7219_vm1, %v7218_v11 }
 0x606   :  { %6625 = vmatprep.subr.mxu1 %v7218_v11 }
 0x608   :  { %6618 = vmatmul.mubr.msk.f32.vlgmr.msra.gmra.mxu1 %vm156_vm2, %v883_v29 }
 0x609   :  { %6627 = vmatprep.mubr.msk.f32.mxu1 %vm7219_vm1, %v7218_v11 }
 0x61c   :  { %v635_v18 = vpop.f32.mrf.mxu1 }
 0x61d   :  { %v636_v52 = vadd.f32 %v635_v18, %v7445_v61 }
 0x61e   :  { %v6599_v30 = vpop.f32.mrf.mxu1 }
 0x6c4   :  { %v800_v31 = vpop.f32.mrf.mxu1 }
 0x6c6   :  { %v6609_v33 = vpop.f32.mrf.mxu1 }
 0x6c8   :  { %v956_v34 = vpop.f32.mrf.mxu1 }
 0x6c9   :  { %v957_v35 = vadd.f32 %v956_v34, %v7394_v23 }
 0x6ca   :  { %v6619_v36 = vpop.f32.mrf.mxu1 }
 0x6cb   :  { %v960_v37 = vsel %vm156_vm2, %v957_v35, -inf }
 0x6cc   :  { %961 = vmax.xlane.f32.xlu0 %v960_v37 }
 0x6e2   :  { %805 = vrot.lane.b32.xlu0 %v7300_v1, %s7217_s23  ;;  %v972_v1 = vpop.permute.xlu1 %971 }
 0x6e6   :  { %1130 = vrot.lane.b32.xlu0 %v7480_v38, %s7221_s24 }
 0x6ea   :  { %1295 = vrot.lane.b32.xlu0 %v7486_v39, %s7222_s25 }
 0x755   :  { %v962_v41 = vpop.xlane.xlu0 %961 }
 0x756   :  { %v963_v42 = vsub.f32 %v957_v35, %v962_v41 }
 0x758   :  { %v964_v43 = vmul.f32 1.442695, %v963_v42 }
 0x759   :  { %v7490_v44 = vpop.permute.xlu0 %805 }
 0x75a   :  { %7105 = vpow2.f32 %v964_v43  ;;  %6611 = vmatpush3.msra.mxu0 %v7490_v44 }
 0x75b   :  { %6613 = vmatmul.mubr.msk.f32.vlgmr.msra.gmra.mxu0 %vm156_vm2, %v800_v31  ;;  %6620 = vmatprep.subr.mxu0 %v7218_v11 }
 0x75c   :  { %6621 = vmatpush3.msra.mxu0 %v972_v1  ;;  %6622 = vmatprep.mubr.msk.f32.mxu0 %vm7219_vm1, %v7218_v11 }
 0x75d   :  { %6630 = vmatprep.subr.mxu0 %v7218_v11  ;;  %v1131_v49 = vpop.permute.xlu0 %1130 }
 0x761   :  { %v1296_v51 = vpop.permute.xlu0 %1295 }
 0x767   :  { %v7106_v14 = vpop.eup %7105 }
 0x768   :  { %v966_v17 = vsel %vm156_vm2, %v7106_v14, 0.0 }
 0x769   :  { %967 = vadd.xlane.f32.xlu1 %v966_v17 }
 0x77a   :  { %1297 = vrot.lane.b32.xlu1 %v7480_v38, %s7220_s0 }
 0x7f2   :  { %v968_v45 = vpop.xlane.xlu1 %967 }
 0x7f3   :  { %7107 = vrcp.f32 %v968_v45 }
 0x7f6   :  { %v1298_v50 = vpop.permute.xlu1 %1297 }
 0x800   :  { %v7108_v46 = vpop.eup %7107 }
 0x801   :  { %v970_v48 = vmul.f32 %v7108_v46, %v7106_v14 }
 0x803   :  { %6623 = vmatmul.mubr.msk.f32.vlgmr.msra.gmra.mxu0 %vm156_vm2, %v970_v48 }
 0x804   :  { %6631 = vmatpush3.xpose.msk.msra.mxu0 %vm156_vm2, %v1131_v49  ;;  %6632 = vmatprep.mubr.msk.f32.mxu0 %vm7219_vm1, %v7218_v11 }
 0x805   :  { %6640 = vmatprep.subr.mxu0 %v7218_v11 }
 0x807   :  { %6633 = vmatmul.mubr.msk.f32.vlgmr.msra.gmra.mxu0 %vm156_vm2, %v7486_v39 }
 0x808   :  { %6641 = vmatpush3.xpose.msk.msra.mxu0 %vm156_vm2, %v1298_v50  ;;  %6642 = vmatprep.mubr.msk.f32.mxu0 %vm7219_vm1, %v7218_v11 }
 0x809   :  { %6650 = vmatprep.subr.mxu0 %v7218_v11 }
 0x80b   :  { %6643 = vmatmul.mubr.msk.f32.vlgmr.msra.gmra.mxu0 %vm156_vm2, %v1296_v51 }
 0x80c   :  { %6651 = vmatpush3.msra.mxu0 %v7425_v47  ;;  %6652 = vmatprep.mubr.msk.f32.mxu0 %vm7219_vm1, %v7218_v11 }
 0x80d   :  { %6660 = vmatprep.subr.mxu0 %v7218_v11 }
 0x81b   :  { %v877_v53 = vpop.f32.mrf.mxu0 }
 0x81c   :  { %v881_v54 = vadd.f32 %v877_v53, %v636_v52 }
 0x81d   :  { %v6614_v55 = vpop.f32.mrf.mxu0 }
 0x8c3   :  { %v1043_v56 = vpop.f32.mrf.mxu0 }
 0x8c5   :  { %v6624_v58 = vpop.f32.mrf.mxu0 }
 0x8c7   :  { %v1203_v59 = vpop.f32.mrf.mxu0 }
 0x8c8   :  { %v1204_v60 = vadd.f32 %v1203_v59, %v7520_v57 }
 0x8c9   :  { %v6634_v47 = vpop.f32.mrf.mxu0 }
 0x8ca   :  { %v1207_v62 = vsel %vm156_vm2, %v1204_v60, -inf }
 0x8cb   :  { %1208 = vmax.xlane.f32.xlu1 %v1207_v62  ;;  %v1369_v63 = vpop.f32.mrf.mxu0 }
 0x8cc   :  { %v1370_v2 = vadd.f32 %v1369_v63, %v7520_v57 }
 0x8cd   :  { %v6644_v61 = vpop.f32.mrf.mxu0 }
 0x8ce   :  { %v1373_v4 = vsel %vm156_vm2, %v1370_v2, -inf }
 0x8cf   :  { %1374 = vmax.xlane.f32.xlu0 %v1373_v4 }
 0x8dc   :  { %1219 = vrot.lane.b32.xlu1 %v7528_v10, %s7223_s1 }
 0x954   :  { %v1209_v22 = vpop.xlane.xlu1 %1208 }
 0x955   :  { %v1210_v15 = vsub.f32 %v1204_v60, %v1209_v22 }
 0x957   :  { %v1211_v19 = vmul.f32 1.442695, %v1210_v15 }
 0x958   :  { %v1375_v20 = vpop.xlane.xlu0 %1374  ;;  %v1220_v12 = vpop.permute.xlu1 %1219 }
 0x959   :  { %7109 = vpow2.f32 %v1211_v19  ;;  %v1376_v24 = vsub.f32 %v1370_v2, %v1375_v20 }
 0x95b   :  { %v1377_v7 = vmul.f32 1.442695, %v1376_v24 }
 0x95d   :  { %7111 = vpow2.f32 %v1377_v7 }
 0x966   :  { %v7110_v16 = vpop.eup %7109 }
 0x967   :  { %v1213_v25 = vsel %vm156_vm2, %v7110_v16, 0.0 }
 0x968   :  { %1214 = vadd.xlane.f32.xlu0 %v1213_v25 }
 0x96a   :  { %v7112_v26 = vpop.eup %7111 }
 0x96b   :  { %v1379_v27 = vsel %vm156_vm2, %v7112_v26, 0.0 }
 0x96c   :  { %1380 = vadd.xlane.f32.xlu1 %v1379_v27 }
 0x97d   :  { %1384 = vrot.lane.b32.xlu1 %v7528_v10, %s7224_s28 }
 0x97e   :  { %1048 = vrot.lane.b32.xlu0 %v7295_v0, %s7217_s23 }
 0x981   :  { %1606 = vrot.lane.b32.xlu1 %v7486_v39, %s7226_s30 }
 0x982   :  { %1608 = vrot.lane.b32.xlu0 %v7480_v38, %s7225_s29 }
 0x9f1   :  { %v1215_v40 = vpop.xlane.xlu0 %1214 }
 0x9f2   :  { %7113 = vrcp.f32 %v1215_v40 }
 0x9f5   :  { %v1381_v28 = vpop.xlane.xlu1 %1380  ;;  %v7542_v29 = vpop.permute.xlu0 %1048 }
 0x9f6   :  { %7115 = vrcp.f32 %v1381_v28  ;;  %6626 = vmatpush3.msra.mxu1 %v7542_v29 }
 0x9f7   :  { %6628 = vmatmul.mubr.msk.f32.vlgmr.msra.gmra.mxu1 %vm156_vm2, %v1043_v56  ;;  %6635 = vmatprep.subr.mxu1 %v7218_v11 }
 0x9f8   :  { %6636 = vmatpush3.msra.mxu1 %v1220_v12  ;;  %6637 = vmatprep.mubr.msk.f32.mxu1 %vm7219_vm1, %v7218_v11 }
 0x9f9   :  { %6645 = vmatprep.subr.mxu1 %v7218_v11  ;;  %v1385_v30 = vpop.permute.xlu1 %1384  ;;  %v1609_v43 = vpop.permute.xlu0 %1608 }
 0x9fd   :  { %v1607_v1 = vpop.permute.xlu1 %1606 }
 0x9ff   :  { %v7114_v0 = vpop.eup %7113 }
 0xa00   :  { %v1217_v18 = vmul.f32 %v7114_v0, %v7110_v16 }
 0xa02   :  { %6638 = vmatmul.mubr.msk.f32.vlgmr.msra.gmra.mxu1 %vm156_vm2, %v1217_v18 }
 0xa03   :  { %v7116_v31 = vpop.eup %7115  ;;  %6646 = vmatpush3.msra.mxu1 %v1385_v30  ;;  %6647 = vmatprep.mubr.msk.f32.mxu1 %vm7219_vm1, %v7218_v11 }
 0xa04   :  { %6655 = vmatprep.subr.mxu1 %v7218_v11  ;;  %v1383_v33 = vmul.f32 %v7116_v31, %v7112_v26 }
 0xa06   :  { %6648 = vmatmul.mubr.msk.f32.vlgmr.msra.gmra.mxu1 %vm156_vm2, %v1383_v33 }
 0xa07   :  { %6656 = vmatpush3.msra.mxu1 %v7453_v21  ;;  %6657 = vmatprep.mubr.msk.f32.mxu1 %vm7219_vm1, %v7218_v11 }
 0xa08   :  { %6665 = vmatprep.subr.mxu1 %v7218_v11 }
 0xab7   :  { %v1120_v34 = vpop.f32.mrf.mxu1 }
 0xab8   :  { %v1124_v35 = vadd.f32 %v1120_v34, %v881_v54 }
 0xab9   :  { %v6629_v36 = vpop.f32.mrf.mxu1 }
 0xac2   :  { %v1291_v37 = vpop.f32.mrf.mxu1 }
 0xac3   :  { %6658 = vmatmul.mubr.msk.f32.vlgmr.msra.gmra.mxu1 %vm156_vm2, %v1291_v37 }
 0xac4   :  { %v6639_v41 = vpop.f32.mrf.mxu1  ;;  %6667 = vmatprep.mubr.msk.f32.mxu1 %vm7219_vm1, %v7218_v11 }
 0xac6   :  { %v1456_v42 = vpop.f32.mrf.mxu1 }
 0xac7   :  { %6653 = vmatmul.mubr.msk.f32.vlgmr.msra.gmra.mxu0 %vm156_vm2, %v1456_v42 }
 0xac8   :  { %6661 = vmatpush3.xpose.msk.msra.mxu0 %vm156_vm2, %v1609_v43  ;;  %v6649_v21 = vpop.f32.mrf.mxu1  ;;  %6662 = vmatprep.mubr.msk.f32.mxu0 %vm7219_vm1, %v7218_v11 }
 0xac9   :  { %6670 = vmatprep.subr.mxu0 %v7218_v11 }
 0xacb   :  { %6663 = vmatmul.mubr.msk.f32.vlgmr.msra.gmra.mxu0 %vm156_vm2, %v1607_v1 }
 0xacc   :  { %6671 = vmatpush3.msra.mxu0 %v7490_v44  ;;  %6672 = vmatprep.mubr.msk.f32.mxu0 %vm7219_vm1, %v7218_v11 }
 0xacd   :  { %6680 = vmatprep.subr.mxu0 %v7218_v11 }
 0xb83   :  { %v1602_v14 = vpop.f32.mrf.mxu1 }
 0xb85   :  { %v6659_v17 = vpop.f32.mrf.mxu1 }
 0xb87   :  { %v1529_v45 = vpop.f32.mrf.mxu0 }
 0xb88   :  { %v1603_v46 = vadd.f32 %v1602_v14, %v1529_v45 }
 0xb89   :  { %v6654_v48 = vpop.f32.mrf.mxu0 }
 0xb8b   :  { %v1680_v49 = vpop.f32.mrf.mxu0 }
 0xb8c   :  { %v1681_v50 = vadd.f32 %v1680_v49, %v7520_v57 }
 0xb8d   :  { %v6664_v51 = vpop.f32.mrf.mxu0 }
 0xb8e   :  { %v1684_v52 = vsel %vm156_vm2, %v1681_v50, -inf }
 0xb8f   :  { %1685 = vmax.xlane.f32.xlu0 %v1684_v52 }
 0xba5   :  { %1695 = vrot.lane.b32.xlu0 %v7528_v10, %s7227_s10 }
 0xba9   :  { %1845 = vrot.lane.b32.xlu0 %v7486_v39, %s7229_s12 }
 0xc18   :  { %v1686_v44 = vpop.xlane.xlu0 %1685 }
 0xc19   :  { %v1687_v53 = vsub.f32 %v1681_v50, %v1686_v44  ;;  %v7616_v44 = vsub.s32 5, %v7316_v5 }
 0xc1b   :  { %v1688_v54 = vmul.f32 1.442695, %v1687_v53 }
 0xc1c   :  { %v1696_v55 = vpop.permute.xlu0 %1695 }
 0xc1d   :  { %7117 = vpow2.f32 %v1688_v54  ;;  %6666 = vmatpush3.msra.mxu1 %v1696_v55 }
 0xc1e   :  { %6675 = vmatprep.subr.mxu1 %v7218_v11 }
 0xc20   :  { %v1846_v62 = vpop.permute.xlu0 %1845 }
 0xc2a   :  { %v7118_v56 = vpop.eup %7117 }
 0xc2b   :  { %v1690_v58 = vsel %vm156_vm2, %v7118_v56, 0.0 }
 0xc2c   :  { %1691 = vadd.xlane.f32.xlu1 %v1690_v58 }
 0xc3d   :  { %1847 = vrot.lane.b32.xlu1 %v7480_v38, %s7228_s11  ;;  %v7592_v38 = vsub.s32 3, %v7316_v5 }
 0xc3f   :  { %v2087_v63 = vrot.slane %v7322_v6, %v7592_v38 }
 0xc41   :  { %v2088_v4 = vadd.f32 %v2087_v63, %v1124_v35 }
 0xc43   :  { %v2090_v24 = vadd.f32 %v2088_v4, %v7306_v3  ;;  %v2227_v4 = vld [vmem:[%s8390_s5 + $0x20] sm:$0xff] }
 0xc45   :  { %v2092_v7 = vsel %vm41_vm0, %v2090_v24, 0.0 }
 0xcb5   :  { %v1692_v59 = vpop.xlane.xlu1 %1691 }
 0xcb6   :  { %7119 = vrcp.f32 %v1692_v59 }
 0xcb9   :  { %v1848_v39 = vpop.permute.xlu1 %1847 }
 0xcc3   :  { %v7120_v60 = vpop.eup %7119 }
 0xcc4   :  { %v1694_v47 = vmul.f32 %v7120_v60, %v7118_v56  ;;  %v2128_v56 = vrot.slane %v7322_v6, %v7616_v44  ;;  %v2134_v60 = vld [vmem:[%s8389_s4 + $0x18] sm:$0xff] }
 0xcc6   :  { %6668 = vmatmul.mubr.msk.f32.vlgmr.msra.gmra.mxu1 %vm156_vm2, %v1694_v47  ;;  %v2133_v47 = vld [vmem:[%s8389_s4 + $0x10] sm:$0xff] }
 0xcc7   :  { %6676 = vmatpush3.xpose.msk.msra.mxu1 %vm156_vm2, %v1848_v39  ;;  %6677 = vmatprep.mubr.msk.f32.mxu1 %vm7219_vm1, %v7218_v11  ;;  %v2132_v39 = vld [vmem:[%s8389_s4 + $0x8] sm:$0xff] }
 0xcc8   :  { %6685 = vmatprep.subr.mxu1 %v7218_v11 }
 0xcca   :  { %6678 = vmatmul.mubr.msk.f32.vlgmr.msra.gmra.mxu1 %vm156_vm2, %v1846_v62  ;;  %v2131_v62 = vld [vmem:[%s8389_s4] sm:$0xff] }
 0xccb   :  { %6686 = vmatpush3.msra.mxu1 %v7542_v29  ;;  %6687 = vmatprep.mubr.msk.f32.mxu1 %vm7219_vm1, %v7218_v11 }
 0xd86   :  { %v1767_v2 = vpop.f32.mrf.mxu1 }
 0xd87   :  { %6673 = vmatmul.mubr.msk.f32.vlgmr.msra.gmra.mxu0 %vm156_vm2, %v1767_v2  ;;  %v2229_v2 = vld [vmem:[%s8390_s5 + $0x30] sm:$0xff] }
 0xd88   :  { %v6669_v61 = vpop.f32.mrf.mxu1  ;;  %6682 = vmatprep.mubr.msk.f32.mxu0 %vm7219_vm1, %v7218_v11 }
 0xd89   :  { %v2228_v61 = vld [vmem:[%s8390_s5 + $0x28] sm:$0xff] }
 0xd8a   :  { %v1919_v22 = vpop.f32.mrf.mxu1 }
 0xd8b   :  { %v1920_v15 = vadd.f32 %v1919_v22, %v7520_v57 }
 0xd8c   :  { %v6679_v19 = vpop.f32.mrf.mxu1 }
 0xd8d   :  { %v1923_v20 = vsel %vm156_vm2, %v1920_v15, -inf }
 0xd8e   :  { %1924 = vmax.xlane.f32.xlu1 %v1923_v20 }
 0xd92   :  { %2093 = vadd.xlane.f32.xlu1 %v2092_v7 }
 0xe17   :  { %v1925_v16 = vpop.xlane.xlu1 %1924 }
 0xe18   :  { %v1926_v25 = vsub.f32 %v1920_v15, %v1925_v16 }
 0xe1a   :  { %v1927_v26 = vmul.f32 1.442695, %v1926_v25  ;;  %v2226_v25 = vld [vmem:[%s8390_s5 + $0x18] sm:$0xff] }
 0xe1b   :  { %v2094_v34 = vpop.xlane.xlu1 %2093 }
 0xe1c   :  { %7121 = vpow2.f32 %v1927_v26  ;;  %v2099_v35 = vmul.f32 0.03125, %v2094_v34  ;;  %v2225_v26 = vld [vmem:[%s8390_s5 + $0x10] sm:$0xff] }
 0xe1e   :  { %v2101_v41 = vsub.f32 %v2090_v24, %v2099_v35 }
 0xe20   :  { %v2103_v1 = vmul.f32 %v2101_v41, %v2101_v41 }
 0xe22   :  { %v2105_v14 = vsel %vm41_vm0, %v2103_v1, 0.0 }
 0xe29   :  { %v7122_v27 = vpop.eup %7121 }
 0xe2a   :  { %v1929_v12 = vsel %vm156_vm2, %v7122_v27, 0.0 }
 0xe2b   :  { %1930 = vadd.xlane.f32.xlu0 %v1929_v12  ;;  %v2223_v12 = vld [vmem:[%s8390_s5] sm:$0xff] }
 0xe41   :  { %1934 = vrot.lane.b32.xlu0 %v7528_v10, %s7230_s13 }
 0xe47   :  { %v1840_v40 = vpop.f32.mrf.mxu0 }
 0xe48   :  { %v1844_v28 = vadd.f32 %v1840_v40, %v1603_v46  ;;  %v6248_v40 = vld [vmem:[%s8389_s4 + $0x20] ss:$0 sm:$0xff] }
 0xe49   :  { %v6674_v29 = vpop.f32.mrf.mxu0 }
 0xeb4   :  { %v1931_v0 = vpop.xlane.xlu0 %1930 }
 0xeb5   :  { %7123 = vrcp.f32 %v1931_v0 }
 0xeb8   :  { %v1935_v3 = vpop.permute.xlu0 %1934 }
 0xeb9   :  { %6681 = vmatpush3.msra.mxu0 %v1935_v3 }
 0xeba   :  { %6690 = vmatprep.subr.mxu0 %v2134_v60 }
 0xec2   :  { %v7124_v18 = vpop.eup %7123 }
 0xec3   :  { %v1933_v30 = vmul.f32 %v7124_v18, %v7122_v27  ;;  %v2224_v27 = vld [vmem:[%s8390_s5 + $0x8] sm:$0xff] }
 0xec5   :  { %6683 = vmatmul.mubr.msk.f32.vlgmr.msra.gmra.mxu0 %vm156_vm2, %v1933_v30 }
 0xec6   :  { %6691 = vmatpush3.msra.mxu0 %v2134_v60 }
 0xec7   :  { %6692 = vmatprep.subr.mxu0 %v2133_v47 }
 0xec8   :  { %6693 = vmatpush3.msra.mxu0 %v2133_v47 }
 0xec9   :  { %6694 = vmatprep.subr.mxu0 %v2132_v39 }
 0xeca   :  { %6695 = vmatpush3.msra.mxu0 %v2132_v39 }
 0xecb   :  { %6696 = vmatprep.subr.mxu0 %v2131_v62 }
 0xecc   :  { %6697 = vmatpush3.msra.mxu0 %v2131_v62 }
 0xf85   :  { %v2006_v31 = vpop.f32.mrf.mxu0 }
 0xf86   :  { %6688 = vmatmul.mubr.msk.f32.vlgmr.msra.gmra.mxu1 %vm156_vm2, %v2006_v31 }
 0xf87   :  { %v6684_v33 = vpop.f32.mrf.mxu0 }
 0xf88   :  { %v6251_v33 = vld [vmem:[%s8390_s5 + $0x40] ss:$0 sm:$0xff] }
0x1046   :  { %v2079_v36 = vpop.f32.mrf.mxu1 }
0x1047   :  { %v2083_v37 = vadd.f32 %v2079_v36, %v1844_v28 }
0x1048   :  { %v6689_v10 = vpop.f32.mrf.mxu1 }
0x1049   :  { %v2089_v42 = vadd.f32 %v2087_v63, %v2083_v37  ;;  %v2230_v63 = vld [vmem:[%s8390_s5 + $0x38] sm:$0xff] }
0x104a   :  { %6701 = vmatprep.subr.mxu1 %v2230_v63 }
0x104b   :  { %v2091_v43 = vadd.f32 %v2089_v42, %v7338_v9  ;;  %v7613_v9 = vsub.s32 4, %v7316_v5  ;;  %6702 = vmatpush3.msra.mxu1 %v2230_v63  ;;  %v7717_v63 = vsub.s32 6, %v7316_v5 }
0x104c   :  { %6703 = vmatprep.subr.mxu1 %v2229_v2 }
0x104d   :  { %v2095_v21 = vsel %vm41_vm0, %v2091_v43, 0.0  ;;  %v2122_v53 = vrot.slane %v7322_v6, %v7613_v9  ;;  %6704 = vmatpush3.msra.mxu1 %v2229_v2  ;;  %v7720_v2 = vsub.s32 7, %v7316_v5 }
0x104e   :  { %2096 = vadd.xlane.f32.xlu1 %v2095_v21  ;;  %6705 = vmatprep.subr.mxu1 %v2228_v61 }
0x104f   :  { %6706 = vmatpush3.msra.mxu1 %v2228_v61  ;;  %v2349_v61 = vrot.slane %v7322_v6, %v7717_v63 }
0x1050   :  { %6707 = vmatprep.subr.mxu1 %v2227_v4 }
0x1051   :  { %6708 = vmatpush3.msra.mxu1 %v2227_v4 }
0x1052   :  { %2106 = vadd.xlane.f32.xlu1 %v2105_v14  ;;  %6709 = vmatprep.subr.mxu1 %v2226_v25 }
0x1053   :  { %6710 = vmatpush3.msra.mxu1 %v2226_v25 }
0x1054   :  { %6711 = vmatprep.subr.mxu1 %v2225_v26 }
0x1055   :  { %6712 = vmatpush3.msra.mxu1 %v2225_v26 }
0x1056   :  { %6713 = vmatprep.subr.mxu1 %v2224_v27 }
0x1057   :  { %6714 = vmatpush3.msra.mxu1 %v2224_v27 }
0x1058   :  { %6715 = vmatprep.subr.mxu1 %v2223_v12 }
0x1059   :  { %6716 = vmatpush3.msra.mxu1 %v2223_v12 }
0x105a   :  { %6736 = vmatprep.subr.mxu1 %v7218_v11 }
0x10d7   :  { %v2097_v17 = vpop.xlane.xlu1 %2096 }
0x10d8   :  { %v2100_v45 = vmul.f32 0.03125, %v2097_v17 }
0x10da   :  { %v2102_v46 = vsub.f32 %v2091_v43, %v2100_v45 }
0x10db   :  { %v2107_v48 = vpop.xlane.xlu1 %2106 }
0x10dc   :  { %v2111_v49 = vmul.f32 0.03125, %v2107_v48  ;;  %v2104_v50 = vmul.f32 %v2102_v46, %v2102_v46 }
0x10de   :  { %v2113_v51 = vadd.f32 1e-05, %v2111_v49  ;;  %v2108_v52 = vsel %vm41_vm0, %v2104_v50, 0.0 }
0x10df   :  { %2109 = vadd.xlane.f32.xlu1 %v2108_v52  ;;  %v7687_v52 = vld [vmem:[%s8387_s2 + $0x30] sm:$0xff] }
0x10e0   :  { %7125 = vrsqrt.f32 %v2113_v51  ;;  %v7682_v51 = vld [vmem:[%s8387_s2 + $0x38] sm:$0xff] }
0x10e1   :  { %6720 = vmatprep.subr.mxu0 %v7682_v51 }
0x10ed   :  { %v7126_v54 = vpop.eup %7125 }
0x10ee   :  { %v2117_v55 = vmul.f32 %v7126_v54, %v2101_v41  ;;  %v7703_v54 = vld [vmem:[%s8387_s2 + $0x20] sm:$0xff] }
0x10f0   :  { %v2123_v58 = vmul.f32 %v2122_v53, %v2117_v55  ;;  %v7710_v55 = vld [vmem:[%s8388_s3 + $0x8] sm:$0xff]  ;;  %s7237_s3 = smov 35  }
0x10f2   :  { %v7622_v59 = vadd.f32 %v2128_v56, %v2123_v58 }
0x10f4   :  { %6698 = vmatprep.mubr.msk.f32.mxu0 %vm41_vm0, %v7622_v59 }
0x1168   :  { %v2110_v22 = vpop.xlane.xlu1 %2109 }
0x1169   :  { %v2112_v15 = vmul.f32 0.03125, %v2110_v22 }
0x116b   :  { %v2114_v19 = vadd.f32 1e-05, %v2112_v15  ;;  %v2355_v15 = vrot.slane %v7322_v6, %v7720_v2  ;;  %v7740_v6 = vrot.slane %v7710_v55, %v7356_v13 }
0x116d   :  { %7127 = vrsqrt.f32 %v2114_v19 }
0x117a   :  { %v7128_v20 = vpop.eup %7127 }
0x117b   :  { %v2118_v24 = vmul.f32 %v7128_v20, %v2102_v46 }
0x117d   :  { %v2124_v7 = vmul.f32 %v2122_v53, %v2118_v24  ;;  %v7694_v53 = vld [vmem:[%s8387_s2 + $0x28] sm:$0xff]  ;;  %s7236_s2 = smov 30  }
0x117f   :  { %v2130_v16 = vadd.f32 %v2128_v56, %v2124_v7  ;;  %v2455_v56 = vrot.slane %v7710_v55, %v7331_v8 }
0x1181   :  { %6699 = vmatmul.mubr.msk.f32.vlgmr.msra.gmra.mxu0 %vm41_vm0, %v2130_v16 }
0x1182   :  { %6721 = vmatpush3.msra.mxu0 %v7682_v51 }
0x1183   :  { %6722 = vmatprep.subr.mxu0 %v7687_v52 }
0x1184   :  { %6723 = vmatpush3.msra.mxu0 %v7687_v52 }
0x1185   :  { %6724 = vmatprep.subr.mxu0 %v7694_v53 }
0x1186   :  { %6725 = vmatpush3.msra.mxu0 %v7694_v53 }
0x1187   :  { %6726 = vmatprep.subr.mxu0 %v7703_v54 }
0x1188   :  { %6727 = vmatpush3.msra.mxu0 %v7703_v54 }
0x1189   :  { %6731 = vmatprep.subr.mxu0 %v7218_v11 }
0x1241   :  { %v6700_v28 = vpop.f32.mrf.mxu0 }
0x1242   :  { %v2218_v29 = vadd.f32 %v6700_v28, %v6248_v40 }
0x1243   :  { %v2212_v0 = vpop.f32.mrf.mxu0 }
0x1244   :  { %v2213_v3 = vadd.f32 %v6248_v40, %v2212_v0  ;;  %v2222_v30 = vmax.f32 %v2218_v29, 0.0 }
0x1246   :  { %v2221_v18 = vmax.f32 %v2213_v3, 0.0 }
0x1248   :  { %6717 = vmatprep.mubr.msk.f32.mxu1 %vm2236_vm3, %v2221_v18 }
0x1249   :  { %6718 = vmatmul.mubr.msk.f32.vlgmr.msra.gmra.mxu1 %vm2236_vm3, %v2222_v30 }
0x124a   :  { %6738 = vmatprep.mubr.msk.f32.mxu1 %vm7219_vm1, %v7218_v11 }
0x1309   :  { %v6719_v31 = vpop.f32.mrf.mxu1 }
0x130a   :  { %v2315_v35 = vadd.f32 %v6719_v31, %v6251_v33 }
0x130b   :  { %v2309_v34 = vpop.f32.mrf.mxu1 }
0x130c   :  { %v2310_v36 = vadd.f32 %v6251_v33, %v2309_v34  ;;  %v2319_v41 = vadd.f32 %v2315_v35, %v2130_v16 }
0x130e   :  { %v2318_v37 = vadd.f32 %v2310_v36, %v7622_v59  ;;  %v2323_v42 = vsel %vm41_vm0, %v2319_v41, 0.0 }
0x1310   :  { %v2320_v10 = vsel %vm41_vm0, %v2318_v37, 0.0 }
0x1311   :  { %2321 = vadd.xlane.f32.xlu1 %v2320_v10 }
0x1315   :  { %2324 = vadd.xlane.f32.xlu1 %v2323_v42 }
0x139a   :  { %v2322_v43 = vpop.xlane.xlu1 %2321 }
0x139b   :  { %v2326_v21 = vmul.f32 0.03125, %v2322_v43 }
0x139d   :  { %v2328_v1 = vsub.f32 %v2318_v37, %v2326_v21  ;;  %v2465_v37 = vrot.slane %v7710_v55, %v7401_v32 }
0x139e   :  { %v2325_v14 = vpop.xlane.xlu1 %2324 }
0x139f   :  { %v2327_v17 = vmul.f32 0.03125, %v2325_v14  ;;  %v2330_v45 = vmul.f32 %v2328_v1, %v2328_v1 }
0x13a1   :  { %v2329_v46 = vsub.f32 %v2319_v41, %v2327_v17  ;;  %v2332_v48 = vsel %vm41_vm0, %v2330_v45, 0.0 }
0x13a2   :  { %2333 = vadd.xlane.f32.xlu0 %v2332_v48 }
0x13a3   :  { %v2331_v49 = vmul.f32 %v2329_v46, %v2329_v46 }
0x13a5   :  { %v2335_v50 = vsel %vm41_vm0, %v2331_v49, 0.0 }
0x13a6   :  { %2336 = vadd.xlane.f32.xlu1 %v2335_v50 }
0x13b7   :  { %2457 = vrot.lane.b32.xlu1 %v2455_v56, %s7217_s23 }
0x142b   :  { %v2334_v58 = vpop.xlane.xlu0 %2333 }
0x142c   :  { %v2338_v59 = vmul.f32 0.03125, %v2334_v58 }
0x142e   :  { %v2340_v60 = vadd.f32 1e-05, %v2338_v59 }
0x142f   :  { %v2337_v47 = vpop.xlane.xlu1 %2336 }
0x1430   :  { %7129 = vrsqrt.f32 %v2340_v60  ;;  %v2339_v39 = vmul.f32 0.03125, %v2337_v47 }
0x1432   :  { %v2341_v62 = vadd.f32 1e-05, %v2339_v39 }
0x1433   :  { %v7742_v26 = vpop.permute.xlu1 %2457 }
0x1434   :  { %7131 = vrsqrt.f32 %v2341_v62 }
0x143d   :  { %v7130_v4 = vpop.eup %7129 }
0x143e   :  { %v2344_v22 = vmul.f32 %v7130_v4, %v2328_v1 }
0x1440   :  { %v2350_v19 = vmul.f32 %v2349_v61, %v2344_v22 }
0x1441   :  { %v7132_v20 = vpop.eup %7131 }
0x1442   :  { %v2345_v24 = vmul.f32 %v7132_v20, %v2329_v46  ;;  %v7726_v7 = vadd.f32 %v2355_v15, %v2350_v19 }
0x1444   :  { %v2351_v16 = vmul.f32 %v2349_v61, %v2345_v24  ;;  %6728 = vmatprep.mubr.msk.f32.mxu0 %vm41_vm0, %v7726_v7 }
0x1446   :  { %v7730_v25 = vadd.f32 %v2355_v15, %v2351_v16 }
0x1448   :  { %6729 = vmatmul.mubr.msk.f32.vlgmr.msra.gmra.mxu0 %vm41_vm0, %v7730_v25 }
0x1449   :  { %6733 = vmatprep.mubr.msk.f32.mxu0 %vm7219_vm1, %v7218_v11 }
0x1508   :  { %v7736_v5 = vpop.f32.mrf.mxu0 }
0x150a   :  { %v2437_v27 = vpop.f32.mrf.mxu0 }
0x150b   :  { %v7745_v12 = vadd.f32 %v7740_v6, %v2437_v27  ;;  %v7748_v40 = vadd.f32 %v7742_v26, %v2437_v27 }
0x150d   :  { %2638 = vrot.lane.b32.xlu0 %v7745_v12, %s7222_s25  ;;  %2473 = vrot.lane.b32.xlu1 %v7748_v40, %s7221_s24 }
0x1511   :  { %2640 = vrot.lane.b32.xlu1 %v7748_v40, %s7220_s0 }
0x157f   :  { %v2474_v28 = vpop.permute.xlu1 %2473  ;;  %v2639_v0 = vpop.permute.xlu0 %2638 }
0x1580   :  { %6732 = vmatpush3.xpose.msk.msra.mxu0 %vm156_vm2, %v2474_v28 }
0x1581   :  { %6741 = vmatprep.subr.mxu0 %v7218_v11 }
0x1583   :  { %6734 = vmatmul.mubr.msk.f32.vlgmr.msra.gmra.mxu0 %vm156_vm2, %v7745_v12  ;;  %v2641_v29 = vpop.permute.xlu1 %2640 }
0x1584   :  { %6742 = vmatpush3.xpose.msk.msra.mxu0 %vm156_vm2, %v2641_v29  ;;  %6743 = vmatprep.mubr.msk.f32.mxu0 %vm7219_vm1, %v7218_v11 }
0x1585   :  { %6751 = vmatprep.subr.mxu0 %v7218_v11 }
0x1587   :  { %6744 = vmatmul.mubr.msk.f32.vlgmr.msra.gmra.mxu0 %vm156_vm2, %v2639_v0 }
0x1588   :  { %6753 = vmatprep.mubr.msk.f32.mxu0 %vm7219_vm1, %v7218_v11 }
0x1643   :  { %v2546_v3 = vpop.f32.mrf.mxu0 }
0x1644   :  { %v2547_v18 = vadd.f32 %v2546_v3, %v7394_v23 }
0x1645   :  { %v6735_v30 = vpop.f32.mrf.mxu0 }
0x1646   :  { %v2550_v31 = vsel %vm156_vm2, %v2547_v18, -inf }
0x1647   :  { %2551 = vmax.xlane.f32.xlu1 %v2550_v31  ;;  %v2712_v33 = vpop.f32.mrf.mxu0 }
0x1648   :  { %v2713_v34 = vadd.f32 %v2712_v33, %v7394_v23 }
0x1649   :  { %v6745_v35 = vpop.f32.mrf.mxu0 }
0x164a   :  { %v2716_v36 = vsel %vm156_vm2, %v2713_v34, -inf }
0x164b   :  { %2717 = vmax.xlane.f32.xlu0 %v2716_v36 }
0x1658   :  { %2467 = vrot.lane.b32.xlu1 %v2465_v37, %s7223_s1 }
0x16d0   :  { %v2552_v10 = vpop.xlane.xlu1 %2551 }
0x16d1   :  { %v2553_v41 = vsub.f32 %v2547_v18, %v2552_v10 }
0x16d3   :  { %v2554_v42 = vmul.f32 1.442695, %v2553_v41 }
0x16d4   :  { %v2718_v43 = vpop.xlane.xlu0 %2717  ;;  %v7776_v48 = vpop.permute.xlu1 %2467 }
0x16d5   :  { %7133 = vpow2.f32 %v2554_v42  ;;  %v2719_v21 = vsub.f32 %v2713_v34, %v2718_v43  ;;  %v7779_v49 = vadd.f32 %v7776_v48, %v2437_v27 }
0x16d7   :  { %v2720_v1 = vmul.f32 1.442695, %v2719_v21 }
0x16d9   :  { %7135 = vpow2.f32 %v2720_v1 }
0x16e2   :  { %v7134_v14 = vpop.eup %7133 }
0x16e3   :  { %v2556_v17 = vsel %vm156_vm2, %v7134_v14, 0.0 }
0x16e4   :  { %2557 = vadd.xlane.f32.xlu0 %v2556_v17 }
0x16e6   :  { %v7136_v45 = vpop.eup %7135 }
0x16e7   :  { %v2722_v46 = vsel %vm156_vm2, %v7136_v45, 0.0 }
0x16e8   :  { %2723 = vadd.xlane.f32.xlu1 %v2722_v46 }
0x16f9   :  { %2957 = vrot.lane.b32.xlu1 %v7745_v12, %s7226_s30 }
0x16fa   :  { %2562 = vrot.lane.b32.xlu0 %v7779_v49, %s7223_s1 }
0x16fe   :  { %2727 = vrot.lane.b32.xlu0 %v7779_v49, %s7224_s28 }
0x1702   :  { %2804 = vrot.lane.b32.xlu0 %v7694_v53, %s7217_s23 }
0x1706   :  { %2959 = vrot.lane.b32.xlu0 %v7748_v40, %s7225_s29 }
0x176d   :  { %v2558_v50 = vpop.xlane.xlu0 %2557 }
0x176e   :  { %7137 = vrcp.f32 %v2558_v50 }
0x1771   :  { %v2563_v56 = vpop.permute.xlu0 %2562  ;;  %v2724_v58 = vpop.xlane.xlu1 %2723 }
0x1772   :  { %7139 = vrcp.f32 %v2724_v58  ;;  %6737 = vmatpush3.msra.mxu1 %v2563_v56 }
0x1773   :  { %6746 = vmatprep.subr.mxu1 %v7218_v11 }
0x1775   :  { %v2728_v59 = vpop.permute.xlu0 %2727  ;;  %v2958_v20 = vpop.permute.xlu1 %2957 }
0x1779   :  { %v7792_v60 = vpop.permute.xlu0 %2804 }
0x177a   :  { %6752 = vmatpush3.msra.mxu0 %v7792_v60 }
0x177b   :  { %v7138_v47 = vpop.eup %7137  ;;  %6761 = vmatprep.subr.mxu0 %v7218_v11 }
0x177c   :  { %v2560_v53 = vmul.f32 %v7138_v47, %v7134_v14 }
0x177d   :  { %v2960_v15 = vpop.permute.xlu0 %2959 }
0x177e   :  { %6739 = vmatmul.mubr.msk.f32.vlgmr.msra.gmra.mxu1 %vm156_vm2, %v2560_v53 }
0x177f   :  { %v7140_v39 = vpop.eup %7139  ;;  %6747 = vmatpush3.msra.mxu1 %v2728_v59  ;;  %6748 = vmatprep.mubr.msk.f32.mxu1 %vm7219_vm1, %v7218_v11 }
0x1780   :  { %v2726_v62 = vmul.f32 %v7140_v39, %v7136_v45  ;;  %6756 = vmatprep.subr.mxu1 %v7218_v11  ;;  %v7846_v45 = vadd.f32 %v7736_v5, %v7742_v26 }
0x1782   :  { %6749 = vmatmul.mubr.msk.f32.vlgmr.msra.gmra.mxu1 %vm156_vm2, %v2726_v62 }
0x1783   :  { %6758 = vmatprep.mubr.msk.f32.mxu1 %vm7219_vm1, %v7218_v11 }
0x183e   :  { %v2634_v61 = vpop.f32.mrf.mxu1 }
0x1840   :  { %v6740_v4 = vpop.f32.mrf.mxu1 }
0x1842   :  { %v2799_v22 = vpop.f32.mrf.mxu1 }
0x1843   :  { %6754 = vmatmul.mubr.msk.f32.vlgmr.msra.gmra.mxu0 %vm156_vm2, %v2799_v22 }
0x1844   :  { %6762 = vmatpush3.xpose.msk.msra.mxu0 %vm156_vm2, %v2960_v15  ;;  %v6750_v19 = vpop.f32.mrf.mxu1  ;;  %6763 = vmatprep.mubr.msk.f32.mxu0 %vm7219_vm1, %v7218_v11 }
0x1845   :  { %6771 = vmatprep.subr.mxu0 %v7218_v11 }
0x1847   :  { %6764 = vmatmul.mubr.msk.f32.vlgmr.msra.gmra.mxu0 %vm156_vm2, %v2958_v20 }
0x1848   :  { %6773 = vmatprep.mubr.msk.f32.mxu0 %vm7219_vm1, %v7218_v11 }
0x1903   :  { %v7811_v24 = vpop.f32.mrf.mxu0 }
0x1905   :  { %v6755_v16 = vpop.f32.mrf.mxu0 }
0x1907   :  { %v3031_v27 = vpop.f32.mrf.mxu0 }
0x1908   :  { %v3032_v28 = vadd.f32 %v3031_v27, %v7394_v23 }
0x1909   :  { %v6765_v29 = vpop.f32.mrf.mxu0 }
0x190a   :  { %v3035_v0 = vsel %vm156_vm2, %v3032_v28, -inf }
0x190b   :  { %3036 = vmax.xlane.f32.xlu0 %v3035_v0 }
0x1921   :  { %2881 = vrot.lane.b32.xlu0 %v7703_v54, %s7217_s23 }
0x1925   :  { %3202 = vrot.lane.b32.xlu0 %v7748_v40, %s7228_s11 }
0x1929   :  { %3200 = vrot.lane.b32.xlu0 %v7745_v12, %s7229_s12 }
0x1994   :  { %v3037_v3 = vpop.xlane.xlu0 %3036 }
0x1995   :  { %v3038_v18 = vsub.f32 %v3032_v28, %v3037_v3 }
0x1997   :  { %v3039_v30 = vmul.f32 1.442695, %v3038_v18 }
0x1998   :  { %v7821_v31 = vpop.permute.xlu0 %2881 }
0x1999   :  { %7141 = vpow2.f32 %v3039_v30  ;;  %6757 = vmatpush3.msra.mxu1 %v7821_v31 }
0x199a   :  { %6759 = vmatmul.mubr.msk.f32.vlgmr.msra.gmra.mxu1 %vm156_vm2, %v2634_v61  ;;  %6766 = vmatprep.subr.mxu1 %v7218_v11 }
0x199b   :  { %6768 = vmatprep.mubr.msk.f32.mxu1 %vm7219_vm1, %v7218_v11 }
0x199c   :  { %v3203_v35 = vpop.permute.xlu0 %3202 }
0x19a0   :  { %v3201_v37 = vpop.permute.xlu0 %3200 }
0x19a6   :  { %v7142_v54 = vpop.eup %7141 }
0x19a7   :  { %v3041_v40 = vsel %vm156_vm2, %v7142_v54, 0.0 }
0x19a8   :  { %3042 = vadd.xlane.f32.xlu1 %v3041_v40 }
0x19b9   :  { %3046 = vrot.lane.b32.xlu1 %v7779_v49, %s7227_s10 }
0x1a31   :  { %v3043_v12 = vpop.xlane.xlu1 %3042 }
0x1a32   :  { %7143 = vrcp.f32 %v3043_v12 }
0x1a35   :  { %v3047_v33 = vpop.permute.xlu1 %3046 }
0x1a36   :  { %6767 = vmatpush3.msra.mxu1 %v3047_v33 }
0x1a37   :  { %6776 = vmatprep.subr.mxu1 %v7218_v11 }
0x1a3f   :  { %v7144_v34 = vpop.eup %7143 }
0x1a40   :  { %v3045_v36 = vmul.f32 %v7144_v34, %v7142_v54 }
0x1a42   :  { %6769 = vmatmul.mubr.msk.f32.vlgmr.msra.gmra.mxu1 %vm156_vm2, %v3045_v36 }
0x1a43   :  { %6777 = vmatpush3.xpose.msk.msra.mxu1 %vm156_vm2, %v3203_v35  ;;  %6778 = vmatprep.mubr.msk.f32.mxu1 %vm7219_vm1, %v7218_v11 }
0x1a44   :  { %6786 = vmatprep.subr.mxu1 %v7218_v11 }
0x1a46   :  { %6779 = vmatmul.mubr.msk.f32.vlgmr.msra.gmra.mxu1 %vm156_vm2, %v3201_v37 }
0x1a47   :  { %6788 = vmatprep.mubr.msk.f32.mxu1 %vm7219_vm1, %v7218_v11 }
0x1a5a   :  { %v2953_v10 = vpop.f32.mrf.mxu1 }
0x1a5b   :  { %v2954_v61 = vadd.f32 %v2953_v10, %v7811_v24  ;;  %v7892_v24 = vadd.f32 %v7736_v5, %v7776_v48 }
0x1a5c   :  { %v6760_v41 = vpop.f32.mrf.mxu1 }
0x1b02   :  { %v3118_v42 = vpop.f32.mrf.mxu1 }
0x1b04   :  { %v6770_v43 = vpop.f32.mrf.mxu1 }
0x1b06   :  { %v3274_v21 = vpop.f32.mrf.mxu1 }
0x1b07   :  { %v3275_v1 = vadd.f32 %v3274_v21, %v7394_v23  ;;  %v7854_v23 = vadd.f32 %v7736_v5, %v7740_v6 }
0x1b08   :  { %v6780_v14 = vpop.f32.mrf.mxu1 }
0x1b09   :  { %v3278_v17 = vsel %vm156_vm2, %v3275_v1, -inf }
0x1b0a   :  { %3279 = vmax.xlane.f32.xlu0 %v3278_v17 }
0x1b20   :  { %3123 = vrot.lane.b32.xlu0 %v7687_v52, %s7217_s23 }
0x1b24   :  { %3444 = vrot.lane.b32.xlu0 %v7846_v45, %s7221_s24 }
0x1b28   :  { %3611 = vrot.lane.b32.xlu0 %v7846_v45, %s7220_s0 }
0x1b2c   :  { %3609 = vrot.lane.b32.xlu0 %v7854_v23, %s7222_s25 }
0x1b93   :  { %v3280_v46 = vpop.xlane.xlu0 %3279 }
0x1b94   :  { %v3281_v50 = vsub.f32 %v3275_v1, %v3280_v46 }
0x1b96   :  { %v3282_v52 = vmul.f32 1.442695, %v3281_v50 }
0x1b97   :  { %v7858_v56 = vpop.permute.xlu0 %3123 }
0x1b98   :  { %7145 = vpow2.f32 %v3282_v52  ;;  %6772 = vmatpush3.msra.mxu0 %v7858_v56 }
0x1b99   :  { %6774 = vmatmul.mubr.msk.f32.vlgmr.msra.gmra.mxu0 %vm156_vm2, %v3118_v42  ;;  %6781 = vmatprep.subr.mxu0 %v7218_v11 }
0x1b9a   :  { %6783 = vmatprep.mubr.msk.f32.mxu0 %vm7219_vm1, %v7218_v11 }
0x1b9b   :  { %v3445_v47 = vpop.permute.xlu0 %3444 }
0x1b9f   :  { %v3612_v62 = vpop.permute.xlu0 %3611 }
0x1ba5   :  { %v7146_v6 = vpop.eup %7145 }
0x1ba6   :  { %v3284_v26 = vsel %vm156_vm2, %v7146_v6, 0.0 }
0x1ba7   :  { %3285 = vadd.xlane.f32.xlu1 %v3284_v26 }
0x1bb8   :  { %3289 = vrot.lane.b32.xlu1 %v7779_v49, %s7230_s13  ;;  %v3610_v49 = vpop.permute.xlu0 %3609 }
0x1c30   :  { %v3286_v58 = vpop.xlane.xlu1 %3285 }
0x1c31   :  { %7147 = vrcp.f32 %v3286_v58 }
0x1c34   :  { %v3290_v59 = vpop.permute.xlu1 %3289 }
0x1c35   :  { %6782 = vmatpush3.msra.mxu0 %v3290_v59 }
0x1c36   :  { %6791 = vmatprep.subr.mxu0 %v7218_v11 }
0x1c3e   :  { %v7148_v53 = vpop.eup %7147 }
0x1c3f   :  { %v3288_v39 = vmul.f32 %v7148_v53, %v7146_v6 }
0x1c41   :  { %6784 = vmatmul.mubr.msk.f32.vlgmr.msra.gmra.mxu0 %vm156_vm2, %v3288_v39 }
0x1c42   :  { %6792 = vmatpush3.xpose.msk.msra.mxu0 %vm156_vm2, %v3445_v47  ;;  %6793 = vmatprep.mubr.msk.f32.mxu0 %vm7219_vm1, %v7218_v11 }
0x1c43   :  { %6801 = vmatprep.subr.mxu0 %v7218_v11 }
0x1c45   :  { %6794 = vmatmul.mubr.msk.f32.vlgmr.msra.gmra.mxu0 %vm156_vm2, %v7854_v23 }
0x1c46   :  { %6802 = vmatpush3.xpose.msk.msra.mxu0 %vm156_vm2, %v3612_v62  ;;  %6803 = vmatprep.mubr.msk.f32.mxu0 %vm7219_vm1, %v7218_v11 }
0x1c47   :  { %6811 = vmatprep.subr.mxu0 %v7218_v11 }
0x1c49   :  { %6804 = vmatmul.mubr.msk.f32.vlgmr.msra.gmra.mxu0 %vm156_vm2, %v3610_v49 }
0x1c4a   :  { %6812 = vmatpush3.msra.mxu0 %v7792_v60  ;;  %6813 = vmatprep.mubr.msk.f32.mxu0 %vm7219_vm1, %v7218_v11 }
0x1c4b   :  { %6821 = vmatprep.subr.mxu0 %v7218_v11 }
0x1c59   :  { %v3195_v4 = vpop.f32.mrf.mxu0 }
0x1c5a   :  { %v3199_v22 = vadd.f32 %v3195_v4, %v2954_v61 }
0x1c5b   :  { %v6775_v15 = vpop.f32.mrf.mxu0 }
0x1d01   :  { %v3361_v19 = vpop.f32.mrf.mxu0 }
0x1d03   :  { %v6785_v20 = vpop.f32.mrf.mxu0 }
0x1d05   :  { %v3517_v16 = vpop.f32.mrf.mxu0 }
0x1d06   :  { %v3518_v27 = vadd.f32 %v3517_v16, %v7520_v57 }
0x1d07   :  { %v6795_v28 = vpop.f32.mrf.mxu0 }
0x1d08   :  { %v3521_v29 = vsel %vm156_vm2, %v3518_v27, -inf }
0x1d09   :  { %3522 = vmax.xlane.f32.xlu1 %v3521_v29  ;;  %v3683_v60 = vpop.f32.mrf.mxu0 }
0x1d0a   :  { %v3684_v0 = vadd.f32 %v3683_v60, %v7520_v57 }
0x1d0b   :  { %v6805_v3 = vpop.f32.mrf.mxu0 }
0x1d0c   :  { %v3687_v18 = vsel %vm156_vm2, %v3684_v0, -inf }
0x1d0d   :  { %3688 = vmax.xlane.f32.xlu0 %v3687_v18 }
0x1d1a   :  { %3533 = vrot.lane.b32.xlu1 %v7892_v24, %s7223_s1 }
0x1d92   :  { %v3523_v30 = vpop.xlane.xlu1 %3522 }
0x1d93   :  { %v3524_v54 = vsub.f32 %v3518_v27, %v3523_v30 }
0x1d95   :  { %v3525_v40 = vmul.f32 1.442695, %v3524_v54 }
0x1d96   :  { %v3689_v12 = vpop.xlane.xlu0 %3688  ;;  %v3534_v5 = vpop.permute.xlu1 %3533 }
0x1d97   :  { %7149 = vpow2.f32 %v3525_v40  ;;  %v3690_v33 = vsub.f32 %v3684_v0, %v3689_v12 }
0x1d99   :  { %v3691_v34 = vmul.f32 1.442695, %v3690_v33 }
0x1d9b   :  { %7151 = vpow2.f32 %v3691_v34 }
0x1da4   :  { %v7150_v35 = vpop.eup %7149 }
0x1da5   :  { %v3527_v36 = vsel %vm156_vm2, %v7150_v35, 0.0 }
0x1da6   :  { %3528 = vadd.xlane.f32.xlu0 %v3527_v36 }
0x1da8   :  { %v7152_v37 = vpop.eup %7151 }
0x1da9   :  { %v3693_v10 = vsel %vm156_vm2, %v7152_v37, 0.0 }
0x1daa   :  { %3694 = vadd.xlane.f32.xlu1 %v3693_v10 }
0x1dbb   :  { %3698 = vrot.lane.b32.xlu1 %v7892_v24, %s7224_s28 }
0x1dbc   :  { %3366 = vrot.lane.b32.xlu0 %v7682_v51, %s7217_s23  ;;  %s7238_s23 = smov [#allocation2]  }
0x1dbd   :  { %s6187_s0 = sshll.u32 %s7238_s23, 4  ;;  %s6188_s0 = int_to_ptr.vmem [resolvable:$true] %s6187_s0 }
0x1dbe   :  { %p7178_p1 = scmp.lt.s32.totalorder %s6188_s0, %s6188_s0 }
0x1dbf   :  { %3920 = vrot.lane.b32.xlu1 %v7854_v23, %s7226_s30 }
0x1dc0   :  { %3922 = vrot.lane.b32.xlu0 %v7846_v45, %s7225_s29 }
0x1e2f   :  { %v3529_v48 = vpop.xlane.xlu0 %3528 }
0x1e30   :  { %7153 = vrcp.f32 %v3529_v48 }
0x1e33   :  { %v3695_v41 = vpop.xlane.xlu1 %3694  ;;  %v7906_v42 = vpop.permute.xlu0 %3366 }
0x1e34   :  { %7155 = vrcp.f32 %v3695_v41  ;;  %6787 = vmatpush3.msra.mxu1 %v7906_v42 }
0x1e35   :  { %6789 = vmatmul.mubr.msk.f32.vlgmr.msra.gmra.mxu1 %vm156_vm2, %v3361_v19  ;;  %6796 = vmatprep.subr.mxu1 %v7218_v11 }
0x1e36   :  { %6797 = vmatpush3.msra.mxu1 %v3534_v5  ;;  %6798 = vmatprep.mubr.msk.f32.mxu1 %vm7219_vm1, %v7218_v11 }
0x1e37   :  { %6806 = vmatprep.subr.mxu1 %v7218_v11  ;;  %v3699_v21 = vpop.permute.xlu1 %3698  ;;  %v3923_v58 = vpop.permute.xlu0 %3922 }
0x1e3b   :  { %v3921_v59 = vpop.permute.xlu1 %3920 }
0x1e3d   :  { %v7154_v51 = vpop.eup %7153 }
0x1e3e   :  { %v3531_v43 = vmul.f32 %v7154_v51, %v7150_v35 }
0x1e40   :  { %6799 = vmatmul.mubr.msk.f32.vlgmr.msra.gmra.mxu1 %vm156_vm2, %v3531_v43 }
0x1e41   :  { %v7156_v1 = vpop.eup %7155  ;;  %6807 = vmatpush3.msra.mxu1 %v3699_v21  ;;  %6808 = vmatprep.mubr.msk.f32.mxu1 %vm7219_vm1, %v7218_v11 }
0x1e42   :  { %6816 = vmatprep.subr.mxu1 %v7218_v11  ;;  %v3697_v14 = vmul.f32 %v7156_v1, %v7152_v37 }
0x1e44   :  { %6809 = vmatmul.mubr.msk.f32.vlgmr.msra.gmra.mxu1 %vm156_vm2, %v3697_v14 }
0x1e45   :  { %6817 = vmatpush3.msra.mxu1 %v7821_v31  ;;  %6818 = vmatprep.mubr.msk.f32.mxu1 %vm7219_vm1, %v7218_v11 }
0x1e46   :  { %6826 = vmatprep.subr.mxu1 %v7218_v11 }
0x1ef5   :  { %v3438_v17 = vpop.f32.mrf.mxu1 }
0x1ef6   :  { %v3442_v46 = vadd.f32 %v3438_v17, %v3199_v22 }
0x1ef7   :  { %v6790_v50 = vpop.f32.mrf.mxu1 }
0x1f00   :  { %v3605_v52 = vpop.f32.mrf.mxu1 }
0x1f01   :  { %6819 = vmatmul.mubr.msk.f32.vlgmr.msra.gmra.mxu1 %vm156_vm2, %v3605_v52 }
0x1f02   :  { %v6800_v6 = vpop.f32.mrf.mxu1  ;;  %6828 = vmatprep.mubr.msk.f32.mxu1 %vm7219_vm1, %v7218_v11 }
0x1f04   :  { %v3770_v26 = vpop.f32.mrf.mxu1 }
0x1f05   :  { %6814 = vmatmul.mubr.msk.f32.vlgmr.msra.gmra.mxu0 %vm156_vm2, %v3770_v26 }
0x1f06   :  { %6822 = vmatpush3.xpose.msk.msra.mxu0 %vm156_vm2, %v3923_v58  ;;  %v6810_v31 = vpop.f32.mrf.mxu1  ;;  %6823 = vmatprep.mubr.msk.f32.mxu0 %vm7219_vm1, %v7218_v11 }
0x1f07   :  { %6831 = vmatprep.subr.mxu0 %v7218_v11 }
0x1f09   :  { %6824 = vmatmul.mubr.msk.f32.vlgmr.msra.gmra.mxu0 %vm156_vm2, %v3921_v59 }
0x1f0a   :  { %6832 = vmatpush3.msra.mxu0 %v7858_v56  ;;  %6833 = vmatprep.mubr.msk.f32.mxu0 %vm7219_vm1, %v7218_v11 }
0x1f0b   :  { %6841 = vmatprep.subr.mxu0 %v7218_v11 }
0x1fc1   :  { %v3916_v47 = vpop.f32.mrf.mxu1 }
0x1fc3   :  { %v6820_v53 = vpop.f32.mrf.mxu1 }
0x1fc5   :  { %v3843_v39 = vpop.f32.mrf.mxu0 }
0x1fc6   :  { %v3917_v62 = vadd.f32 %v3916_v47, %v3843_v39 }
0x1fc7   :  { %v6815_v49 = vpop.f32.mrf.mxu0 }
0x1fc9   :  { %v3994_v61 = vpop.f32.mrf.mxu0 }
0x1fca   :  { %v3995_v4 = vadd.f32 %v3994_v61, %v7520_v57 }
0x1fcb   :  { %v6825_v22 = vpop.f32.mrf.mxu0 }
0x1fcc   :  { %v3998_v15 = vsel %vm156_vm2, %v3995_v4, -inf }
0x1fcd   :  { %3999 = vmax.xlane.f32.xlu0 %v3998_v15 }
0x1fe3   :  { %4009 = vrot.lane.b32.xlu0 %v7892_v24, %s7227_s10 }
0x1fe7   :  { %4159 = vrot.lane.b32.xlu0 %v7854_v23, %s7229_s12 }
0x2056   :  { %v4000_v56 = vpop.xlane.xlu0 %3999 }
0x2057   :  { %v4001_v19 = vsub.f32 %v3995_v4, %v4000_v56 }
0x2059   :  { %v4002_v20 = vmul.f32 1.442695, %v4001_v19 }
0x205a   :  { %v4010_v16 = vpop.permute.xlu0 %4009 }
0x205b   :  { %7157 = vpow2.f32 %v4002_v20  ;;  %6827 = vmatpush3.msra.mxu1 %v4010_v16  ;;  %v4441_v16 = vrot.slane %v7710_v55, %v7616_v44 }
0x205c   :  { %6836 = vmatprep.subr.mxu1 %v7218_v11 }
0x205e   :  { %v4160_v3 = vpop.permute.xlu0 %4159 }
0x2068   :  { %v7158_v27 = vpop.eup %7157 }
0x2069   :  { %v4004_v28 = vsel %vm156_vm2, %v7158_v27, 0.0 }
0x206a   :  { %4005 = vadd.xlane.f32.xlu1 %v4004_v28 }
0x207b   :  { %4161 = vrot.lane.b32.xlu1 %v7846_v45, %s7228_s11  ;;  %v4401_v45 = vrot.slane %v7710_v55, %v7592_v38 }
0x207d   :  { %v4402_v54 = vadd.f32 %v4401_v45, %v3442_v46 }
0x207f   :  { %v4404_v35 = vadd.f32 %v4402_v54, %v7726_v7 }
0x2081   :  { %v4406_v36 = vsel %vm41_vm0, %v4404_v35, 0.0 }
0x20f3   :  { %v4006_v29 = vpop.xlane.xlu1 %4005 }
0x20f4   :  { %7159 = vrcp.f32 %v4006_v29  ;;  %v6296_v29 = vld [vmem:[%s8389_s4 + $0x40] sm:$0xff] }
0x20f7   :  { %v4162_v23 = vpop.permute.xlu1 %4161 }
0x2101   :  { %v7160_v60 = vpop.eup %7159 }
0x2102   :  { %v4008_v0 = vmul.f32 %v7160_v60, %v7158_v27  ;;  %v6295_v60 = vld [vmem:[%s8389_s4 + $0x38] sm:$0xff] }
0x2104   :  { %6829 = vmatmul.mubr.msk.f32.vlgmr.msra.gmra.mxu1 %vm156_vm2, %v4008_v0  ;;  %v6294_v0 = vld [vmem:[%s8389_s4 + $0x30] sm:$0xff] }
0x2105   :  { %6837 = vmatpush3.xpose.msk.msra.mxu1 %vm156_vm2, %v4162_v23  ;;  %6838 = vmatprep.mubr.msk.f32.mxu1 %vm7219_vm1, %v7218_v11  ;;  %v6293_v23 = vld [vmem:[%s8389_s4 + $0x28] sm:$0xff] }
0x2106   :  { %6846 = vmatprep.subr.mxu1 %v7218_v11 }
0x2108   :  { %6839 = vmatmul.mubr.msk.f32.vlgmr.msra.gmra.mxu1 %vm156_vm2, %v4160_v3  ;;  %v6308_v3 = vld [vmem:[%s8390_s5 + $0x80] sm:$0xff] }
0x2109   :  { %6847 = vmatpush3.msra.mxu1 %v7906_v42  ;;  %6848 = vmatprep.mubr.msk.f32.mxu1 %vm7219_vm1, %v7218_v11 }
0x210a   :  { %6862 = vmatprep.subr.mxu1 %v6308_v3 }
0x21c4   :  { %v4081_v18 = vpop.f32.mrf.mxu1 }
0x21c5   :  { %6834 = vmatmul.mubr.msk.f32.vlgmr.msra.gmra.mxu0 %vm156_vm2, %v4081_v18  ;;  %v6306_v18 = vld [vmem:[%s8390_s5 + $0x70] sm:$0xff] }
0x21c6   :  { %v6830_v30 = vpop.f32.mrf.mxu1  ;;  %6843 = vmatprep.mubr.msk.f32.mxu0 %vm7219_vm1, %v7218_v11 }
0x21c7   :  { %v6305_v30 = vld [vmem:[%s8390_s5 + $0x68] sm:$0xff] }
0x21c8   :  { %v4233_v40 = vpop.f32.mrf.mxu1 }
0x21c9   :  { %v4234_v12 = vadd.f32 %v4233_v40, %v7520_v57 }
0x21ca   :  { %v6840_v33 = vpop.f32.mrf.mxu1 }
0x21cb   :  { %v4237_v34 = vsel %vm156_vm2, %v4234_v12, -inf }
0x21cc   :  { %4238 = vmax.xlane.f32.xlu1 %v4237_v34 }
0x21d0   :  { %4407 = vadd.xlane.f32.xlu1 %v4406_v36 }
0x2255   :  { %v4239_v37 = vpop.xlane.xlu1 %4238 }
0x2256   :  { %v4240_v10 = vsub.f32 %v4234_v12, %v4239_v37  ;;  %v6304_v37 = vld [vmem:[%s8390_s5 + $0x60] sm:$0xff] }
0x2258   :  { %v4241_v5 = vmul.f32 1.442695, %v4240_v10  ;;  %v6303_v10 = vld [vmem:[%s8390_s5 + $0x58] sm:$0xff] }
0x2259   :  { %v4408_v46 = vpop.xlane.xlu1 %4407 }
0x225a   :  { %7161 = vpow2.f32 %v4241_v5  ;;  %v4412_v50 = vmul.f32 0.03125, %v4408_v46  ;;  %v6302_v5 = vld [vmem:[%s8390_s5 + $0x50] sm:$0xff] }
0x225c   :  { %v4414_v26 = vsub.f32 %v4404_v35, %v4412_v50 }
0x225e   :  { %v4416_v47 = vmul.f32 %v4414_v26, %v4414_v26 }
0x2260   :  { %v4418_v53 = vsel %vm41_vm0, %v4416_v47, 0.0 }
0x2267   :  { %v7162_v48 = vpop.eup %7161 }
0x2268   :  { %v4243_v41 = vsel %vm156_vm2, %v7162_v48, 0.0 }
0x2269   :  { %4244 = vadd.xlane.f32.xlu0 %v4243_v41  ;;  %v6298_v41 = vld [vmem:[%s8389_s4 + $0x48] ss:$0 sm:$0xff]  ;;  %s7173_s4 = scalar_lea.vmem %s6188_s0, 256 }
0x226a   :  { %p7174_p0 = scmp.ne.s32.totalorder %s6188_s0, %s7173_s4  ;;  %p7179_p2 = scmp.lt.s32.totalorder %s7173_s4, %s7173_s4 }
0x226c   :  { %p7180_p3 = por %p7179_p2, %p7178_p1 }
0x226e   :  { %p7181_p4 = pnand %p7180_p3, %p7174_p0 }
0x227f   :  { %4248 = vrot.lane.b32.xlu0 %v7892_v24, %s7230_s13 }
0x2285   :  { %v4154_v57 = vpop.f32.mrf.mxu0 }
0x2286   :  { %v4158_v42 = vadd.f32 %v4154_v57, %v3917_v62 }
0x2287   :  { %v6835_v51 = vpop.f32.mrf.mxu0 }
0x22f2   :  { %v4245_v43 = vpop.xlane.xlu0 %4244 }
0x22f3   :  { %7163 = vrcp.f32 %v4245_v43 }
0x22f6   :  { %v4249_v7 = vpop.permute.xlu0 %4248 }
0x22f7   :  { %6842 = vmatpush3.msra.mxu0 %v4249_v7 }
0x22f8   :  { %6851 = vmatprep.subr.mxu0 %v6296_v29 }
0x2300   :  { %v7164_v21 = vpop.eup %7163 }
0x2301   :  { %v4247_v1 = vmul.f32 %v7164_v21, %v7162_v48  ;;  %v6301_v48 = vld [vmem:[%s8390_s5 + $0x48] sm:$0xff] }
0x2303   :  { %6844 = vmatmul.mubr.msk.f32.vlgmr.msra.gmra.mxu0 %vm156_vm2, %v4247_v1 }
0x2304   :  { %6852 = vmatpush3.msra.mxu0 %v6296_v29 }
0x2305   :  { %6853 = vmatprep.subr.mxu0 %v6295_v60 }
0x2306   :  { %6854 = vmatpush3.msra.mxu0 %v6295_v60  ;;  %v4663_v60 = vrot.slane %v7710_v55, %v7717_v63 }
0x2307   :  { %6855 = vmatprep.subr.mxu0 %v6294_v0 }
0x2308   :  { %6856 = vmatpush3.msra.mxu0 %v6294_v0 }
0x2309   :  { %6857 = vmatprep.subr.mxu0 %v6293_v23 }
0x230a   :  { %6858 = vmatpush3.msra.mxu0 %v6293_v23 }
0x23c3   :  { %v4320_v14 = vpop.f32.mrf.mxu0 }
0x23c4   :  { %6849 = vmatmul.mubr.msk.f32.vlgmr.msra.gmra.mxu1 %vm156_vm2, %v4320_v14  ;;  %v6310_v14 = vld [vmem:[%s8390_s5 + $0x88] ss:$0 sm:$0xff] }
0x23c5   :  { %v6845_v17 = vpop.f32.mrf.mxu0  ;;  %6863 = vmatpush3.msra.mxu1 %v6308_v3  ;;  %v4669_v3 = vrot.slane %v7710_v55, %v7720_v2 }
0x2484   :  { %v4393_v52 = vpop.f32.mrf.mxu1 }
0x2485   :  { %v4397_v6 = vadd.f32 %v4393_v52, %v4158_v42 }
0x2486   :  { %v6850_v24 = vpop.f32.mrf.mxu1 }
0x2487   :  { %v4403_v58 = vadd.f32 %v4401_v45, %v4397_v6  ;;  %v6307_v45 = vld [vmem:[%s8390_s5 + $0x78] sm:$0xff] }
0x2488   :  { %6864 = vmatprep.subr.mxu1 %v6307_v45 }
0x2489   :  { %v4405_v31 = vadd.f32 %v4403_v58, %v7730_v25  ;;  %v4435_v25 = vrot.slane %v7710_v55, %v7613_v9  ;;  %6865 = vmatpush3.msra.mxu1 %v6307_v45  ;;  %v8060_v55 = vld [vmem:[%s8392_s7 + $0x18] sm:$0xff] }
0x248a   :  { %6866 = vmatprep.subr.mxu1 %v6306_v18 }
0x248b   :  { %v4409_v59 = vsel %vm41_vm0, %v4405_v31, 0.0  ;;  %6867 = vmatpush3.msra.mxu1 %v6306_v18 }
0x248c   :  { %4410 = vadd.xlane.f32.xlu1 %v4409_v59  ;;  %6868 = vmatprep.subr.mxu1 %v6305_v30 }
0x248d   :  { %6869 = vmatpush3.msra.mxu1 %v6305_v30 }
0x248e   :  { %6870 = vmatprep.subr.mxu1 %v6304_v37 }
0x248f   :  { %6871 = vmatpush3.msra.mxu1 %v6304_v37  ;;  %v6313_v37 = vld [vmem:[%s8391_s6 + $0x20] ss:$0 sm:$0xff] }
0x2490   :  { %4419 = vadd.xlane.f32.xlu1 %v4418_v53  ;;  %6872 = vmatprep.subr.mxu1 %v6303_v10 }
0x2491   :  { %6873 = vmatpush3.msra.mxu1 %v6303_v10 }
0x2492   :  { %6874 = vmatprep.subr.mxu1 %v6302_v5 }
0x2493   :  { %6875 = vmatpush3.msra.mxu1 %v6302_v5 }
0x2494   :  { %6876 = vmatprep.subr.mxu1 %v6301_v48 }
0x2495   :  { %6877 = vmatpush3.msra.mxu1 %v6301_v48 }
0x2496   :  { %6903 = vmatprep.subr.mxu1 %v7218_v11 }
0x2515   :  { %v4411_v39 = vpop.xlane.xlu1 %4410 }
0x2516   :  { %v4413_v62 = vmul.f32 0.03125, %v4411_v39 }
0x2518   :  { %v4415_v49 = vsub.f32 %v4405_v31, %v4413_v62 }
0x2519   :  { %v4420_v61 = vpop.xlane.xlu1 %4419 }
0x251a   :  { %v4424_v4 = vmul.f32 0.03125, %v4420_v61  ;;  %v4417_v22 = vmul.f32 %v4415_v49, %v4415_v49 }
0x251c   :  { %v4426_v15 = vadd.f32 1e-05, %v4424_v4  ;;  %v4421_v56 = vsel %vm41_vm0, %v4417_v22, 0.0  ;;  %v4677_v22 = vld [vmem:[%s8391_s6 + $0x18] sm:$0xff] }
0x251d   :  { %4422 = vadd.xlane.f32.xlu1 %v4421_v56  ;;  %6881 = vmatprep.subr.mxu0 %v4677_v22  ;;  %v4675_v56 = vld [vmem:[%s8391_s6 + $0x8] sm:$0xff] }
0x251e   :  { %7165 = vrsqrt.f32 %v4426_v15  ;;  %v4676_v15 = vld [vmem:[%s8391_s6 + $0x10] sm:$0xff] }
0x252b   :  { %v7166_v19 = vpop.eup %7165 }
0x252c   :  { %v4430_v20 = vmul.f32 %v7166_v19, %v4414_v26 }
0x252e   :  { %v4436_v27 = vmul.f32 %v4435_v25, %v4430_v20 }
0x2530   :  { %v7977_v28 = vadd.f32 %v4441_v16, %v4436_v27 }
0x2532   :  { %6859 = vmatprep.mubr.msk.f32.mxu0 %vm41_vm0, %v7977_v28 }
0x25a6   :  { %v4423_v54 = vpop.xlane.xlu1 %4422 }
0x25a7   :  { %v4425_v40 = vmul.f32 0.03125, %v4423_v54 }
0x25a9   :  { %v4427_v12 = vadd.f32 1e-05, %v4425_v40 }
0x25ab   :  { %7167 = vrsqrt.f32 %v4427_v12 }
0x25b8   :  { %v7168_v33 = vpop.eup %7167 }
0x25b9   :  { %v4431_v34 = vmul.f32 %v7168_v33, %v4415_v49  ;;  %v8065_v33 = vld [vmem:[%s8392_s7 + $0x10] sm:$0xff] }
0x25bb   :  { %v4437_v35 = vmul.f32 %v4435_v25, %v4431_v34  ;;  %v4674_v25 = vld [vmem:[%s8391_s6] sm:$0xff]  ;;  %v8078_v34 = vld [vmem:[%s8392_s7 + $0x8] sm:$0xff] }
0x25bd   :  { %v4443_v36 = vadd.f32 %v4441_v16, %v4437_v35  ;;  %v8083_v35 = vld [vmem:[%s8392_s7] sm:$0xff] }
0x25bf   :  { %6860 = vmatmul.mubr.msk.f32.vlgmr.msra.gmra.mxu0 %vm41_vm0, %v4443_v36 }
0x25c0   :  { %6882 = vmatpush3.msra.mxu0 %v4677_v22 }
0x25c1   :  { %6883 = vmatprep.subr.mxu0 %v4676_v15 }
0x25c2   :  { %6884 = vmatpush3.msra.mxu0 %v4676_v15 }
0x25c3   :  { %6885 = vmatprep.subr.mxu0 %v4675_v56 }
0x25c4   :  { %6886 = vmatpush3.msra.mxu0 %v4675_v56 }
0x25c5   :  { %6887 = vmatprep.subr.mxu0 %v4674_v25 }
0x25c6   :  { %6888 = vmatpush3.msra.mxu0 %v4674_v25 }
0x25c7   :  { %6892 = vmatprep.subr.mxu0 %v7218_v11 }
0x267f   :  { %v6861_v57 = vpop.f32.mrf.mxu0 }
0x2680   :  { %v4532_v42 = vadd.f32 %v6861_v57, %v6298_v41 }
0x2681   :  { %v4526_v51 = vpop.f32.mrf.mxu0 }
0x2682   :  { %v4527_v43 = vadd.f32 %v6298_v41, %v4526_v51  ;;  %v4536_v21 = vmax.f32 %v4532_v42, 0.0 }
0x2684   :  { %v4535_v7 = vmax.f32 %v4527_v43, 0.0 }
0x2686   :  { %6878 = vmatprep.mubr.msk.f32.mxu1 %vm2236_vm3, %v4535_v7 }
0x2687   :  { %6879 = vmatmul.mubr.msk.f32.vlgmr.msra.gmra.mxu1 %vm2236_vm3, %v4536_v21 }
0x2688   :  { %6911 = vmatprep.mubr.msk.f32.mxu1 %vm7219_vm1, %v7218_v11  ;;  %6904 = vmatpush3.msra.mxu1 %v8060_v55 }
0x2689   :  { %6905 = vmatprep.subr.mxu1 %v7218_v11 }
0x268a   :  { %6906 = vmatpush3.msra.mxu1 %v8065_v33 }
0x268b   :  { %6907 = vmatprep.subr.mxu1 %v7218_v11 }
0x268c   :  { %6908 = vmatpush3.msra.mxu1 %v8078_v34 }
0x268d   :  { %6909 = vmatprep.subr.mxu1 %v7218_v11 }
0x268e   :  { %6910 = vmatpush3.msra.mxu1 %v8083_v35 }
0x268f   :  { %6925 = vmatprep.subr.mxu1 %v7218_v11 }
0x2747   :  { %v6880_v1 = vpop.f32.mrf.mxu1 }
0x2748   :  { %v4629_v46 = vadd.f32 %v6880_v1, %v6310_v14 }
0x2749   :  { %v4623_v17 = vpop.f32.mrf.mxu1 }
0x274a   :  { %v4624_v50 = vadd.f32 %v6310_v14, %v4623_v17  ;;  %v4633_v6 = vadd.f32 %v4629_v46, %v4443_v36 }
0x274c   :  { %v4632_v52 = vadd.f32 %v4624_v50, %v7977_v28  ;;  %v4637_v26 = vsel %vm41_vm0, %v4633_v6, 0.0 }
0x274e   :  { %v4634_v24 = vsel %vm41_vm0, %v4632_v52, 0.0 }
0x274f   :  { %4635 = vadd.xlane.f32.xlu1 %v4634_v24 }
0x2753   :  { %4638 = vadd.xlane.f32.xlu1 %v4637_v26 }
0x27d8   :  { %v4636_v58 = vpop.xlane.xlu1 %4635 }
0x27d9   :  { %v4640_v31 = vmul.f32 0.03125, %v4636_v58 }
0x27db   :  { %v4642_v59 = vsub.f32 %v4632_v52, %v4640_v31 }
0x27dc   :  { %v4639_v47 = vpop.xlane.xlu1 %4638 }
0x27dd   :  { %v4641_v53 = vmul.f32 0.03125, %v4639_v47  ;;  %v4644_v39 = vmul.f32 %v4642_v59, %v4642_v59 }
0x27df   :  { %v4643_v62 = vsub.f32 %v4633_v6, %v4641_v53  ;;  %v4646_v49 = vsel %vm41_vm0, %v4644_v39, 0.0 }
0x27e0   :  { %4647 = vadd.xlane.f32.xlu0 %v4646_v49 }
0x27e1   :  { %v4645_v61 = vmul.f32 %v4643_v62, %v4643_v62 }
0x27e3   :  { %v4649_v4 = vsel %vm41_vm0, %v4645_v61, 0.0 }
0x27e4   :  { %4650 = vadd.xlane.f32.xlu1 %v4649_v4 }
0x2869   :  { %v4648_v19 = vpop.xlane.xlu0 %4647 }
0x286a   :  { %v4652_v20 = vmul.f32 0.03125, %v4648_v19 }
0x286c   :  { %v4654_v16 = vadd.f32 1e-05, %v4652_v20 }
0x286d   :  { %v4651_v27 = vpop.xlane.xlu1 %4650 }
0x286e   :  { %7169 = vrsqrt.f32 %v4654_v16  ;;  %v4653_v28 = vmul.f32 0.03125, %v4651_v27 }
0x2870   :  { %v4655_v29 = vadd.f32 1e-05, %v4653_v28 }
0x2872   :  { %7171 = vrsqrt.f32 %v4655_v29 }
0x287b   :  { %v7170_v0 = vpop.eup %7169 }
0x287c   :  { %v4658_v23 = vmul.f32 %v7170_v0, %v4642_v59 }
0x287e   :  { %v4664_v45 = vmul.f32 %v4663_v60, %v4658_v23 }
0x287f   :  { %v7172_v18 = vpop.eup %7171 }
0x2880   :  { %v4659_v30 = vmul.f32 %v7172_v18, %v4643_v62  ;;  %v4670_v54 = vadd.f32 %v4669_v3, %v4664_v45 }
0x2882   :  { %v4665_v40 = vmul.f32 %v4663_v60, %v4659_v30  ;;  %6889 = vmatprep.mubr.msk.f32.mxu0 %vm41_vm0, %v4670_v54  ;;  %4672 = vst.msk [vmem:[#allocation2] sm:$0xff] %vm41_vm0, %v4670_v54 }
0x2884   :  { %v4671_v12 = vadd.f32 %v4669_v3, %v4665_v40 }
0x2886   :  { %4673 = vst.msk [vmem:[#allocation2 + $0x8] sm:$0xff] %vm41_vm0, %v4671_v12  ;;  %6890 = vmatmul.mubr.msk.f32.vlgmr.msra.gmra.mxu0 %vm41_vm0, %v4671_v12 }
0x2887   :  { %6900 = vmatprep.mubr.msk.f32.mxu0 %vm7219_vm1, %v7218_v11  ;;  %6893 = vmatpush3.msra.mxu0 %v8060_v55 }
0x2888   :  { %6894 = vmatprep.subr.mxu0 %v7218_v11 }
0x2889   :  { %6895 = vmatpush3.msra.mxu0 %v8065_v33 }
0x288a   :  { %6896 = vmatprep.subr.mxu0 %v7218_v11 }
0x288b   :  { %6897 = vmatpush3.msra.mxu0 %v8078_v34 }
0x288c   :  { %6898 = vmatprep.subr.mxu0 %v7218_v11 }
0x288d   :  { %6899 = vmatpush3.msra.mxu0 %v8083_v35 }
0x288e   :  { %6914 = vmatprep.subr.mxu0 %v7218_v11 }
0x2946   :  { %v6891_v36 = vpop.f32.mrf.mxu0 }
0x2947   :  { %v8098_v48 = vadd.f32 %v6891_v36, %v6313_v37 }
0x2948   :  { %v4755_v10 = vpop.f32.mrf.mxu0 }
0x2949   :  { %v8096_v5 = vadd.f32 %v6313_v37, %v4755_v10  ;;  %v5650_v42 = vrot.slane %v8098_v48, %v7401_v32  ;;  %v5816_v43 = vrot.slane %v8098_v48, %v7613_v9  ;;  %v5982_v21 = vrot.slane %v8098_v48, %v7717_v63 }
0x294a   :  { %v5567_v46 = vrot.slane %v8098_v48, %v7331_v8  ;;  %v5899_v50 = vrot.slane %v8098_v48, %v7616_v44 }
0x294b   :  { %v5025_v41 = vrot.slane %v8096_v5, %v7592_v38  ;;  %v4772_v57 = vrot.slane %v8096_v5, %v7356_v13  ;;  %v4859_v51 = vrot.slane %v8096_v5, %v7331_v8  ;;  %v4942_v7 = vrot.slane %v8096_v5, %v7401_v32 }
0x294c   :  { %v5108_v1 = vrot.slane %v8096_v5, %v7613_v9  ;;  %v5191_v14 = vrot.slane %v8096_v5, %v7616_v44  ;;  %v5274_v32 = vrot.slane %v8096_v5, %v7717_v63  ;;  %v5357_v17 = vrot.slane %v8096_v5, %v7720_v2 }
0x294d   :  { %5027 = vrot.lane.b32.xlu0 %v5025_v41, %s7221_s24  ;;  %4774 = vrot.lane.b32.xlu1 %v4772_v57, %s7221_s24  ;;  %v5484_v9 = vrot.slane %v8098_v48, %v7356_v13  ;;  %v5733_v63 = vrot.slane %v8098_v48, %v7592_v38  ;;  %v6065_v13 = vrot.slane %v8098_v48, %v7720_v2 }
0x2951   :  { %5652 = vrot.lane.b32.xlu0 %v5650_v42, %s7221_s24  ;;  %4861 = vrot.lane.b32.xlu1 %v4859_v51, %s7221_s24 }
0x2955   :  { %5818 = vrot.lane.b32.xlu0 %v5816_v43, %s7221_s24  ;;  %4944 = vrot.lane.b32.xlu1 %v4942_v7, %s7221_s24 }
0x2959   :  { %5984 = vrot.lane.b32.xlu0 %v5982_v21, %s7221_s24  ;;  %5110 = vrot.lane.b32.xlu1 %v5108_v1, %s7221_s24 }
0x295d   :  { %5193 = vrot.lane.b32.xlu1 %v5191_v14, %s7221_s24 }
0x2961   :  { %5276 = vrot.lane.b32.xlu1 %v5274_v32, %s7221_s24 }
0x2965   :  { %5359 = vrot.lane.b32.xlu1 %v5357_v17, %s7221_s24 }
0x2969   :  { %5486 = vrot.lane.b32.xlu1 %v5484_v9, %s7221_s24 }
0x296d   :  { %5569 = vrot.lane.b32.xlu1 %v5567_v46, %s7221_s24 }
0x2971   :  { %5735 = vrot.lane.b32.xlu1 %v5733_v63, %s7221_s24 }
0x2975   :  { %5901 = vrot.lane.b32.xlu1 %v5899_v50, %s7221_s24 }
0x2979   :  { %6067 = vrot.lane.b32.xlu1 %v6065_v13, %s7221_s24 }
0x29bf   :  { %v4775_v52 = vpop.permute.xlu1 %4774  ;;  %v5028_v2 = vpop.permute.xlu0 %5027 }
0x29c0   :  { %v4777_v8 = vadd.f32 %v4775_v52, %v8096_v5  ;;  %v5030_v59 = vadd.f32 %v5028_v2, %v8096_v5 }
0x29c2   :  { %v4778_v6 = vmax.f32 %v4777_v8, 0.0  ;;  %v5031_v53 = vmax.f32 %v5030_v59, 0.0 }
0x29c3   :  { %v4862_v24 = vpop.permute.xlu1 %4861  ;;  %v5653_v0 = vpop.permute.xlu0 %5652 }
0x29c4   :  { %v4864_v26 = vadd.f32 %v4862_v24, %v8096_v5  ;;  %6901 = vmatmul.mubr.msk.f32.vlgmr.msra.gmra.mxu0 %vm41_vm0, %v4778_v6  ;;  %v5655_v3 = vadd.f32 %v5653_v0, %v8098_v48 }
0x29c5   :  { %6915 = vmatpush3.msra.mxu0 %v8060_v55  ;;  %6922 = vmatprep.mubr.msk.f32.mxu0 %vm7219_vm1, %v7218_v11 }
0x29c6   :  { %v4865_v38 = vmax.f32 %v4864_v26, 0.0  ;;  %6916 = vmatprep.subr.mxu0 %v7218_v11  ;;  %v5656_v18 = vmax.f32 %v5655_v3, 0.0 }
0x29c7   :  { %6917 = vmatpush3.msra.mxu0 %v8065_v33  ;;  %v4945_v44 = vpop.permute.xlu1 %4944  ;;  %v5819_v54 = vpop.permute.xlu0 %5818 }
0x29c8   :  { %6918 = vmatprep.subr.mxu0 %v7218_v11  ;;  %v4947_v58 = vadd.f32 %v4945_v44, %v8096_v5  ;;  %6912 = vmatmul.mubr.msk.f32.vlgmr.msra.gmra.mxu1 %vm41_vm0, %v4865_v38  ;;  %v5821_v12 = vadd.f32 %v5819_v54, %v8098_v48 }
0x29c9   :  { %6919 = vmatpush3.msra.mxu0 %v8078_v34  ;;  %6926 = vmatpush3.msra.mxu1 %v8060_v55 }
0x29ca   :  { %v4948_v31 = vmax.f32 %v4947_v58, 0.0  ;;  %6920 = vmatprep.subr.mxu0 %v7218_v11  ;;  %6927 = vmatprep.subr.mxu1 %v7218_v11  ;;  %v5822_v37 = vmax.f32 %v5821_v12, 0.0 }
0x29cb   :  { %6921 = vmatpush3.msra.mxu0 %v8083_v35  ;;  %6928 = vmatpush3.msra.mxu1 %v8065_v33  ;;  %v5111_v47 = vpop.permute.xlu1 %5110 }
0x29cc   :  { %6929 = vmatprep.subr.mxu1 %v7218_v11  ;;  %6936 = vmatprep.subr.mxu0 %v7218_v11  ;;  %v5113_v62 = vadd.f32 %v5111_v47, %v8096_v5 }
0x29cd   :  { %6923 = vmatmul.mubr.msk.f32.vlgmr.msra.gmra.mxu0 %vm41_vm0, %v4948_v31  ;;  %6930 = vmatpush3.msra.mxu1 %v8078_v34 }
0x29ce   :  { %6937 = vmatpush3.msra.mxu0 %v8060_v55  ;;  %6931 = vmatprep.subr.mxu1 %v7218_v11  ;;  %v5114_v49 = vmax.f32 %v5113_v62, 0.0 }
0x29cf   :  { %6938 = vmatprep.subr.mxu0 %v7218_v11  ;;  %6932 = vmatpush3.msra.mxu1 %v8083_v35  ;;  %v5194_v39 = vpop.permute.xlu1 %5193 }
0x29d0   :  { %6933 = vmatprep.mubr.msk.f32.mxu1 %vm7219_vm1, %v7218_v11  ;;  %6939 = vmatpush3.msra.mxu0 %v8065_v33  ;;  %v5196_v4 = vadd.f32 %v5194_v39, %v8096_v5 }
0x29d1   :  { %6934 = vmatmul.mubr.msk.f32.vlgmr.msra.gmra.mxu1 %vm41_vm0, %v5031_v53  ;;  %6940 = vmatprep.subr.mxu0 %v7218_v11 }
0x29d2   :  { %6947 = vmatprep.subr.mxu1 %v7218_v11  ;;  %6941 = vmatpush3.msra.mxu0 %v8078_v34  ;;  %v5197_v22 = vmax.f32 %v5196_v4, 0.0 }
0x29d3   :  { %6948 = vmatpush3.msra.mxu1 %v8060_v55  ;;  %6942 = vmatprep.subr.mxu0 %v7218_v11  ;;  %v5277_v61 = vpop.permute.xlu1 %5276 }
0x29d4   :  { %6949 = vmatprep.subr.mxu1 %v7218_v11  ;;  %6943 = vmatpush3.msra.mxu0 %v8083_v35  ;;  %v5279_v15 = vadd.f32 %v5277_v61, %v8096_v5 }
0x29d5   :  { %6944 = vmatprep.mubr.msk.f32.mxu0 %vm7219_vm1, %v7218_v11  ;;  %6950 = vmatpush3.msra.mxu1 %v8065_v33 }
0x29d6   :  { %6945 = vmatmul.mubr.msk.f32.vlgmr.msra.gmra.mxu0 %vm41_vm0, %v5114_v49  ;;  %6951 = vmatprep.subr.mxu1 %v7218_v11  ;;  %v5280_v25 = vmax.f32 %v5279_v15, 0.0 }
0x29d7   :  { %6958 = vmatprep.subr.mxu0 %v7218_v11  ;;  %6952 = vmatpush3.msra.mxu1 %v8078_v34  ;;  %v5360_v56 = vpop.permute.xlu1 %5359 }
0x29d8   :  { %6959 = vmatpush3.msra.mxu0 %v8060_v55  ;;  %6953 = vmatprep.subr.mxu1 %v7218_v11  ;;  %v5362_v19 = vadd.f32 %v5360_v56, %v8096_v5  ;;  %v5985_v5 = vpop.permute.xlu0 %5984 }
0x29d9   :  { %6960 = vmatprep.subr.mxu0 %v7218_v11  ;;  %6954 = vmatpush3.msra.mxu1 %v8083_v35  ;;  %v5987_v57 = vadd.f32 %v5985_v5, %v8098_v48 }
0x29da   :  { %6955 = vmatprep.mubr.msk.f32.mxu1 %vm7219_vm1, %v7218_v11  ;;  %6961 = vmatpush3.msra.mxu0 %v8065_v33  ;;  %v5363_v16 = vmax.f32 %v5362_v19, 0.0 }
0x29db   :  { %6956 = vmatmul.mubr.msk.f32.vlgmr.msra.gmra.mxu1 %vm41_vm0, %v5197_v22  ;;  %6962 = vmatprep.subr.mxu0 %v7218_v11  ;;  %v5487_v20 = vpop.permute.xlu1 %5486  ;;  %v5988_v51 = vmax.f32 %v5987_v57, 0.0 }
0x29dc   :  { %6969 = vmatprep.subr.mxu1 %v7218_v11  ;;  %6963 = vmatpush3.msra.mxu0 %v8078_v34  ;;  %v5489_v27 = vadd.f32 %v5487_v20, %v8098_v48 }
0x29dd   :  { %6970 = vmatpush3.msra.mxu1 %v8060_v55  ;;  %6964 = vmatprep.subr.mxu0 %v7218_v11 }
0x29de   :  { %6971 = vmatprep.subr.mxu1 %v7218_v11  ;;  %6965 = vmatpush3.msra.mxu0 %v8083_v35  ;;  %v5490_v29 = vmax.f32 %v5489_v27, 0.0 }
0x29df   :  { %6966 = vmatprep.mubr.msk.f32.mxu0 %vm7219_vm1, %v7218_v11  ;;  %6972 = vmatpush3.msra.mxu1 %v8065_v33  ;;  %v5570_v28 = vpop.permute.xlu1 %5569 }
0x29e0   :  { %6967 = vmatmul.mubr.msk.f32.vlgmr.msra.gmra.mxu0 %vm41_vm0, %v5280_v25  ;;  %6973 = vmatprep.subr.mxu1 %v7218_v11  ;;  %v5572_v60 = vadd.f32 %v5570_v28, %v8098_v48 }
0x29e1   :  { %6980 = vmatprep.subr.mxu0 %v7218_v11  ;;  %6974 = vmatpush3.msra.mxu1 %v8078_v34 }
0x29e2   :  { %6981 = vmatpush3.msra.mxu0 %v8060_v55  ;;  %6975 = vmatprep.subr.mxu1 %v7218_v11  ;;  %v5573_v23 = vmax.f32 %v5572_v60, 0.0 }
0x29e3   :  { %6982 = vmatprep.subr.mxu0 %v7218_v11  ;;  %6976 = vmatpush3.msra.mxu1 %v8083_v35  ;;  %v5736_v45 = vpop.permute.xlu1 %5735 }
0x29e4   :  { %6977 = vmatprep.mubr.msk.f32.mxu1 %vm7219_vm1, %v7218_v11  ;;  %6983 = vmatpush3.msra.mxu0 %v8065_v33  ;;  %v5738_v30 = vadd.f32 %v5736_v45, %v8098_v48 }
0x29e5   :  { %6978 = vmatmul.mubr.msk.f32.vlgmr.msra.gmra.mxu1 %vm41_vm0, %v5363_v16  ;;  %6984 = vmatprep.subr.mxu0 %v7218_v11 }
0x29e6   :  { %6991 = vmatprep.subr.mxu1 %v7218_v11  ;;  %6985 = vmatpush3.msra.mxu0 %v8078_v34  ;;  %v5739_v40 = vmax.f32 %v5738_v30, 0.0 }
0x29e7   :  { %6992 = vmatpush3.msra.mxu1 %v8060_v55  ;;  %6986 = vmatprep.subr.mxu0 %v7218_v11  ;;  %v5902_v36 = vpop.permute.xlu1 %5901 }
0x29e8   :  { %6993 = vmatprep.subr.mxu1 %v7218_v11  ;;  %6987 = vmatpush3.msra.mxu0 %v8083_v35  ;;  %v5904_v10 = vadd.f32 %v5902_v36, %v8098_v48 }
0x29e9   :  { %6988 = vmatprep.mubr.msk.f32.mxu0 %vm7219_vm1, %v7218_v11  ;;  %6994 = vmatpush3.msra.mxu1 %v8065_v33 }
0x29ea   :  { %6989 = vmatmul.mubr.msk.f32.vlgmr.msra.gmra.mxu0 %vm41_vm0, %v5490_v29  ;;  %6995 = vmatprep.subr.mxu1 %v7218_v11  ;;  %v5905_v41 = vmax.f32 %v5904_v10, 0.0 }
0x29eb   :  { %7002 = vmatprep.subr.mxu0 %v7218_v11  ;;  %6996 = vmatpush3.msra.mxu1 %v8078_v34  ;;  %v6068_v42 = vpop.permute.xlu1 %6067 }
0x29ec   :  { %7003 = vmatpush3.msra.mxu0 %v8060_v55  ;;  %6997 = vmatprep.subr.mxu1 %v7218_v11  ;;  %v6070_v43 = vadd.f32 %v6068_v42, %v8098_v48 }
0x29ed   :  { %7004 = vmatprep.subr.mxu0 %v7218_v11  ;;  %6998 = vmatpush3.msra.mxu1 %v8083_v35 }
0x29ee   :  { %6999 = vmatprep.mubr.msk.f32.mxu1 %vm7219_vm1, %v7218_v11  ;;  %7005 = vmatpush3.msra.mxu0 %v8065_v33 }
0x29ef   :  { %7000 = vmatmul.mubr.msk.f32.vlgmr.msra.gmra.mxu1 %vm41_vm0, %v5573_v23  ;;  %7006 = vmatprep.subr.mxu0 %v7218_v11 }
0x29f0   :  { %7013 = vmatprep.subr.mxu1 %v7218_v11  ;;  %7007 = vmatpush3.msra.mxu0 %v8078_v34 }
0x29f1   :  { %7014 = vmatpush3.msra.mxu1 %v8060_v55  ;;  %7008 = vmatprep.subr.mxu0 %v7218_v11 }
0x29f2   :  { %7015 = vmatprep.subr.mxu1 %v7218_v11  ;;  %7009 = vmatpush3.msra.mxu0 %v8083_v35 }
0x29f3   :  { %7010 = vmatprep.mubr.msk.f32.mxu0 %vm7219_vm1, %v7218_v11  ;;  %7016 = vmatpush3.msra.mxu1 %v8065_v33 }
0x29f4   :  { %7011 = vmatmul.mubr.msk.f32.vlgmr.msra.gmra.mxu0 %vm41_vm0, %v5656_v18  ;;  %7017 = vmatprep.subr.mxu1 %v7218_v11 }
0x29f5   :  { %7024 = vmatprep.subr.mxu0 %v7218_v11  ;;  %7018 = vmatpush3.msra.mxu1 %v8078_v34 }
0x29f6   :  { %7025 = vmatpush3.msra.mxu0 %v8060_v55  ;;  %7019 = vmatprep.subr.mxu1 %v7218_v11 }
0x29f7   :  { %7026 = vmatprep.subr.mxu0 %v7218_v11  ;;  %7020 = vmatpush3.msra.mxu1 %v8083_v35 }
0x29f8   :  { %7021 = vmatprep.mubr.msk.f32.mxu1 %vm7219_vm1, %v7218_v11  ;;  %7027 = vmatpush3.msra.mxu0 %v8065_v33 }
0x29f9   :  { %7022 = vmatmul.mubr.msk.f32.vlgmr.msra.gmra.mxu1 %vm41_vm0, %v5739_v40  ;;  %7028 = vmatprep.subr.mxu0 %v7218_v11 }
0x29fa   :  { %7035 = vmatprep.subr.mxu1 %v7218_v11  ;;  %7029 = vmatpush3.msra.mxu0 %v8078_v34 }
0x29fb   :  { %7036 = vmatpush3.msra.mxu1 %v8060_v55  ;;  %7030 = vmatprep.subr.mxu0 %v7218_v11 }
0x29fc   :  { %7037 = vmatprep.subr.mxu1 %v7218_v11  ;;  %7031 = vmatpush3.msra.mxu0 %v8083_v35 }
0x29fd   :  { %7032 = vmatprep.mubr.msk.f32.mxu0 %vm7219_vm1, %v7218_v11  ;;  %7038 = vmatpush3.msra.mxu1 %v8065_v33 }
0x29fe   :  { %7033 = vmatmul.mubr.msk.f32.vlgmr.msra.gmra.mxu0 %vm41_vm0, %v5822_v37  ;;  %7039 = vmatprep.subr.mxu1 %v7218_v11 }
0x29ff   :  { %7046 = vmatprep.subr.mxu0 %v7218_v11  ;;  %7040 = vmatpush3.msra.mxu1 %v8078_v34 }
0x2a00   :  { %7047 = vmatpush3.msra.mxu0 %v8060_v55  ;;  %7041 = vmatprep.subr.mxu1 %v7218_v11 }
0x2a01   :  { %7048 = vmatprep.subr.mxu0 %v7218_v11  ;;  %7042 = vmatpush3.msra.mxu1 %v8083_v35 }
0x2a02   :  { %7043 = vmatprep.mubr.msk.f32.mxu1 %vm7219_vm1, %v7218_v11  ;;  %7049 = vmatpush3.msra.mxu0 %v8065_v33 }
0x2a03   :  { %7044 = vmatmul.mubr.msk.f32.vlgmr.msra.gmra.mxu1 %vm41_vm0, %v5905_v41  ;;  %7050 = vmatprep.subr.mxu0 %v7218_v11 }
0x2a04   :  { %7057 = vmatprep.subr.mxu1 %v7218_v11  ;;  %7051 = vmatpush3.msra.mxu0 %v8078_v34 }
0x2a05   :  { %7058 = vmatpush3.msra.mxu1 %v8060_v55  ;;  %7052 = vmatprep.subr.mxu0 %v7218_v11  ;;  %v6071_v55 = vmax.f32 %v6070_v43, 0.0 }
0x2a06   :  { %7059 = vmatprep.subr.mxu1 %v7218_v11  ;;  %7053 = vmatpush3.msra.mxu0 %v8083_v35 }
0x2a07   :  { %7054 = vmatprep.mubr.msk.f32.mxu0 %vm7219_vm1, %v7218_v11  ;;  %7060 = vmatpush3.msra.mxu1 %v8065_v33  ;;  %v8323_v33 = vld [vmem:[%s8392_s7 + $0x20] ss:$0 sm:$0xff]  ;;  %s7233_s7 = smov 15  }
0x2a08   :  { %7055 = vmatmul.mubr.msk.f32.vlgmr.msra.gmra.mxu0 %vm41_vm0, %v5988_v51  ;;  %7061 = vmatprep.subr.mxu1 %v7218_v11 }
0x2a09   :  { %7062 = vmatpush3.msra.mxu1 %v8078_v34  ;;  %7065 = vmatprep.mubr.msk.f32.mxu1 %vm7219_vm1, %v7218_v11 }
0x2a0a   :  { %7063 = vmatprep.subr.mxu1 %v7218_v11 }
0x2a0b   :  { %7064 = vmatpush3.msra.mxu1 %v8083_v35 }
0x2a0c   :  { %7066 = vmatmul.mubr.msk.f32.vlgmr.msra.gmra.mxu1 %vm41_vm0, %v6071_v55 }
0x2a84   :  { %v8318_v48 = vpop.f32.mrf.mxu0 }
0x2a86   :  { %v6902_v7 = vpop.f32.mrf.mxu0 }
0x2a88   :  { %v4935_v21 = vpop.f32.mrf.mxu1 }
0x2a89   :  { %v4936_v34 = vadd.f32 %v8323_v33, %v4935_v21 }
0x2a8a   :  { %v6913_v1 = vpop.f32.mrf.mxu1 }
0x2a8b   :  { %5438 = vrot.lane.b32.xlu0 %v4936_v34, %s7231_s15 }
0x2a8d   :  { %v5018_v11 = vpop.f32.mrf.mxu0 }
0x2a8e   :  { %v5019_v35 = vadd.f32 %v8323_v33, %v5018_v11 }
0x2a8f   :  { %v6924_v14 = vpop.f32.mrf.mxu0 }
0x2a90   :  { %5442 = vrot.lane.b32.xlu1 %v5019_v35, %s7232_s16 }
0x2a91   :  { %v5101_v32 = vpop.f32.mrf.mxu1 }
0x2a92   :  { %v5102_v17 = vadd.f32 %v8323_v33, %v5101_v32 }
0x2a93   :  { %v6935_v9 = vpop.f32.mrf.mxu1 }
0x2a94   :  { %5446 = vrot.lane.b32.xlu0 %v5102_v17, %s7233_s7 }
0x2a96   :  { %v5184_v46 = vpop.f32.mrf.mxu0 }
0x2a97   :  { %v5185_v63 = vadd.f32 %v8323_v33, %v5184_v46 }
0x2a98   :  { %v6946_v50 = vpop.f32.mrf.mxu0 }
0x2a99   :  { %5450 = vrot.lane.b32.xlu1 %v5185_v63, %s7234_s17 }
0x2a9b   :  { %v5267_v13 = vpop.f32.mrf.mxu1 }
0x2a9c   :  { %v5268_v52 = vadd.f32 %v8323_v33, %v5267_v13 }
0x2a9d   :  { %v6957_v8 = vpop.f32.mrf.mxu1 }
0x2a9e   :  { %5454 = vrot.lane.b32.xlu0 %v5268_v52, %s7235_s18 }
0x2aa0   :  { %v5350_v6 = vpop.f32.mrf.mxu0 }
0x2aa1   :  { %v5351_v24 = vadd.f32 %v8323_v33, %v5350_v6 }
0x2aa2   :  { %v6968_v26 = vpop.f32.mrf.mxu0 }
0x2aa3   :  { %5458 = vrot.lane.b32.xlu0 %v5351_v24, %s7236_s2 }
0x2aa5   :  { %v5433_v38 = vpop.f32.mrf.mxu1 }
0x2aa6   :  { %v5434_v22 = vadd.f32 %v8323_v33, %v5433_v38 }
0x2aa7   :  { %v6979_v44 = vpop.f32.mrf.mxu1 }
0x2aaa   :  { %v8337_v2 = vpop.f32.mrf.mxu0 }
0x2aac   :  { %v6990_v58 = vpop.f32.mrf.mxu0 }
0x2aaf   :  { %v5643_v31 = vpop.f32.mrf.mxu1 }
0x2ab0   :  { %v5644_v59 = vadd.f32 %v8323_v33, %v5643_v31 }
0x2ab1   :  { %v7001_v47 = vpop.f32.mrf.mxu1 }
0x2ab2   :  { %6146 = vrot.lane.b32.xlu0 %v5644_v59, %s7231_s15 }
0x2ab4   :  { %v5726_v53 = vpop.f32.mrf.mxu0 }
0x2ab5   :  { %v5727_v39 = vadd.f32 %v8323_v33, %v5726_v53 }
0x2ab6   :  { %v7012_v62 = vpop.f32.mrf.mxu0 }
0x2ab7   :  { %6150 = vrot.lane.b32.xlu1 %v5727_v39, %s7232_s16 }
0x2ab9   :  { %v5809_v49 = vpop.f32.mrf.mxu1 }
0x2aba   :  { %v5810_v61 = vadd.f32 %v8323_v33, %v5809_v49 }
0x2abb   :  { %v7023_v4 = vpop.f32.mrf.mxu1 }
0x2abc   :  { %6154 = vrot.lane.b32.xlu0 %v5810_v61, %s7233_s7 }
0x2abe   :  { %v5892_v15 = vpop.f32.mrf.mxu0 }
0x2abf   :  { %v5893_v56 = vadd.f32 %v8323_v33, %v5892_v15 }
0x2ac0   :  { %v7034_v25 = vpop.f32.mrf.mxu0  ;;  %5462 = vrot.lane.b32.xlu0 %v5434_v22, %s7237_s3 }
0x2ac1   :  { %6158 = vrot.lane.b32.xlu1 %v5893_v56, %s7234_s17 }
0x2ac3   :  { %v5975_v19 = vpop.f32.mrf.mxu1 }
0x2ac4   :  { %v5976_v20 = vadd.f32 %v8323_v33, %v5975_v19 }
0x2ac5   :  { %v7045_v16 = vpop.f32.mrf.mxu1 }
0x2ac6   :  { %7184 = shalt.err (!%p7181_p4)
}
0x2ac7   :  { %s7239_s5 = smov 128   ;;  %s7240_s25 = smov 8   ;;  %6162 = vrot.lane.b32.xlu1 %v5976_v20, %s7235_s18  ;;  %vm5465_vm4 = vcmask 39936   ;;  %v4853_v12 = vadd.f32 %v8323_v33, %v8318_v48  ;;  %vm5467_vm5 = vcmask 80896   ;;  %vm5469_vm6 = vcmask 121856  }
0x2ac8   :  { %6193 = dma.vmem_to_hbm [thread:$0]  %s6188_s0, 256, %s8393_s8, [#allocation3], %s7239_s5, %s7239_s5, %s7240_s25   ;;  %v6058_v27 = vpop.f32.mrf.mxu0  ;;  %vm5471_vm7 = vcmask 162816   ;;  %vm5473_vm8 = vcmask 203776   ;;  %vm5475_vm9 = vcmask 244736   ;;  %vm5477_vm10 = vcmask 285696  }
0x2ac9   :  { %v6059_v28 = vadd.f32 %v8323_v33, %v6058_v27  ;;  %vm5479_vm11 = vcmask 326656   ;;  %v5561_v34 = vadd.f32 %v8323_v33, %v8337_v2  ;;  %s7241_s8 = smov [#allocation4]  }
0x2aca   :  { %v7056_v29 = vpop.f32.mrf.mxu0  ;;  %s6199_s29 = sshll.u32 %s7241_s8, 4  ;;  %s6200_s29 = int_to_ptr.vmem [resolvable:$true] %s6199_s29 }
0x2acb   :  { %6166 = vrot.lane.b32.xlu1 %v6059_v28, %s7236_s2  ;;  %s7193_s30 = scalar_lea.vmem %s6200_s29, 256  ;;  %p7198_p6 = scmp.lt.s32.totalorder %s6200_s29, %s6200_s29 }
0x2acc   :  { %v6141_v60 = vpop.f32.mrf.mxu1  ;;  %p7194_p5 = scmp.ne.s32.totalorder %s6200_s29, %s7193_s30  ;;  %p7199_p7 = scmp.lt.s32.totalorder %s7193_s30, %s7193_s30 }
0x2acd   :  { %v6142_v0 = vadd.f32 %v8323_v33, %v6141_v60 }
0x2ace   :  { %v7067_v23 = vpop.f32.mrf.mxu1  ;;  %p7200_p8 = por %p7199_p7, %p7198_p6 }
0x2acf   :  { %6170 = vrot.lane.b32.xlu1 %v6142_v0, %s7237_s3 }
0x2ad0   :  { %p7201_p9 = pnand %p7200_p8, %p7194_p5 }
0x2afd   :  { %v5439_v3 = vpop.permute.xlu0 %5438 }
0x2afe   :  { %v5466_v37 = vsel %vm5465_vm4, %v4853_v12, %v5439_v3 }
0x2b02   :  { %v5443_v54 = vpop.permute.xlu1 %5442 }
0x2b03   :  { %v5468_v10 = vsel %vm5467_vm5, %v5466_v37, %v5443_v54 }
0x2b06   :  { %v5447_v45 = vpop.permute.xlu0 %5446 }
0x2b07   :  { %v5470_v41 = vsel %vm5469_vm6, %v5468_v10, %v5447_v45 }
0x2b0b   :  { %v5451_v36 = vpop.permute.xlu1 %5450 }
0x2b0c   :  { %v5472_v42 = vsel %vm5471_vm7, %v5470_v41, %v5451_v36 }
0x2b10   :  { %v5455_v18 = vpop.permute.xlu0 %5454 }
0x2b11   :  { %v5474_v51 = vsel %vm5473_vm8, %v5472_v42, %v5455_v18 }
0x2b15   :  { %v5459_v30 = vpop.permute.xlu0 %5458 }
0x2b16   :  { %v5476_v43 = vsel %vm5475_vm9, %v5474_v51, %v5459_v30 }
0x2b24   :  { %v6147_v40 = vpop.permute.xlu0 %6146 }
0x2b25   :  { %v6173_v1 = vsel %vm5465_vm4, %v5561_v34, %v6147_v40 }
0x2b29   :  { %v6151_v57 = vpop.permute.xlu1 %6150 }
0x2b2a   :  { %v6174_v11 = vsel %vm5467_vm5, %v6173_v1, %v6151_v57 }
0x2b2e   :  { %v6155_v5 = vpop.permute.xlu0 %6154 }
0x2b2f   :  { %v6175_v14 = vsel %vm5469_vm6, %v6174_v11, %v6155_v5 }
0x2b32   :  { %v5463_v55 = vpop.permute.xlu0 %5462 }
0x2b33   :  { %v5478_v48 = vsel %vm5477_vm10, %v5476_v43, %v5463_v55  ;;  %v6159_v7 = vpop.permute.xlu1 %6158 }
0x2b34   :  { %5480 = vst.msk [vmem:[#allocation4] sm:$0xff] %vm5479_vm11, %v5478_v48  ;;  %v6176_v32 = vsel %vm5471_vm7, %v6175_v14, %v6159_v7 }
0x2b39   :  { %v6163_v21 = vpop.permute.xlu1 %6162 }
0x2b3a   :  { %v6177_v17 = vsel %vm5473_vm8, %v6176_v32, %v6163_v21 }
0x2b3d   :  { %v6167_v35 = vpop.permute.xlu1 %6166 }
0x2b3e   :  { %v6178_v9 = vsel %vm5475_vm9, %v6177_v17, %v6167_v35 }
0x2b41   :  { %v6171_v46 = vpop.permute.xlu1 %6170 }
0x2b42   :  { %v6179_v63 = vsel %vm5477_vm10, %v6178_v9, %v6171_v46 }
0x2b43   :  { %6181 = vst.msk [vmem:[#allocation4 + $0x8] sm:$0xff] %vm5479_vm11, %v6179_v63 }
0x2b44   :  { %7204 = shalt.err (!%p7201_p9)
}
0x2b45   :  { %6205 = dma.vmem_to_hbm [thread:$0]  %s6200_s29, 256, %s8394_s9, [#allocation5], %s7239_s5, %s7239_s5, %s7240_s25  }
0x2b46   :  { %7213 = dma.done.wait [#allocation3], 256  }
0x2b47   :  { %7214 = vsyncadd [#allocation3], 4294967040 }
0x2b48   :  { %7215 = dma.done.wait [#allocation5], 256  }
0x2b49   :  { %7216 = vsyncadd [#allocation5], 4294967040 }
0x2b4a   :  { %6212 = vsyncpa [#allocation3], 1 }
0x2b4b   :  { %6213 = vsyncpa [#allocation5], 1 }

</bundles_post_ra>
